<compile_context>
chip_gen: v7x
topology: tpu7x:2x2x1
jax: 0.10.0
libtpu: 0.0.40
codegen_flags: <defaults>
</compile_context>

<pallas_src>
import functools

import jax
import jax.numpy as jnp
from jax.experimental import pallas as pl
from jax.experimental.pallas import tpu as pltpu


def mha_kernel(q_ref, k_ref, v_ref, wq_ref, wk_ref, wv_ref, wfc_ref,
               gamma_ref, beta_ref, *rest, n_head, d_k, d_v, eps, return_attn):
    if return_attn:
        out_ref, attn_ref, kproj_ref, vproj_ref = rest
    else:
        out_ref, kproj_ref, vproj_ref = rest
        attn_ref = None

    f32 = jnp.float32
    mxu = jnp.bfloat16

    # ---- K/V projections: computed once per batch element (query-tile index == 0) ----
    # kproj/vproj are persistent VMEM scratch laid out per head, so every later read is a
    # fully aligned leading-axis index. The query-tile grid axis is "arbitrary", so the
    # scratch survives across the query tiles of one batch element.
    @pl.when(pl.program_id(1) == 0)
    def _():
        xk = k_ref[0]                                   # (Lk, D) bf16 (cast in wrapper)
        xv = v_ref[0]
        for h in range(n_head):
            kproj_ref[h] = jnp.dot(xk, wk_ref[h],
                                   preferred_element_type=f32).astype(mxu)  # (Lk, dk)
            vproj_ref[h] = jnp.dot(xv, wv_ref[h],
                                   preferred_element_type=f32).astype(mxu)  # (Lk, dv)

    xq_f = q_ref[0].astype(f32)                          # (tq, D) residual in f32
    # Fold 1/sqrt(d_k) into the Q operand once (tq*D elems) instead of scaling scores.
    xq_b = (xq_f * (float(d_k) ** -0.5)).astype(mxu)

    # Accumulate residual + sum_h ctx_h @ wfc_h directly (no lane concatenate).
    y = xq_f
    # TODO(synk): for very large n_head switch to lax.fori_loop with pl.ds-sliced refs to
    #             cap vreg live ranges; static unroll is fine for typical head counts.
    for h in range(n_head):
        # Per-head projection against an aligned per-head weight panel.
        q_h = jnp.dot(xq_b, wq_ref[h], preferred_element_type=f32).astype(mxu)  # (tq, dk)
        k_h = kproj_ref[h]                                                      # (Lk, dk)
        v_h = vproj_ref[h]                                                      # (Lk, dv)

        # Scores: contract d_k of both operands, result lane-dense in Lk.
        scores = jax.lax.dot_general(
            q_h, k_h, dimension_numbers=(((1,), (1,)), ((), ())),
            preferred_element_type=f32)                                         # (tq, Lk)

        # Numerically stable softmax in f32; reciprocal goes to the EUP slot.
        m = jnp.max(scores, axis=-1, keepdims=True)
        p = jnp.exp(scores - m)
        inv_l = pl.reciprocal(jnp.sum(p, axis=-1, keepdims=True), approx=True)
        attn_h = (p * inv_l).astype(mxu)                                        # (tq, Lk)

        if attn_ref is not None:
            # NOTE: rows sum to ~1 (approx reciprocal) and are bf16 by default.
            attn_ref[0, h, :, :] = attn_h.astype(attn_ref.dtype)

        ctx_h = jnp.dot(attn_h, v_h, preferred_element_type=f32)                # (tq, dv)
        y = y + jnp.dot(ctx_h.astype(mxu), wfc_ref[h],
                        preferred_element_type=f32)                             # (tq, D)

    # TODO(synk): dropout is treated as identity (eval/inference semantics).
    # LayerNorm over d_model in f32.
    mean = jnp.mean(y, axis=-1, keepdims=True)
    var = jnp.mean((y - mean) ** 2, axis=-1, keepdims=True)
    y = (y - mean) * jax.lax.rsqrt(var + eps)
    y = y * gamma_ref[...] + beta_ref[...]

    out_ref[0] = y.astype(out_ref.dtype)


def _vmem_capacity_bytes():
    """Physical VMEM capacity (fallback: conservative v7x-sized 64 MiB)."""
    try:
        info = pltpu.get_tpu_info()
        for name in ("vmem_capacity_bytes", "vmem_size_bytes", "vmem_bytes"):
            cap = getattr(info, name, None)
            if cap:
                return int(cap)
    except Exception:
        pass
    return 64 * 1024 * 1024


def _pick_tq(Lq, Lk, n_head, vmem_cap_bytes, return_attn, attn_itemsize):
    """Largest query tile that divides Lq and keeps the attn block within budget."""
    big_vmem = vmem_cap_bytes >= 100 * 1024 * 1024
    max_tq = 512 if big_vmem else 128
    attn_budget = vmem_cap_bytes // 4           # slice of VMEM for the (buffered) attn block
    for t in (512, 256, 128, 64, 32, 16, 8):
        if t > max_tq or Lq % t:
            continue
        if return_attn and 2 * n_head * t * Lk * attn_itemsize > attn_budget:
            continue
        return t
    for t in (8, 16, 32, 64, 128):              # smallest clean divisor as a fallback
        if Lq % t == 0:
            return t
    return Lq


def multi_head_attention(q, k, v, wq, wk, wv, wfc, gamma, beta, *,
                         n_head, d_k, d_v, eps=1e-5, tq=None,
                         return_attn=True, attn_dtype=jnp.bfloat16):
    B, Lq, D = q.shape
    Lk = k.shape[1]

    vmem_cap = _vmem_capacity_bytes()
    if tq is None:
        tq = _pick_tq(Lq, Lk, n_head, vmem_cap, return_attn,
                      jnp.dtype(attn_dtype).itemsize)
    if Lq % tq != 0:
        raise ValueError(f"tq={tq} must evenly divide len_q={Lq}")

    bf16 = jnp.bfloat16
    # k/v cast to bf16 once in the wrapper (halves DMA/VMEM); q kept in its input dtype.
    k_b = k.astype(bf16)
    v_b = v.astype(bf16)
    # Weights: bf16, pre-permuted into per-head panels so all in-kernel per-head slices
    # are aligned leading-axis ref indexes (no cross-lane extraction).
    wq_b = wq.astype(bf16).reshape(D, n_head, d_k).transpose(1, 0, 2)    # (H, D, dk)
    wk_b = wk.astype(bf16).reshape(D, n_head, d_k).transpose(1, 0, 2)    # (H, D, dk)
    wv_b = wv.astype(bf16).reshape(D, n_head, d_v).transpose(1, 0, 2)    # (H, D, dv)
    wfc_b = wfc.astype(bf16).reshape(n_head, d_v, D)                     # (H, dv, D)
    gamma_f = jnp.asarray(gamma, jnp.float32).reshape(1, D)
    beta_f = jnp.asarray(beta, jnp.float32).reshape(1, D)

    kernel = functools.partial(mha_kernel, n_head=n_head, d_k=d_k, d_v=d_v,
                               eps=eps, return_attn=return_attn)

    small_vmem = vmem_cap < 100 * 1024 * 1024
    vmem_limit = int(vmem_cap * 0.8)

    def build(single_buffer):
        def spec(shape, imap, single=False):
            if single and single_buffer:
                # Block index constant across the inner grid axis -> single buffer.
                return pl.BlockSpec(shape, imap, pipeline_mode=pl.Buffered(1))
            return pl.BlockSpec(shape, imap)

        in_specs = [
            pl.BlockSpec((1, tq, D), lambda b, i: (b, i, 0)),               # q tile
            # k/v block index changes only at batch boundaries; single-buffer them on
            # small-VMEM chips (v7x), keep double-buffering on 128 MiB chips.
            spec((1, Lk, D), lambda b, i: (b, 0, 0), single=small_vmem),    # k (full Lk)
            spec((1, Lk, D), lambda b, i: (b, 0, 0), single=small_vmem),    # v (full Lk)
            spec((n_head, D, d_k), lambda b, i: (0, 0, 0), single=True),    # wq panels
            spec((n_head, D, d_k), lambda b, i: (0, 0, 0), single=True),    # wk panels
            spec((n_head, D, d_v), lambda b, i: (0, 0, 0), single=True),    # wv panels
            spec((n_head, d_v, D), lambda b, i: (0, 0, 0), single=True),    # fc panels
            spec((1, D), lambda b, i: (0, 0), single=True),                 # gamma
            spec((1, D), lambda b, i: (0, 0), single=True),                 # beta
        ]
        out_shapes = [jax.ShapeDtypeStruct((B, Lq, D), q.dtype)]
        out_specs = [pl.BlockSpec((1, tq, D), lambda b, i: (b, i, 0))]
        if return_attn:
            out_shapes.append(jax.ShapeDtypeStruct((B, n_head, Lq, Lk), attn_dtype))
            out_specs.append(
                pl.BlockSpec((1, n_head, tq, Lk), lambda b, i: (b, 0, i, 0)))

        return pl.pallas_call(
            kernel,
            out_shape=tuple(out_shapes),
            grid=(B, Lq // tq),
            in_specs=in_specs,
            out_specs=tuple(out_specs),
            scratch_shapes=[
                pltpu.VMEM((n_head, Lk, d_k), bf16),   # per-batch K projections
                pltpu.VMEM((n_head, Lk, d_v), bf16),   # per-batch V projections
            ],
            compiler_params=pltpu.CompilerParams(
                dimension_semantics=("parallel", "arbitrary"),
                vmem_limit_bytes=vmem_limit,
            ),
        )

    args = (q, k_b, v_b, wq_b, wk_b, wv_b, wfc_b, gamma_f, beta_f)
    try:
        results = build(single_buffer=True)(*args)
    except Exception:
        # Fallback if this JAX build does not support pipeline_mode=pl.Buffered(1).
        results = build(single_buffer=False)(*args)

    if return_attn:
        out, attn = results
        return out, attn
    (out,) = results
    return out, None


def reference_mha(q, k, v, wq, wk, wv, wfc, gamma, beta, *, n_head, d_k, d_v, eps=1e-5):
    """Plain-JAX reference mirroring the PyTorch forward (dropout as identity) with the
    kernel's precision policy (bf16 MXU operands, f32 accumulation / softmax / LN)."""
    bf16, f32 = jnp.bfloat16, jnp.float32
    B, Lq, D = q.shape
    Lk = k.shape[1]
    scale = float(d_k) ** -0.5

    Q = jnp.dot((q * scale).astype(bf16), wq.astype(bf16), preferred_element_type=f32)
    K = jnp.dot(k.astype(bf16), wk.astype(bf16), preferred_element_type=f32)
    V = jnp.dot(v.astype(bf16), wv.astype(bf16), preferred_element_type=f32)

    Qh = Q.reshape(B, Lq, n_head, d_k).transpose(0, 2, 1, 3).astype(bf16)
    Kh = K.reshape(B, Lk, n_head, d_k).transpose(0, 2, 1, 3).astype(bf16)
    Vh = V.reshape(B, Lk, n_head, d_v).transpose(0, 2, 1, 3).astype(bf16)

    scores = jnp.einsum('bhqd,bhkd->bhqk', Qh, Kh, preferred_element_type=f32)
    attn = jax.nn.softmax(scores, axis=-1)
    ctx = jnp.einsum('bhqk,bhkd->bhqd', attn.astype(bf16), Vh,
                     preferred_element_type=f32)
    ctx = ctx.transpose(0, 2, 1, 3).reshape(B, Lq, n_head * d_v)

    y = jnp.dot(ctx.astype(bf16), wfc.astype(bf16), preferred_element_type=f32)
    y = y + q.astype(f32)
    mean = y.mean(-1, keepdims=True)
    var = ((y - mean) ** 2).mean(-1, keepdims=True)
    y = (y - mean) * jax.lax.rsqrt(var + eps) * gamma + beta
    return y.astype(q.dtype), attn


if __name__ == "__main__":
    # Small, deterministic problem: batch=2, seq=8, d_model=32, n_head=4, d_k=d_v=8.
    # (For real models, d_k/d_v that are multiples of 128 give full MXU contraction depth.)
    B, L, D = 2, 8, 32
    n_head, d_k, d_v = 4, 8, 8

    key = jax.random.PRNGKey(0)
    kq, kk, kv, kwq, kwk, kwv, kwf = jax.random.split(key, 7)

    q = jax.random.normal(kq, (B, L, D), dtype=jnp.float32)
    k = jax.random.normal(kk, (B, L, D), dtype=jnp.float32)
    v = jax.random.normal(kv, (B, L, D), dtype=jnp.float32)

    # Synthetic parameters; linear weights stored transposed as (in_dim, out_dim).
    wq = jax.random.normal(kwq, (D, n_head * d_k), dtype=jnp.float32) * 0.1
    wk = jax.random.normal(kwk, (D, n_head * d_k), dtype=jnp.float32) * 0.1
    wv = jax.random.normal(kwv, (D, n_head * d_v), dtype=jnp.float32) * 0.1
    wfc = jax.random.normal(kwf, (n_head * d_v, D), dtype=jnp.float32) * 0.1
    gamma = jnp.ones((1, D), dtype=jnp.float32)
    beta = jnp.zeros((1, D), dtype=jnp.float32)

    out, attn = multi_head_attention(q, k, v, wq, wk, wv, wfc, gamma, beta,
                                     n_head=n_head, d_k=d_k, d_v=d_v)
    jax.block_until_ready((out, attn))

    ref_out, ref_attn = reference_mha(q, k, v, wq, wk, wv, wfc, gamma, beta,
                                      n_head=n_head, d_k=d_k, d_v=d_v)

    # Tolerances account for bf16 MXU operands, bf16 attn output and approx reciprocal.
    assert jnp.allclose(attn.astype(jnp.float32), ref_attn.astype(jnp.float32),
                        atol=1e-2, rtol=1e-2), "attention mismatch"
    assert jnp.allclose(out, ref_out, atol=2e-2, rtol=2e-2), "output mismatch"

    # Also exercise the cheaper path that skips the attention-probability writeback.
    out_noattn, attn_none = multi_head_attention(q, k, v, wq, wk, wv, wfc, gamma, beta,
                                                 n_head=n_head, d_k=d_k, d_v=d_v,
                                                 return_attn=False)
    jax.block_until_ready(out_noattn)
    assert attn_none is None
    assert jnp.allclose(out_noattn, ref_out, atol=2e-2, rtol=2e-2), "no-attn output mismatch"

    print("KERNEL_OK")
</pallas_src>

<mosaic_0001>
module attributes {stable_mosaic.version = 11 : i64} {
  func.func @mha_kernel(%arg0: i32, %arg1: i32, %arg2: memref<1x8x32xf32, #tpu.memory_space<vmem>>, %arg3: memref<1x8x32xbf16, #tpu.memory_space<vmem>>, %arg4: memref<1x8x32xbf16, #tpu.memory_space<vmem>>, %arg5: memref<4x32x8xbf16, #tpu.memory_space<vmem>>, %arg6: memref<4x32x8xbf16, #tpu.memory_space<vmem>>, %arg7: memref<4x32x8xbf16, #tpu.memory_space<vmem>>, %arg8: memref<4x8x32xbf16, #tpu.memory_space<vmem>>, %arg9: memref<1x32xf32, #tpu.memory_space<vmem>>, %arg10: memref<1x32xf32, #tpu.memory_space<vmem>>, %arg11: memref<1x8x32xf32, #tpu.memory_space<vmem>>, %arg12: memref<1x4x8x8xbf16, #tpu.memory_space<vmem>>, %arg13: memref<4x8x8xbf16, #tpu.memory_space<vmem>>, %arg14: memref<4x8x8xbf16, #tpu.memory_space<vmem>>) attributes {dimension_semantics = [#tpu.dimension_semantics<parallel>, #tpu.dimension_semantics<arbitrary>], iteration_bounds = array<i64: 2, 1>, scalar_prefetch = 0 : i64, scratch_operands = 2 : i64, tpu.core_type = #tpu.core_type<tc>, window_params = [{transform_indices = @transform_0, window_bounds = array<i64: 1, 8, 32>}, {pipeline_mode = #tpu.pipeline_mode<synchronous>, transform_indices = @transform_1, window_bounds = array<i64: 1, 8, 32>}, {pipeline_mode = #tpu.pipeline_mode<synchronous>, transform_indices = @transform_2, window_bounds = array<i64: 1, 8, 32>}, {pipeline_mode = #tpu.pipeline_mode<synchronous>, transform_indices = @transform_3, window_bounds = array<i64: 4, 32, 8>}, {pipeline_mode = #tpu.pipeline_mode<synchronous>, transform_indices = @transform_4, window_bounds = array<i64: 4, 32, 8>}, {pipeline_mode = #tpu.pipeline_mode<synchronous>, transform_indices = @transform_5, window_bounds = array<i64: 4, 32, 8>}, {pipeline_mode = #tpu.pipeline_mode<synchronous>, transform_indices = @transform_6, window_bounds = array<i64: 4, 8, 32>}, {pipeline_mode = #tpu.pipeline_mode<synchronous>, transform_indices = @transform_7, window_bounds = array<i64: 1, 32>}, {pipeline_mode = #tpu.pipeline_mode<synchronous>, transform_indices = @transform_8, window_bounds = array<i64: 1, 32>}, {transform_indices = @transform_9, window_bounds = array<i64: 1, 8, 32>}, {transform_indices = @transform_10, window_bounds = array<i64: 1, 4, 8, 8>}]} {
    %c0_i32 = arith.constant 0 : i32
    %0 = arith.cmpi eq, %arg1, %c0_i32 : i32
    %1 = arith.extui %0 : i1 to i32
    %c0_i32_0 = arith.constant 0 : i32
    %2 = arith.cmpi ne, %1, %c0_i32_0 : i32
    scf.if %2 {
      %c0_100 = arith.constant 0 : index
      %c0_101 = arith.constant 0 : index
      %c0_102 = arith.constant 0 : index
      %151 = vector.load %arg3[%c0_100, %c0_101, %c0_102] : memref<1x8x32xbf16, #tpu.memory_space<vmem>>, vector<1x8x32xbf16>
      %152 = vector.shape_cast %151 : vector<1x8x32xbf16> to vector<8x32xbf16>
      %c0_103 = arith.constant 0 : index
      %c0_104 = arith.constant 0 : index
      %c0_105 = arith.constant 0 : index
      %153 = vector.load %arg4[%c0_103, %c0_104, %c0_105] : memref<1x8x32xbf16, #tpu.memory_space<vmem>>, vector<1x8x32xbf16>
      %154 = vector.shape_cast %153 : vector<1x8x32xbf16> to vector<8x32xbf16>
      %c0_106 = arith.constant 0 : index
      %c0_107 = arith.constant 0 : index
      %c0_108 = arith.constant 0 : index
      %155 = vector.load %arg6[%c0_106, %c0_107, %c0_108] : memref<4x32x8xbf16, #tpu.memory_space<vmem>>, vector<1x32x8xbf16>
      %156 = vector.shape_cast %155 : vector<1x32x8xbf16> to vector<32x8xbf16>
      %cst_109 = arith.constant dense<0.000000e+00> : vector<8x8xf32>
      %157 = tpu.matmul %152, %156, %cst_109 {dimension_numbers = #tpu.dot_dimension_numbers<[1], [0], [0], [1], [0, 0, 1, 1], [], []>} : vector<8x32xbf16>, vector<32x8xbf16>, vector<8x8xf32> -> vector<8x8xf32>
      %158 = arith.truncf %157 : vector<8x8xf32> to vector<8x8xbf16>
      %c0_110 = arith.constant 0 : index
      %c0_111 = arith.constant 0 : index
      %c0_112 = arith.constant 0 : index
      %159 = vector.load %arg13[%c0_110, %c0_111, %c0_112] : memref<4x8x8xbf16, #tpu.memory_space<vmem>>, vector<1x8x8xbf16>
      %160 = vector.shape_cast %159 : vector<1x8x8xbf16> to vector<8x8xbf16>
      %161 = vector.shape_cast %158 : vector<8x8xbf16> to vector<1x8x8xbf16>
      tpu.vector_store %arg13[%c0_110, %c0_111, %c0_112], %161 {strides = array<i32>} : memref<4x8x8xbf16, #tpu.memory_space<vmem>>, vector<1x8x8xbf16>,
      %c0_113 = arith.constant 0 : index
      %c0_114 = arith.constant 0 : index
      %c0_115 = arith.constant 0 : index
      %162 = vector.load %arg7[%c0_113, %c0_114, %c0_115] : memref<4x32x8xbf16, #tpu.memory_space<vmem>>, vector<1x32x8xbf16>
      %163 = vector.shape_cast %162 : vector<1x32x8xbf16> to vector<32x8xbf16>
      %cst_116 = arith.constant dense<0.000000e+00> : vector<8x8xf32>
      %164 = tpu.matmul %154, %163, %cst_116 {dimension_numbers = #tpu.dot_dimension_numbers<[1], [0], [0], [1], [0, 0, 1, 1], [], []>} : vector<8x32xbf16>, vector<32x8xbf16>, vector<8x8xf32> -> vector<8x8xf32>
      %165 = arith.truncf %164 : vector<8x8xf32> to vector<8x8xbf16>
      %c0_117 = arith.constant 0 : index
      %c0_118 = arith.constant 0 : index
      %c0_119 = arith.constant 0 : index
      %166 = vector.load %arg14[%c0_117, %c0_118, %c0_119] : memref<4x8x8xbf16, #tpu.memory_space<vmem>>, vector<1x8x8xbf16>
      %167 = vector.shape_cast %166 : vector<1x8x8xbf16> to vector<8x8xbf16>
      %168 = vector.shape_cast %165 : vector<8x8xbf16> to vector<1x8x8xbf16>
      tpu.vector_store %arg14[%c0_117, %c0_118, %c0_119], %168 {strides = array<i32>} : memref<4x8x8xbf16, #tpu.memory_space<vmem>>, vector<1x8x8xbf16>,
      %c1_120 = arith.constant 1 : index
      %c0_121 = arith.constant 0 : index
      %c0_122 = arith.constant 0 : index
      %169 = vector.load %arg6[%c1_120, %c0_121, %c0_122] : memref<4x32x8xbf16, #tpu.memory_space<vmem>>, vector<1x32x8xbf16>
      %170 = vector.shape_cast %169 : vector<1x32x8xbf16> to vector<32x8xbf16>
      %cst_123 = arith.constant dense<0.000000e+00> : vector<8x8xf32>
      %171 = tpu.matmul %152, %170, %cst_123 {dimension_numbers = #tpu.dot_dimension_numbers<[1], [0], [0], [1], [0, 0, 1, 1], [], []>} : vector<8x32xbf16>, vector<32x8xbf16>, vector<8x8xf32> -> vector<8x8xf32>
      %172 = arith.truncf %171 : vector<8x8xf32> to vector<8x8xbf16>
      %c1_124 = arith.constant 1 : index
      %c0_125 = arith.constant 0 : index
      %c0_126 = arith.constant 0 : index
      %173 = vector.load %arg13[%c1_124, %c0_125, %c0_126] : memref<4x8x8xbf16, #tpu.memory_space<vmem>>, vector<1x8x8xbf16>
      %174 = vector.shape_cast %173 : vector<1x8x8xbf16> to vector<8x8xbf16>
      %175 = vector.shape_cast %172 : vector<8x8xbf16> to vector<1x8x8xbf16>
      tpu.vector_store %arg13[%c1_124, %c0_125, %c0_126], %175 {strides = array<i32>} : memref<4x8x8xbf16, #tpu.memory_space<vmem>>, vector<1x8x8xbf16>,
      %c1_127 = arith.constant 1 : index
      %c0_128 = arith.constant 0 : index
      %c0_129 = arith.constant 0 : index
      %176 = vector.load %arg7[%c1_127, %c0_128, %c0_129] : memref<4x32x8xbf16, #tpu.memory_space<vmem>>, vector<1x32x8xbf16>
      %177 = vector.shape_cast %176 : vector<1x32x8xbf16> to vector<32x8xbf16>
      %cst_130 = arith.constant dense<0.000000e+00> : vector<8x8xf32>
      %178 = tpu.matmul %154, %177, %cst_130 {dimension_numbers = #tpu.dot_dimension_numbers<[1], [0], [0], [1], [0, 0, 1, 1], [], []>} : vector<8x32xbf16>, vector<32x8xbf16>, vector<8x8xf32> -> vector<8x8xf32>
      %179 = arith.truncf %178 : vector<8x8xf32> to vector<8x8xbf16>
      %c1_131 = arith.constant 1 : index
      %c0_132 = arith.constant 0 : index
      %c0_133 = arith.constant 0 : index
      %180 = vector.load %arg14[%c1_131, %c0_132, %c0_133] : memref<4x8x8xbf16, #tpu.memory_space<vmem>>, vector<1x8x8xbf16>
      %181 = vector.shape_cast %180 : vector<1x8x8xbf16> to vector<8x8xbf16>
      %182 = vector.shape_cast %179 : vector<8x8xbf16> to vector<1x8x8xbf16>
      tpu.vector_store %arg14[%c1_131, %c0_132, %c0_133], %182 {strides = array<i32>} : memref<4x8x8xbf16, #tpu.memory_space<vmem>>, vector<1x8x8xbf16>,
      %c2_134 = arith.constant 2 : index
      %c0_135 = arith.constant 0 : index
      %c0_136 = arith.constant 0 : index
      %183 = vector.load %arg6[%c2_134, %c0_135, %c0_136] : memref<4x32x8xbf16, #tpu.memory_space<vmem>>, vector<1x32x8xbf16>
      %184 = vector.shape_cast %183 : vector<1x32x8xbf16> to vector<32x8xbf16>
      %cst_137 = arith.constant dense<0.000000e+00> : vector<8x8xf32>
      %185 = tpu.matmul %152, %184, %cst_137 {dimension_numbers = #tpu.dot_dimension_numbers<[1], [0], [0], [1], [0, 0, 1, 1], [], []>} : vector<8x32xbf16>, vector<32x8xbf16>, vector<8x8xf32> -> vector<8x8xf32>
      %186 = arith.truncf %185 : vector<8x8xf32> to vector<8x8xbf16>
      %c2_138 = arith.constant 2 : index
      %c0_139 = arith.constant 0 : index
      %c0_140 = arith.constant 0 : index
      %187 = vector.load %arg13[%c2_138, %c0_139, %c0_140] : memref<4x8x8xbf16, #tpu.memory_space<vmem>>, vector<1x8x8xbf16>
      %188 = vector.shape_cast %187 : vector<1x8x8xbf16> to vector<8x8xbf16>
      %189 = vector.shape_cast %186 : vector<8x8xbf16> to vector<1x8x8xbf16>
      tpu.vector_store %arg13[%c2_138, %c0_139, %c0_140], %189 {strides = array<i32>} : memref<4x8x8xbf16, #tpu.memory_space<vmem>>, vector<1x8x8xbf16>,
      %c2_141 = arith.constant 2 : index
      %c0_142 = arith.constant 0 : index
      %c0_143 = arith.constant 0 : index
      %190 = vector.load %arg7[%c2_141, %c0_142, %c0_143] : memref<4x32x8xbf16, #tpu.memory_space<vmem>>, vector<1x32x8xbf16>
      %191 = vector.shape_cast %190 : vector<1x32x8xbf16> to vector<32x8xbf16>
      %cst_144 = arith.constant dense<0.000000e+00> : vector<8x8xf32>
      %192 = tpu.matmul %154, %191, %cst_144 {dimension_numbers = #tpu.dot_dimension_numbers<[1], [0], [0], [1], [0, 0, 1, 1], [], []>} : vector<8x32xbf16>, vector<32x8xbf16>, vector<8x8xf32> -> vector<8x8xf32>
      %193 = arith.truncf %192 : vector<8x8xf32> to vector<8x8xbf16>
      %c2_145 = arith.constant 2 : index
      %c0_146 = arith.constant 0 : index
      %c0_147 = arith.constant 0 : index
      %194 = vector.load %arg14[%c2_145, %c0_146, %c0_147] : memref<4x8x8xbf16, #tpu.memory_space<vmem>>, vector<1x8x8xbf16>
      %195 = vector.shape_cast %194 : vector<1x8x8xbf16> to vector<8x8xbf16>
      %196 = vector.shape_cast %193 : vector<8x8xbf16> to vector<1x8x8xbf16>
      tpu.vector_store %arg14[%c2_145, %c0_146, %c0_147], %196 {strides = array<i32>} : memref<4x8x8xbf16, #tpu.memory_space<vmem>>, vector<1x8x8xbf16>,
      %c3_148 = arith.constant 3 : index
      %c0_149 = arith.constant 0 : index
      %c0_150 = arith.constant 0 : index
      %197 = vector.load %arg6[%c3_148, %c0_149, %c0_150] : memref<4x32x8xbf16, #tpu.memory_space<vmem>>, vector<1x32x8xbf16>
      %198 = vector.shape_cast %197 : vector<1x32x8xbf16> to vector<32x8xbf16>
      %cst_151 = arith.constant dense<0.000000e+00> : vector<8x8xf32>
      %199 = tpu.matmul %152, %198, %cst_151 {dimension_numbers = #tpu.dot_dimension_numbers<[1], [0], [0], [1], [0, 0, 1, 1], [], []>} : vector<8x32xbf16>, vector<32x8xbf16>, vector<8x8xf32> -> vector<8x8xf32>
      %200 = arith.truncf %199 : vector<8x8xf32> to vector<8x8xbf16>
      %c3_152 = arith.constant 3 : index
      %c0_153 = arith.constant 0 : index
      %c0_154 = arith.constant 0 : index
      %201 = vector.load %arg13[%c3_152, %c0_153, %c0_154] : memref<4x8x8xbf16, #tpu.memory_space<vmem>>, vector<1x8x8xbf16>
      %202 = vector.shape_cast %201 : vector<1x8x8xbf16> to vector<8x8xbf16>
      %203 = vector.shape_cast %200 : vector<8x8xbf16> to vector<1x8x8xbf16>
      tpu.vector_store %arg13[%c3_152, %c0_153, %c0_154], %203 {strides = array<i32>} : memref<4x8x8xbf16, #tpu.memory_space<vmem>>, vector<1x8x8xbf16>,
      %c3_155 = arith.constant 3 : index
      %c0_156 = arith.constant 0 : index
      %c0_157 = arith.constant 0 : index
      %204 = vector.load %arg7[%c3_155, %c0_156, %c0_157] : memref<4x32x8xbf16, #tpu.memory_space<vmem>>, vector<1x32x8xbf16>
      %205 = vector.shape_cast %204 : vector<1x32x8xbf16> to vector<32x8xbf16>
      %cst_158 = arith.constant dense<0.000000e+00> : vector<8x8xf32>
      %206 = tpu.matmul %154, %205, %cst_158 {dimension_numbers = #tpu.dot_dimension_numbers<[1], [0], [0], [1], [0, 0, 1, 1], [], []>} : vector<8x32xbf16>, vector<32x8xbf16>, vector<8x8xf32> -> vector<8x8xf32>
      %207 = arith.truncf %206 : vector<8x8xf32> to vector<8x8xbf16>
      %c3_159 = arith.constant 3 : index
      %c0_160 = arith.constant 0 : index
      %c0_161 = arith.constant 0 : index
      %208 = vector.load %arg14[%c3_159, %c0_160, %c0_161] : memref<4x8x8xbf16, #tpu.memory_space<vmem>>, vector<1x8x8xbf16>
      %209 = vector.shape_cast %208 : vector<1x8x8xbf16> to vector<8x8xbf16>
      %210 = vector.shape_cast %207 : vector<8x8xbf16> to vector<1x8x8xbf16>
      tpu.vector_store %arg14[%c3_159, %c0_160, %c0_161], %210 {strides = array<i32>} : memref<4x8x8xbf16, #tpu.memory_space<vmem>>, vector<1x8x8xbf16>,
    } else {
    }
    %c0 = arith.constant 0 : index
    %c0_1 = arith.constant 0 : index
    %c0_2 = arith.constant 0 : index
    %3 = vector.load %arg2[%c0, %c0_1, %c0_2] : memref<1x8x32xf32, #tpu.memory_space<vmem>>, vector<1x8x32xf32>
    %4 = vector.shape_cast %3 : vector<1x8x32xf32> to vector<8x32xf32>
    %cst = arith.constant 0.353553385 : f32
    %5 = vector.broadcast %cst : f32 to vector<8x32xf32>
    %6 = arith.mulf %4, %5 : vector<8x32xf32>
    %7 = arith.truncf %6 : vector<8x32xf32> to vector<8x32xbf16>
    %c0_3 = arith.constant 0 : index
    %c0_4 = arith.constant 0 : index
    %c0_5 = arith.constant 0 : index
    %8 = vector.load %arg5[%c0_3, %c0_4, %c0_5] : memref<4x32x8xbf16, #tpu.memory_space<vmem>>, vector<1x32x8xbf16>
    %9 = vector.shape_cast %8 : vector<1x32x8xbf16> to vector<32x8xbf16>
    %cst_6 = arith.constant dense<0.000000e+00> : vector<8x8xf32>
    %10 = tpu.matmul %7, %9, %cst_6 {dimension_numbers = #tpu.dot_dimension_numbers<[1], [0], [0], [1], [0, 0, 1, 1], [], []>} : vector<8x32xbf16>, vector<32x8xbf16>, vector<8x8xf32> -> vector<8x8xf32>
    %11 = arith.truncf %10 : vector<8x8xf32> to vector<8x8xbf16>
    %c0_7 = arith.constant 0 : index
    %c0_8 = arith.constant 0 : index
    %c0_9 = arith.constant 0 : index
    %12 = vector.load %arg13[%c0_7, %c0_8, %c0_9] : memref<4x8x8xbf16, #tpu.memory_space<vmem>>, vector<1x8x8xbf16>
    %13 = vector.shape_cast %12 : vector<1x8x8xbf16> to vector<8x8xbf16>
    %c0_10 = arith.constant 0 : index
    %c0_11 = arith.constant 0 : index
    %c0_12 = arith.constant 0 : index
    %14 = vector.load %arg14[%c0_10, %c0_11, %c0_12] : memref<4x8x8xbf16, #tpu.memory_space<vmem>>, vector<1x8x8xbf16>
    %15 = vector.shape_cast %14 : vector<1x8x8xbf16> to vector<8x8xbf16>
    %cst_13 = arith.constant dense<0.000000e+00> : vector<8x8xf32>
    %16 = tpu.matmul %11, %13, %cst_13 {dimension_numbers = #tpu.dot_dimension_numbers<[1], [1], [0], [0], [0, 0, 1, 0], [], []>} : vector<8x8xbf16>, vector<8x8xbf16>, vector<8x8xf32> -> vector<8x8xf32>
    %cst_14 = arith.constant dense<0xFF800000> : vector<8xf32>
    %17 = vector.multi_reduction <maximumf>, %16, %cst_14 [1] : vector<8x8xf32> to vector<8xf32>
    %18 = vector.shape_cast %17 : vector<8xf32> to vector<8x1xf32>
    %19 = vector.broadcast %18 : vector<8x1xf32> to vector<8x8xf32>
    %20 = arith.subf %16, %19 : vector<8x8xf32>
    %21 = math.exp %20 : vector<8x8xf32>
    %cst_15 = arith.constant dense<0.000000e+00> : vector<8xf32>
    %22 = vector.multi_reduction <add>, %21, %cst_15 [1] : vector<8x8xf32> to vector<8xf32>
    %23 = vector.shape_cast %22 : vector<8xf32> to vector<8x1xf32>
    %24 = tpu.reciprocal %23 {approx = true} : vector<8x1xf32> -> vector<8x1xf32>
    %25 = vector.broadcast %24 : vector<8x1xf32> to vector<8x8xf32>
    %26 = arith.mulf %21, %25 : vector<8x8xf32>
    %27 = arith.truncf %26 : vector<8x8xf32> to vector<8x8xbf16>
    %c0_16 = arith.constant 0 : index
    %c0_17 = arith.constant 0 : index
    %c0_18 = arith.constant 0 : index
    %c0_19 = arith.constant 0 : index
    %28 = vector.load %arg12[%c0_16, %c0_17, %c0_18, %c0_19] : memref<1x4x8x8xbf16, #tpu.memory_space<vmem>>, vector<1x1x8x8xbf16>
    %29 = vector.shape_cast %28 : vector<1x1x8x8xbf16> to vector<8x8xbf16>
    %30 = vector.shape_cast %27 : vector<8x8xbf16> to vector<1x1x8x8xbf16>
    tpu.vector_store %arg12[%c0_16, %c0_17, %c0_18, %c0_19], %30 {strides = array<i32>} : memref<1x4x8x8xbf16, #tpu.memory_space<vmem>>, vector<1x1x8x8xbf16>,
    %cst_20 = arith.constant dense<0.000000e+00> : vector<8x8xf32>
    %31 = tpu.matmul %27, %15, %cst_20 {dimension_numbers = #tpu.dot_dimension_numbers<[1], [0], [0], [1], [0, 0, 1, 1], [], []>} : vector<8x8xbf16>, vector<8x8xbf16>, vector<8x8xf32> -> vector<8x8xf32>
    %32 = arith.truncf %31 : vector<8x8xf32> to vector<8x8xbf16>
    %c0_21 = arith.constant 0 : index
    %c0_22 = arith.constant 0 : index
    %c0_23 = arith.constant 0 : index
    %33 = vector.load %arg8[%c0_21, %c0_22, %c0_23] : memref<4x8x32xbf16, #tpu.memory_space<vmem>>, vector<1x8x32xbf16>
    %34 = vector.shape_cast %33 : vector<1x8x32xbf16> to vector<8x32xbf16>
    %cst_24 = arith.constant dense<0.000000e+00> : vector<8x32xf32>
    %35 = tpu.matmul %32, %34, %cst_24 {dimension_numbers = #tpu.dot_dimension_numbers<[1], [0], [0], [1], [0, 0, 1, 1], [], []>} : vector<8x8xbf16>, vector<8x32xbf16>, vector<8x32xf32> -> vector<8x32xf32>
    %36 = arith.addf %4, %35 : vector<8x32xf32>
    %c1 = arith.constant 1 : index
    %c0_25 = arith.constant 0 : index
    %c0_26 = arith.constant 0 : index
    %37 = vector.load %arg5[%c1, %c0_25, %c0_26] : memref<4x32x8xbf16, #tpu.memory_space<vmem>>, vector<1x32x8xbf16>
    %38 = vector.shape_cast %37 : vector<1x32x8xbf16> to vector<32x8xbf16>
    %cst_27 = arith.constant dense<0.000000e+00> : vector<8x8xf32>
    %39 = tpu.matmul %7, %38, %cst_27 {dimension_numbers = #tpu.dot_dimension_numbers<[1], [0], [0], [1], [0, 0, 1, 1], [], []>} : vector<8x32xbf16>, vector<32x8xbf16>, vector<8x8xf32> -> vector<8x8xf32>
    %40 = arith.truncf %39 : vector<8x8xf32> to vector<8x8xbf16>
    %c1_28 = arith.constant 1 : index
    %c0_29 = arith.constant 0 : index
    %c0_30 = arith.constant 0 : index
    %41 = vector.load %arg13[%c1_28, %c0_29, %c0_30] : memref<4x8x8xbf16, #tpu.memory_space<vmem>>, vector<1x8x8xbf16>
    %42 = vector.shape_cast %41 : vector<1x8x8xbf16> to vector<8x8xbf16>
    %c1_31 = arith.constant 1 : index
    %c0_32 = arith.constant 0 : index
    %c0_33 = arith.constant 0 : index
    %43 = vector.load %arg14[%c1_31, %c0_32, %c0_33] : memref<4x8x8xbf16, #tpu.memory_space<vmem>>, vector<1x8x8xbf16>
    %44 = vector.shape_cast %43 : vector<1x8x8xbf16> to vector<8x8xbf16>
    %cst_34 = arith.constant dense<0.000000e+00> : vector<8x8xf32>
    %45 = tpu.matmul %40, %42, %cst_34 {dimension_numbers = #tpu.dot_dimension_numbers<[1], [1], [0], [0], [0, 0, 1, 0], [], []>} : vector<8x8xbf16>, vector<8x8xbf16>, vector<8x8xf32> -> vector<8x8xf32>
    %cst_35 = arith.constant dense<0xFF800000> : vector<8xf32>
    %46 = vector.multi_reduction <maximumf>, %45, %cst_35 [1] : vector<8x8xf32> to vector<8xf32>
    %47 = vector.shape_cast %46 : vector<8xf32> to vector<8x1xf32>
    %48 = vector.broadcast %47 : vector<8x1xf32> to vector<8x8xf32>
    %49 = arith.subf %45, %48 : vector<8x8xf32>
    %50 = math.exp %49 : vector<8x8xf32>
    %cst_36 = arith.constant dense<0.000000e+00> : vector<8xf32>
    %51 = vector.multi_reduction <add>, %50, %cst_36 [1] : vector<8x8xf32> to vector<8xf32>
    %52 = vector.shape_cast %51 : vector<8xf32> to vector<8x1xf32>
    %53 = tpu.reciprocal %52 {approx = true} : vector<8x1xf32> -> vector<8x1xf32>
    %54 = vector.broadcast %53 : vector<8x1xf32> to vector<8x8xf32>
    %55 = arith.mulf %50, %54 : vector<8x8xf32>
    %56 = arith.truncf %55 : vector<8x8xf32> to vector<8x8xbf16>
    %c0_37 = arith.constant 0 : index
    %c1_38 = arith.constant 1 : index
    %c0_39 = arith.constant 0 : index
    %c0_40 = arith.constant 0 : index
    %57 = vector.load %arg12[%c0_37, %c1_38, %c0_39, %c0_40] : memref<1x4x8x8xbf16, #tpu.memory_space<vmem>>, vector<1x1x8x8xbf16>
    %58 = vector.shape_cast %57 : vector<1x1x8x8xbf16> to vector<8x8xbf16>
    %59 = vector.shape_cast %56 : vector<8x8xbf16> to vector<1x1x8x8xbf16>
    tpu.vector_store %arg12[%c0_37, %c1_38, %c0_39, %c0_40], %59 {strides = array<i32>} : memref<1x4x8x8xbf16, #tpu.memory_space<vmem>>, vector<1x1x8x8xbf16>,
    %cst_41 = arith.constant dense<0.000000e+00> : vector<8x8xf32>
    %60 = tpu.matmul %56, %44, %cst_41 {dimension_numbers = #tpu.dot_dimension_numbers<[1], [0], [0], [1], [0, 0, 1, 1], [], []>} : vector<8x8xbf16>, vector<8x8xbf16>, vector<8x8xf32> -> vector<8x8xf32>
    %61 = arith.truncf %60 : vector<8x8xf32> to vector<8x8xbf16>
    %c1_42 = arith.constant 1 : index
    %c0_43 = arith.constant 0 : index
    %c0_44 = arith.constant 0 : index
    %62 = vector.load %arg8[%c1_42, %c0_43, %c0_44] : memref<4x8x32xbf16, #tpu.memory_space<vmem>>, vector<1x8x32xbf16>
    %63 = vector.shape_cast %62 : vector<1x8x32xbf16> to vector<8x32xbf16>
    %cst_45 = arith.constant dense<0.000000e+00> : vector<8x32xf32>
    %64 = tpu.matmul %61, %63, %cst_45 {dimension_numbers = #tpu.dot_dimension_numbers<[1], [0], [0], [1], [0, 0, 1, 1], [], []>} : vector<8x8xbf16>, vector<8x32xbf16>, vector<8x32xf32> -> vector<8x32xf32>
    %65 = arith.addf %36, %64 : vector<8x32xf32>
    %c2 = arith.constant 2 : index
    %c0_46 = arith.constant 0 : index
    %c0_47 = arith.constant 0 : index
    %66 = vector.load %arg5[%c2, %c0_46, %c0_47] : memref<4x32x8xbf16, #tpu.memory_space<vmem>>, vector<1x32x8xbf16>
    %67 = vector.shape_cast %66 : vector<1x32x8xbf16> to vector<32x8xbf16>
    %cst_48 = arith.constant dense<0.000000e+00> : vector<8x8xf32>
    %68 = tpu.matmul %7, %67, %cst_48 {dimension_numbers = #tpu.dot_dimension_numbers<[1], [0], [0], [1], [0, 0, 1, 1], [], []>} : vector<8x32xbf16>, vector<32x8xbf16>, vector<8x8xf32> -> vector<8x8xf32>
    %69 = arith.truncf %68 : vector<8x8xf32> to vector<8x8xbf16>
    %c2_49 = arith.constant 2 : index
    %c0_50 = arith.constant 0 : index
    %c0_51 = arith.constant 0 : index
    %70 = vector.load %arg13[%c2_49, %c0_50, %c0_51] : memref<4x8x8xbf16, #tpu.memory_space<vmem>>, vector<1x8x8xbf16>
    %71 = vector.shape_cast %70 : vector<1x8x8xbf16> to vector<8x8xbf16>
    %c2_52 = arith.constant 2 : index
    %c0_53 = arith.constant 0 : index
    %c0_54 = arith.constant 0 : index
    %72 = vector.load %arg14[%c2_52, %c0_53, %c0_54] : memref<4x8x8xbf16, #tpu.memory_space<vmem>>, vector<1x8x8xbf16>
    %73 = vector.shape_cast %72 : vector<1x8x8xbf16> to vector<8x8xbf16>
    %cst_55 = arith.constant dense<0.000000e+00> : vector<8x8xf32>
    %74 = tpu.matmul %69, %71, %cst_55 {dimension_numbers = #tpu.dot_dimension_numbers<[1], [1], [0], [0], [0, 0, 1, 0], [], []>} : vector<8x8xbf16>, vector<8x8xbf16>, vector<8x8xf32> -> vector<8x8xf32>
    %cst_56 = arith.constant dense<0xFF800000> : vector<8xf32>
    %75 = vector.multi_reduction <maximumf>, %74, %cst_56 [1] : vector<8x8xf32> to vector<8xf32>
    %76 = vector.shape_cast %75 : vector<8xf32> to vector<8x1xf32>
    %77 = vector.broadcast %76 : vector<8x1xf32> to vector<8x8xf32>
    %78 = arith.subf %74, %77 : vector<8x8xf32>
    %79 = math.exp %78 : vector<8x8xf32>
    %cst_57 = arith.constant dense<0.000000e+00> : vector<8xf32>
    %80 = vector.multi_reduction <add>, %79, %cst_57 [1] : vector<8x8xf32> to vector<8xf32>
    %81 = vector.shape_cast %80 : vector<8xf32> to vector<8x1xf32>
    %82 = tpu.reciprocal %81 {approx = true} : vector<8x1xf32> -> vector<8x1xf32>
    %83 = vector.broadcast %82 : vector<8x1xf32> to vector<8x8xf32>
    %84 = arith.mulf %79, %83 : vector<8x8xf32>
    %85 = arith.truncf %84 : vector<8x8xf32> to vector<8x8xbf16>
    %c0_58 = arith.constant 0 : index
    %c2_59 = arith.constant 2 : index
    %c0_60 = arith.constant 0 : index
    %c0_61 = arith.constant 0 : index
    %86 = vector.load %arg12[%c0_58, %c2_59, %c0_60, %c0_61] : memref<1x4x8x8xbf16, #tpu.memory_space<vmem>>, vector<1x1x8x8xbf16>
    %87 = vector.shape_cast %86 : vector<1x1x8x8xbf16> to vector<8x8xbf16>
    %88 = vector.shape_cast %85 : vector<8x8xbf16> to vector<1x1x8x8xbf16>
    tpu.vector_store %arg12[%c0_58, %c2_59, %c0_60, %c0_61], %88 {strides = array<i32>} : memref<1x4x8x8xbf16, #tpu.memory_space<vmem>>, vector<1x1x8x8xbf16>,
    %cst_62 = arith.constant dense<0.000000e+00> : vector<8x8xf32>
    %89 = tpu.matmul %85, %73, %cst_62 {dimension_numbers = #tpu.dot_dimension_numbers<[1], [0], [0], [1], [0, 0, 1, 1], [], []>} : vector<8x8xbf16>, vector<8x8xbf16>, vector<8x8xf32> -> vector<8x8xf32>
    %90 = arith.truncf %89 : vector<8x8xf32> to vector<8x8xbf16>
    %c2_63 = arith.constant 2 : index
    %c0_64 = arith.constant 0 : index
    %c0_65 = arith.constant 0 : index
    %91 = vector.load %arg8[%c2_63, %c0_64, %c0_65] : memref<4x8x32xbf16, #tpu.memory_space<vmem>>, vector<1x8x32xbf16>
    %92 = vector.shape_cast %91 : vector<1x8x32xbf16> to vector<8x32xbf16>
    %cst_66 = arith.constant dense<0.000000e+00> : vector<8x32xf32>
    %93 = tpu.matmul %90, %92, %cst_66 {dimension_numbers = #tpu.dot_dimension_numbers<[1], [0], [0], [1], [0, 0, 1, 1], [], []>} : vector<8x8xbf16>, vector<8x32xbf16>, vector<8x32xf32> -> vector<8x32xf32>
    %94 = arith.addf %65, %93 : vector<8x32xf32>
    %c3 = arith.constant 3 : index
    %c0_67 = arith.constant 0 : index
    %c0_68 = arith.constant 0 : index
    %95 = vector.load %arg5[%c3, %c0_67, %c0_68] : memref<4x32x8xbf16, #tpu.memory_space<vmem>>, vector<1x32x8xbf16>
    %96 = vector.shape_cast %95 : vector<1x32x8xbf16> to vector<32x8xbf16>
    %cst_69 = arith.constant dense<0.000000e+00> : vector<8x8xf32>
    %97 = tpu.matmul %7, %96, %cst_69 {dimension_numbers = #tpu.dot_dimension_numbers<[1], [0], [0], [1], [0, 0, 1, 1], [], []>} : vector<8x32xbf16>, vector<32x8xbf16>, vector<8x8xf32> -> vector<8x8xf32>
    %98 = arith.truncf %97 : vector<8x8xf32> to vector<8x8xbf16>
    %c3_70 = arith.constant 3 : index
    %c0_71 = arith.constant 0 : index
    %c0_72 = arith.constant 0 : index
    %99 = vector.load %arg13[%c3_70, %c0_71, %c0_72] : memref<4x8x8xbf16, #tpu.memory_space<vmem>>, vector<1x8x8xbf16>
    %100 = vector.shape_cast %99 : vector<1x8x8xbf16> to vector<8x8xbf16>
    %c3_73 = arith.constant 3 : index
    %c0_74 = arith.constant 0 : index
    %c0_75 = arith.constant 0 : index
    %101 = vector.load %arg14[%c3_73, %c0_74, %c0_75] : memref<4x8x8xbf16, #tpu.memory_space<vmem>>, vector<1x8x8xbf16>
    %102 = vector.shape_cast %101 : vector<1x8x8xbf16> to vector<8x8xbf16>
    %cst_76 = arith.constant dense<0.000000e+00> : vector<8x8xf32>
    %103 = tpu.matmul %98, %100, %cst_76 {dimension_numbers = #tpu.dot_dimension_numbers<[1], [1], [0], [0], [0, 0, 1, 0], [], []>} : vector<8x8xbf16>, vector<8x8xbf16>, vector<8x8xf32> -> vector<8x8xf32>
    %cst_77 = arith.constant dense<0xFF800000> : vector<8xf32>
    %104 = vector.multi_reduction <maximumf>, %103, %cst_77 [1] : vector<8x8xf32> to vector<8xf32>
    %105 = vector.shape_cast %104 : vector<8xf32> to vector<8x1xf32>
    %106 = vector.broadcast %105 : vector<8x1xf32> to vector<8x8xf32>
    %107 = arith.subf %103, %106 : vector<8x8xf32>
    %108 = math.exp %107 : vector<8x8xf32>
    %cst_78 = arith.constant dense<0.000000e+00> : vector<8xf32>
    %109 = vector.multi_reduction <add>, %108, %cst_78 [1] : vector<8x8xf32> to vector<8xf32>
    %110 = vector.shape_cast %109 : vector<8xf32> to vector<8x1xf32>
    %111 = tpu.reciprocal %110 {approx = true} : vector<8x1xf32> -> vector<8x1xf32>
    %112 = vector.broadcast %111 : vector<8x1xf32> to vector<8x8xf32>
    %113 = arith.mulf %108, %112 : vector<8x8xf32>
    %114 = arith.truncf %113 : vector<8x8xf32> to vector<8x8xbf16>
    %c0_79 = arith.constant 0 : index
    %c3_80 = arith.constant 3 : index
    %c0_81 = arith.constant 0 : index
    %c0_82 = arith.constant 0 : index
    %115 = vector.load %arg12[%c0_79, %c3_80, %c0_81, %c0_82] : memref<1x4x8x8xbf16, #tpu.memory_space<vmem>>, vector<1x1x8x8xbf16>
    %116 = vector.shape_cast %115 : vector<1x1x8x8xbf16> to vector<8x8xbf16>
    %117 = vector.shape_cast %114 : vector<8x8xbf16> to vector<1x1x8x8xbf16>
    tpu.vector_store %arg12[%c0_79, %c3_80, %c0_81, %c0_82], %117 {strides = array<i32>} : memref<1x4x8x8xbf16, #tpu.memory_space<vmem>>, vector<1x1x8x8xbf16>,
    %cst_83 = arith.constant dense<0.000000e+00> : vector<8x8xf32>
    %118 = tpu.matmul %114, %102, %cst_83 {dimension_numbers = #tpu.dot_dimension_numbers<[1], [0], [0], [1], [0, 0, 1, 1], [], []>} : vector<8x8xbf16>, vector<8x8xbf16>, vector<8x8xf32> -> vector<8x8xf32>
    %119 = arith.truncf %118 : vector<8x8xf32> to vector<8x8xbf16>
    %c3_84 = arith.constant 3 : index
    %c0_85 = arith.constant 0 : index
    %c0_86 = arith.constant 0 : index
    %120 = vector.load %arg8[%c3_84, %c0_85, %c0_86] : memref<4x8x32xbf16, #tpu.memory_space<vmem>>, vector<1x8x32xbf16>
    %121 = vector.shape_cast %120 : vector<1x8x32xbf16> to vector<8x32xbf16>
    %cst_87 = arith.constant dense<0.000000e+00> : vector<8x32xf32>
    %122 = tpu.matmul %119, %121, %cst_87 {dimension_numbers = #tpu.dot_dimension_numbers<[1], [0], [0], [1], [0, 0, 1, 1], [], []>} : vector<8x8xbf16>, vector<8x32xbf16>, vector<8x32xf32> -> vector<8x32xf32>
    %123 = arith.addf %94, %122 : vector<8x32xf32>
    %cst_88 = arith.constant dense<0.000000e+00> : vector<8xf32>
    %124 = vector.multi_reduction <add>, %123, %cst_88 [1] : vector<8x32xf32> to vector<8xf32>
    %125 = vector.shape_cast %124 : vector<8xf32> to vector<8x1xf32>
    %cst_89 = arith.constant 3.200000e+01 : f32
    %126 = vector.broadcast %cst_89 : f32 to vector<8x1xf32>
    %127 = arith.divf %125, %126 : vector<8x1xf32>
    %128 = vector.broadcast %127 : vector<8x1xf32> to vector<8x32xf32>
    %129 = arith.subf %123, %128 : vector<8x32xf32>
    %130 = arith.mulf %129, %129 : vector<8x32xf32>
    %cst_90 = arith.constant dense<0.000000e+00> : vector<8xf32>
    %131 = vector.multi_reduction <add>, %130, %cst_90 [1] : vector<8x32xf32> to vector<8xf32>
    %132 = vector.shape_cast %131 : vector<8xf32> to vector<8x1xf32>
    %cst_91 = arith.constant 3.200000e+01 : f32
    %133 = vector.broadcast %cst_91 : f32 to vector<8x1xf32>
    %134 = arith.divf %132, %133 : vector<8x1xf32>
    %135 = vector.broadcast %127 : vector<8x1xf32> to vector<8x32xf32>
    %136 = arith.subf %123, %135 : vector<8x32xf32>
    %cst_92 = arith.constant 9.99999974E-6 : f32
    %137 = vector.broadcast %cst_92 : f32 to vector<8x1xf32>
    %138 = arith.addf %134, %137 : vector<8x1xf32>
    %139 = math.rsqrt %138 : vector<8x1xf32>
    %140 = vector.broadcast %139 : vector<8x1xf32> to vector<8x32xf32>
    %141 = arith.mulf %136, %140 : vector<8x32xf32>
    %c0_93 = arith.constant 0 : index
    %c0_94 = arith.constant 0 : index
    %142 = vector.load %arg9[%c0_93, %c0_94] : memref<1x32xf32, #tpu.memory_space<vmem>>, vector<1x32xf32>
    %143 = vector.broadcast %142 : vector<1x32xf32> to vector<8x32xf32>
    %144 = arith.mulf %141, %143 : vector<8x32xf32>
    %c0_95 = arith.constant 0 : index
    %c0_96 = arith.constant 0 : index
    %145 = vector.load %arg10[%c0_95, %c0_96] : memref<1x32xf32, #tpu.memory_space<vmem>>, vector<1x32xf32>
    %146 = vector.broadcast %145 : vector<1x32xf32> to vector<8x32xf32>
    %147 = arith.addf %144, %146 : vector<8x32xf32>
    %c0_97 = arith.constant 0 : index
    %c0_98 = arith.constant 0 : index
    %c0_99 = arith.constant 0 : index
    %148 = vector.load %arg11[%c0_97, %c0_98, %c0_99] : memref<1x8x32xf32, #tpu.memory_space<vmem>>, vector<1x8x32xf32>
    %149 = vector.shape_cast %148 : vector<1x8x32xf32> to vector<8x32xf32>
    %150 = vector.shape_cast %147 : vector<8x32xf32> to vector<1x8x32xf32>
    tpu.vector_store %arg11[%c0_97, %c0_98, %c0_99], %150 {strides = array<i32>} : memref<1x8x32xf32, #tpu.memory_space<vmem>>, vector<1x8x32xf32>,
    return
  }
  func.func @transform_0(%arg0: i32, %arg1: i32) -> (i32, i32, i32) {
    %c0_i32 = arith.constant 0 : i32
    %c0_i32_0 = arith.constant 0 : i32
    return %arg0, %arg1, %c0_i32 : i32, i32, i32
  }
  func.func @transform_1(%arg0: i32, %arg1: i32) -> (i32, i32, i32) {
    %c0_i32 = arith.constant 0 : i32
    %c0_i32_0 = arith.constant 0 : i32
    %c0_i32_1 = arith.constant 0 : i32
    return %arg0, %c0_i32, %c0_i32_0 : i32, i32, i32
  }
  func.func @transform_2(%arg0: i32, %arg1: i32) -> (i32, i32, i32) {
    %c0_i32 = arith.constant 0 : i32
    %c0_i32_0 = arith.constant 0 : i32
    %c0_i32_1 = arith.constant 0 : i32
    return %arg0, %c0_i32, %c0_i32_0 : i32, i32, i32
  }
  func.func @transform_3(%arg0: i32, %arg1: i32) -> (i32, i32, i32) {
    %c0_i32 = arith.constant 0 : i32
    %c0_i32_0 = arith.constant 0 : i32
    %c0_i32_1 = arith.constant 0 : i32
    %c0_i32_2 = arith.constant 0 : i32
    return %c0_i32, %c0_i32_0, %c0_i32_1 : i32, i32, i32
  }
  func.func @transform_4(%arg0: i32, %arg1: i32) -> (i32, i32, i32) {
    %c0_i32 = arith.constant 0 : i32
    %c0_i32_0 = arith.constant 0 : i32
    %c0_i32_1 = arith.constant 0 : i32
    %c0_i32_2 = arith.constant 0 : i32
    return %c0_i32, %c0_i32_0, %c0_i32_1 : i32, i32, i32
  }
  func.func @transform_5(%arg0: i32, %arg1: i32) -> (i32, i32, i32) {
    %c0_i32 = arith.constant 0 : i32
    %c0_i32_0 = arith.constant 0 : i32
    %c0_i32_1 = arith.constant 0 : i32
    %c0_i32_2 = arith.constant 0 : i32
    return %c0_i32, %c0_i32_0, %c0_i32_1 : i32, i32, i32
  }
  func.func @transform_6(%arg0: i32, %arg1: i32) -> (i32, i32, i32) {
    %c0_i32 = arith.constant 0 : i32
    %c0_i32_0 = arith.constant 0 : i32
    %c0_i32_1 = arith.constant 0 : i32
    %c0_i32_2 = arith.constant 0 : i32
    return %c0_i32, %c0_i32_0, %c0_i32_1 : i32, i32, i32
  }
  func.func @transform_7(%arg0: i32, %arg1: i32) -> (i32, i32) {
    %c0_i32 = arith.constant 0 : i32
    %c0_i32_0 = arith.constant 0 : i32
    %c0_i32_1 = arith.constant 0 : i32
    return %c0_i32, %c0_i32_0 : i32, i32
  }
  func.func @transform_8(%arg0: i32, %arg1: i32) -> (i32, i32) {
    %c0_i32 = arith.constant 0 : i32
    %c0_i32_0 = arith.constant 0 : i32
    %c0_i32_1 = arith.constant 0 : i32
    return %c0_i32, %c0_i32_0 : i32, i32
  }
  func.func @transform_9(%arg0: i32, %arg1: i32) -> (i32, i32, i32) {
    %c0_i32 = arith.constant 0 : i32
    %c0_i32_0 = arith.constant 0 : i32
    return %arg0, %arg1, %c0_i32 : i32, i32, i32
  }
  func.func @transform_10(%arg0: i32, %arg1: i32) -> (i32, i32, i32, i32) {
    %c0_i32 = arith.constant 0 : i32
    %c0_i32_0 = arith.constant 0 : i32
    %c0_i32_1 = arith.constant 0 : i32
    return %arg0, %c0_i32, %arg1, %c0_i32_0 : i32, i32, i32, i32
  }
}

module attributes {stable_mosaic.version = 11 : i64} {
  func.func @mha_kernel(%arg0: i32, %arg1: i32, %arg2: memref<1x8x32xf32, #tpu.memory_space<vmem>>, %arg3: memref<1x8x32xbf16, #tpu.memory_space<vmem>>, %arg4: memref<1x8x32xbf16, #tpu.memory_space<vmem>>, %arg5: memref<4x32x8xbf16, #tpu.memory_space<vmem>>, %arg6: memref<4x32x8xbf16, #tpu.memory_space<vmem>>, %arg7: memref<4x32x8xbf16, #tpu.memory_space<vmem>>, %arg8: memref<4x8x32xbf16, #tpu.memory_space<vmem>>, %arg9: memref<1x32xf32, #tpu.memory_space<vmem>>, %arg10: memref<1x32xf32, #tpu.memory_space<vmem>>, %arg11: memref<1x8x32xf32, #tpu.memory_space<vmem>>, %arg12: memref<1x4x8x8xbf16, #tpu.memory_space<vmem>>, %arg13: memref<4x8x8xbf16, #tpu.memory_space<vmem>>, %arg14: memref<4x8x8xbf16, #tpu.memory_space<vmem>>) attributes {dimension_semantics = [#tpu.dimension_semantics<parallel>, #tpu.dimension_semantics<arbitrary>], iteration_bounds = array<i64: 2, 1>, scalar_prefetch = 0 : i64, scratch_operands = 2 : i64, tpu.core_type = #tpu.core_type<tc>, window_params = [{transform_indices = @transform_0, window_bounds = array<i64: 1, 8, 32>}, {transform_indices = @transform_1, window_bounds = array<i64: 1, 8, 32>}, {transform_indices = @transform_2, window_bounds = array<i64: 1, 8, 32>}, {pipeline_mode = #tpu.pipeline_mode<synchronous>, transform_indices = @transform_3, window_bounds = array<i64: 4, 32, 8>}, {pipeline_mode = #tpu.pipeline_mode<synchronous>, transform_indices = @transform_4, window_bounds = array<i64: 4, 32, 8>}, {pipeline_mode = #tpu.pipeline_mode<synchronous>, transform_indices = @transform_5, window_bounds = array<i64: 4, 32, 8>}, {pipeline_mode = #tpu.pipeline_mode<synchronous>, transform_indices = @transform_6, window_bounds = array<i64: 4, 8, 32>}, {pipeline_mode = #tpu.pipeline_mode<synchronous>, transform_indices = @transform_7, window_bounds = array<i64: 1, 32>}, {pipeline_mode = #tpu.pipeline_mode<synchronous>, transform_indices = @transform_8, window_bounds = array<i64: 1, 32>}, {transform_indices = @transform_9, window_bounds = array<i64: 1, 8, 32>}, {transform_indices = @transform_10, window_bounds = array<i64: 1, 4, 8, 8>}]} {
    %c0_i32 = arith.constant 0 : i32
    %0 = arith.cmpi eq, %arg1, %c0_i32 : i32
    %1 = arith.extui %0 : i1 to i32
    %c0_i32_0 = arith.constant 0 : i32
    %2 = arith.cmpi ne, %1, %c0_i32_0 : i32
    scf.if %2 {
      %c0_100 = arith.constant 0 : index
      %c0_101 = arith.constant 0 : index
      %c0_102 = arith.constant 0 : index
      %151 = vector.load %arg3[%c0_100, %c0_101, %c0_102] : memref<1x8x32xbf16, #tpu.memory_space<vmem>>, vector<1x8x32xbf16>
      %152 = vector.shape_cast %151 : vector<1x8x32xbf16> to vector<8x32xbf16>
      %c0_103 = arith.constant 0 : index
      %c0_104 = arith.constant 0 : index
      %c0_105 = arith.constant 0 : index
      %153 = vector.load %arg4[%c0_103, %c0_104, %c0_105] : memref<1x8x32xbf16, #tpu.memory_space<vmem>>, vector<1x8x32xbf16>
      %154 = vector.shape_cast %153 : vector<1x8x32xbf16> to vector<8x32xbf16>
      %c0_106 = arith.constant 0 : index
      %c0_107 = arith.constant 0 : index
      %c0_108 = arith.constant 0 : index
      %155 = vector.load %arg6[%c0_106, %c0_107, %c0_108] : memref<4x32x8xbf16, #tpu.memory_space<vmem>>, vector<1x32x8xbf16>
      %156 = vector.shape_cast %155 : vector<1x32x8xbf16> to vector<32x8xbf16>
      %cst_109 = arith.constant dense<0.000000e+00> : vector<8x8xf32>
      %157 = tpu.matmul %152, %156, %cst_109 {dimension_numbers = #tpu.dot_dimension_numbers<[1], [0], [0], [1], [0, 0, 1, 1], [], []>} : vector<8x32xbf16>, vector<32x8xbf16>, vector<8x8xf32> -> vector<8x8xf32>
      %158 = arith.truncf %157 : vector<8x8xf32> to vector<8x8xbf16>
      %c0_110 = arith.constant 0 : index
      %c0_111 = arith.constant 0 : index
      %c0_112 = arith.constant 0 : index
      %159 = vector.load %arg13[%c0_110, %c0_111, %c0_112] : memref<4x8x8xbf16, #tpu.memory_space<vmem>>, vector<1x8x8xbf16>
      %160 = vector.shape_cast %159 : vector<1x8x8xbf16> to vector<8x8xbf16>
      %161 = vector.shape_cast %158 : vector<8x8xbf16> to vector<1x8x8xbf16>
      tpu.vector_store %arg13[%c0_110, %c0_111, %c0_112], %161 {strides = array<i32>} : memref<4x8x8xbf16, #tpu.memory_space<vmem>>, vector<1x8x8xbf16>,
      %c0_113 = arith.constant 0 : index
      %c0_114 = arith.constant 0 : index
      %c0_115 = arith.constant 0 : index
      %162 = vector.load %arg7[%c0_113, %c0_114, %c0_115] : memref<4x32x8xbf16, #tpu.memory_space<vmem>>, vector<1x32x8xbf16>
      %163 = vector.shape_cast %162 : vector<1x32x8xbf16> to vector<32x8xbf16>
      %cst_116 = arith.constant dense<0.000000e+00> : vector<8x8xf32>
      %164 = tpu.matmul %154, %163, %cst_116 {dimension_numbers = #tpu.dot_dimension_numbers<[1], [0], [0], [1], [0, 0, 1, 1], [], []>} : vector<8x32xbf16>, vector<32x8xbf16>, vector<8x8xf32> -> vector<8x8xf32>
      %165 = arith.truncf %164 : vector<8x8xf32> to vector<8x8xbf16>
      %c0_117 = arith.constant 0 : index
      %c0_118 = arith.constant 0 : index
      %c0_119 = arith.constant 0 : index
      %166 = vector.load %arg14[%c0_117, %c0_118, %c0_119] : memref<4x8x8xbf16, #tpu.memory_space<vmem>>, vector<1x8x8xbf16>
      %167 = vector.shape_cast %166 : vector<1x8x8xbf16> to vector<8x8xbf16>
      %168 = vector.shape_cast %165 : vector<8x8xbf16> to vector<1x8x8xbf16>
      tpu.vector_store %arg14[%c0_117, %c0_118, %c0_119], %168 {strides = array<i32>} : memref<4x8x8xbf16, #tpu.memory_space<vmem>>, vector<1x8x8xbf16>,
      %c1_120 = arith.constant 1 : index
      %c0_121 = arith.constant 0 : index
      %c0_122 = arith.constant 0 : index
      %169 = vector.load %arg6[%c1_120, %c0_121, %c0_122] : memref<4x32x8xbf16, #tpu.memory_space<vmem>>, vector<1x32x8xbf16>
      %170 = vector.shape_cast %169 : vector<1x32x8xbf16> to vector<32x8xbf16>
      %cst_123 = arith.constant dense<0.000000e+00> : vector<8x8xf32>
      %171 = tpu.matmul %152, %170, %cst_123 {dimension_numbers = #tpu.dot_dimension_numbers<[1], [0], [0], [1], [0, 0, 1, 1], [], []>} : vector<8x32xbf16>, vector<32x8xbf16>, vector<8x8xf32> -> vector<8x8xf32>
      %172 = arith.truncf %171 : vector<8x8xf32> to vector<8x8xbf16>
      %c1_124 = arith.constant 1 : index
      %c0_125 = arith.constant 0 : index
      %c0_126 = arith.constant 0 : index
      %173 = vector.load %arg13[%c1_124, %c0_125, %c0_126] : memref<4x8x8xbf16, #tpu.memory_space<vmem>>, vector<1x8x8xbf16>
      %174 = vector.shape_cast %173 : vector<1x8x8xbf16> to vector<8x8xbf16>
      %175 = vector.shape_cast %172 : vector<8x8xbf16> to vector<1x8x8xbf16>
      tpu.vector_store %arg13[%c1_124, %c0_125, %c0_126], %175 {strides = array<i32>} : memref<4x8x8xbf16, #tpu.memory_space<vmem>>, vector<1x8x8xbf16>,
      %c1_127 = arith.constant 1 : index
      %c0_128 = arith.constant 0 : index
      %c0_129 = arith.constant 0 : index
      %176 = vector.load %arg7[%c1_127, %c0_128, %c0_129] : memref<4x32x8xbf16, #tpu.memory_space<vmem>>, vector<1x32x8xbf16>
      %177 = vector.shape_cast %176 : vector<1x32x8xbf16> to vector<32x8xbf16>
      %cst_130 = arith.constant dense<0.000000e+00> : vector<8x8xf32>
      %178 = tpu.matmul %154, %177, %cst_130 {dimension_numbers = #tpu.dot_dimension_numbers<[1], [0], [0], [1], [0, 0, 1, 1], [], []>} : vector<8x32xbf16>, vector<32x8xbf16>, vector<8x8xf32> -> vector<8x8xf32>
      %179 = arith.truncf %178 : vector<8x8xf32> to vector<8x8xbf16>
      %c1_131 = arith.constant 1 : index
      %c0_132 = arith.constant 0 : index
      %c0_133 = arith.constant 0 : index
      %180 = vector.load %arg14[%c1_131, %c0_132, %c0_133] : memref<4x8x8xbf16, #tpu.memory_space<vmem>>, vector<1x8x8xbf16>
      %181 = vector.shape_cast %180 : vector<1x8x8xbf16> to vector<8x8xbf16>
      %182 = vector.shape_cast %179 : vector<8x8xbf16> to vector<1x8x8xbf16>
      tpu.vector_store %arg14[%c1_131, %c0_132, %c0_133], %182 {strides = array<i32>} : memref<4x8x8xbf16, #tpu.memory_space<vmem>>, vector<1x8x8xbf16>,
      %c2_134 = arith.constant 2 : index
      %c0_135 = arith.constant 0 : index
      %c0_136 = arith.constant 0 : index
      %183 = vector.load %arg6[%c2_134, %c0_135, %c0_136] : memref<4x32x8xbf16, #tpu.memory_space<vmem>>, vector<1x32x8xbf16>
      %184 = vector.shape_cast %183 : vector<1x32x8xbf16> to vector<32x8xbf16>
      %cst_137 = arith.constant dense<0.000000e+00> : vector<8x8xf32>
      %185 = tpu.matmul %152, %184, %cst_137 {dimension_numbers = #tpu.dot_dimension_numbers<[1], [0], [0], [1], [0, 0, 1, 1], [], []>} : vector<8x32xbf16>, vector<32x8xbf16>, vector<8x8xf32> -> vector<8x8xf32>
      %186 = arith.truncf %185 : vector<8x8xf32> to vector<8x8xbf16>
      %c2_138 = arith.constant 2 : index
      %c0_139 = arith.constant 0 : index
      %c0_140 = arith.constant 0 : index
      %187 = vector.load %arg13[%c2_138, %c0_139, %c0_140] : memref<4x8x8xbf16, #tpu.memory_space<vmem>>, vector<1x8x8xbf16>
      %188 = vector.shape_cast %187 : vector<1x8x8xbf16> to vector<8x8xbf16>
      %189 = vector.shape_cast %186 : vector<8x8xbf16> to vector<1x8x8xbf16>
      tpu.vector_store %arg13[%c2_138, %c0_139, %c0_140], %189 {strides = array<i32>} : memref<4x8x8xbf16, #tpu.memory_space<vmem>>, vector<1x8x8xbf16>,
      %c2_141 = arith.constant 2 : index
      %c0_142 = arith.constant 0 : index
      %c0_143 = arith.constant 0 : index
      %190 = vector.load %arg7[%c2_141, %c0_142, %c0_143] : memref<4x32x8xbf16, #tpu.memory_space<vmem>>, vector<1x32x8xbf16>
      %191 = vector.shape_cast %190 : vector<1x32x8xbf16> to vector<32x8xbf16>
      %cst_144 = arith.constant dense<0.000000e+00> : vector<8x8xf32>
      %192 = tpu.matmul %154, %191, %cst_144 {dimension_numbers = #tpu.dot_dimension_numbers<[1], [0], [0], [1], [0, 0, 1, 1], [], []>} : vector<8x32xbf16>, vector<32x8xbf16>, vector<8x8xf32> -> vector<8x8xf32>
      %193 = arith.truncf %192 : vector<8x8xf32> to vector<8x8xbf16>
      %c2_145 = arith.constant 2 : index
      %c0_146 = arith.constant 0 : index
      %c0_147 = arith.constant 0 : index
      %194 = vector.load %arg14[%c2_145, %c0_146, %c0_147] : memref<4x8x8xbf16, #tpu.memory_space<vmem>>, vector<1x8x8xbf16>
      %195 = vector.shape_cast %194 : vector<1x8x8xbf16> to vector<8x8xbf16>
      %196 = vector.shape_cast %193 : vector<8x8xbf16> to vector<1x8x8xbf16>
      tpu.vector_store %arg14[%c2_145, %c0_146, %c0_147], %196 {strides = array<i32>} : memref<4x8x8xbf16, #tpu.memory_space<vmem>>, vector<1x8x8xbf16>,
      %c3_148 = arith.constant 3 : index
      %c0_149 = arith.constant 0 : index
      %c0_150 = arith.constant 0 : index
      %197 = vector.load %arg6[%c3_148, %c0_149, %c0_150] : memref<4x32x8xbf16, #tpu.memory_space<vmem>>, vector<1x32x8xbf16>
      %198 = vector.shape_cast %197 : vector<1x32x8xbf16> to vector<32x8xbf16>
      %cst_151 = arith.constant dense<0.000000e+00> : vector<8x8xf32>
      %199 = tpu.matmul %152, %198, %cst_151 {dimension_numbers = #tpu.dot_dimension_numbers<[1], [0], [0], [1], [0, 0, 1, 1], [], []>} : vector<8x32xbf16>, vector<32x8xbf16>, vector<8x8xf32> -> vector<8x8xf32>
      %200 = arith.truncf %199 : vector<8x8xf32> to vector<8x8xbf16>
      %c3_152 = arith.constant 3 : index
      %c0_153 = arith.constant 0 : index
      %c0_154 = arith.constant 0 : index
      %201 = vector.load %arg13[%c3_152, %c0_153, %c0_154] : memref<4x8x8xbf16, #tpu.memory_space<vmem>>, vector<1x8x8xbf16>
      %202 = vector.shape_cast %201 : vector<1x8x8xbf16> to vector<8x8xbf16>
      %203 = vector.shape_cast %200 : vector<8x8xbf16> to vector<1x8x8xbf16>
      tpu.vector_store %arg13[%c3_152, %c0_153, %c0_154], %203 {strides = array<i32>} : memref<4x8x8xbf16, #tpu.memory_space<vmem>>, vector<1x8x8xbf16>,
      %c3_155 = arith.constant 3 : index
      %c0_156 = arith.constant 0 : index
      %c0_157 = arith.constant 0 : index
      %204 = vector.load %arg7[%c3_155, %c0_156, %c0_157] : memref<4x32x8xbf16, #tpu.memory_space<vmem>>, vector<1x32x8xbf16>
      %205 = vector.shape_cast %204 : vector<1x32x8xbf16> to vector<32x8xbf16>
      %cst_158 = arith.constant dense<0.000000e+00> : vector<8x8xf32>
      %206 = tpu.matmul %154, %205, %cst_158 {dimension_numbers = #tpu.dot_dimension_numbers<[1], [0], [0], [1], [0, 0, 1, 1], [], []>} : vector<8x32xbf16>, vector<32x8xbf16>, vector<8x8xf32> -> vector<8x8xf32>
      %207 = arith.truncf %206 : vector<8x8xf32> to vector<8x8xbf16>
      %c3_159 = arith.constant 3 : index
      %c0_160 = arith.constant 0 : index
      %c0_161 = arith.constant 0 : index
      %208 = vector.load %arg14[%c3_159, %c0_160, %c0_161] : memref<4x8x8xbf16, #tpu.memory_space<vmem>>, vector<1x8x8xbf16>
      %209 = vector.shape_cast %208 : vector<1x8x8xbf16> to vector<8x8xbf16>
      %210 = vector.shape_cast %207 : vector<8x8xbf16> to vector<1x8x8xbf16>
      tpu.vector_store %arg14[%c3_159, %c0_160, %c0_161], %210 {strides = array<i32>} : memref<4x8x8xbf16, #tpu.memory_space<vmem>>, vector<1x8x8xbf16>,
    } else {
    }
    %c0 = arith.constant 0 : index
    %c0_1 = arith.constant 0 : index
    %c0_2 = arith.constant 0 : index
    %3 = vector.load %arg2[%c0, %c0_1, %c0_2] : memref<1x8x32xf32, #tpu.memory_space<vmem>>, vector<1x8x32xf32>
    %4 = vector.shape_cast %3 : vector<1x8x32xf32> to vector<8x32xf32>
    %cst = arith.constant 0.353553385 : f32
    %5 = vector.broadcast %cst : f32 to vector<8x32xf32>
    %6 = arith.mulf %4, %5 : vector<8x32xf32>
    %7 = arith.truncf %6 : vector<8x32xf32> to vector<8x32xbf16>
    %c0_3 = arith.constant 0 : index
    %c0_4 = arith.constant 0 : index
    %c0_5 = arith.constant 0 : index
    %8 = vector.load %arg5[%c0_3, %c0_4, %c0_5] : memref<4x32x8xbf16, #tpu.memory_space<vmem>>, vector<1x32x8xbf16>
    %9 = vector.shape_cast %8 : vector<1x32x8xbf16> to vector<32x8xbf16>
    %cst_6 = arith.constant dense<0.000000e+00> : vector<8x8xf32>
    %10 = tpu.matmul %7, %9, %cst_6 {dimension_numbers = #tpu.dot_dimension_numbers<[1], [0], [0], [1], [0, 0, 1, 1], [], []>} : vector<8x32xbf16>, vector<32x8xbf16>, vector<8x8xf32> -> vector<8x8xf32>
    %11 = arith.truncf %10 : vector<8x8xf32> to vector<8x8xbf16>
    %c0_7 = arith.constant 0 : index
    %c0_8 = arith.constant 0 : index
    %c0_9 = arith.constant 0 : index
    %12 = vector.load %arg13[%c0_7, %c0_8, %c0_9] : memref<4x8x8xbf16, #tpu.memory_space<vmem>>, vector<1x8x8xbf16>
    %13 = vector.shape_cast %12 : vector<1x8x8xbf16> to vector<8x8xbf16>
    %c0_10 = arith.constant 0 : index
    %c0_11 = arith.constant 0 : index
    %c0_12 = arith.constant 0 : index
    %14 = vector.load %arg14[%c0_10, %c0_11, %c0_12] : memref<4x8x8xbf16, #tpu.memory_space<vmem>>, vector<1x8x8xbf16>
    %15 = vector.shape_cast %14 : vector<1x8x8xbf16> to vector<8x8xbf16>
    %cst_13 = arith.constant dense<0.000000e+00> : vector<8x8xf32>
    %16 = tpu.matmul %11, %13, %cst_13 {dimension_numbers = #tpu.dot_dimension_numbers<[1], [1], [0], [0], [0, 0, 1, 0], [], []>} : vector<8x8xbf16>, vector<8x8xbf16>, vector<8x8xf32> -> vector<8x8xf32>
    %cst_14 = arith.constant dense<0xFF800000> : vector<8xf32>
    %17 = vector.multi_reduction <maximumf>, %16, %cst_14 [1] : vector<8x8xf32> to vector<8xf32>
    %18 = vector.shape_cast %17 : vector<8xf32> to vector<8x1xf32>
    %19 = vector.broadcast %18 : vector<8x1xf32> to vector<8x8xf32>
    %20 = arith.subf %16, %19 : vector<8x8xf32>
    %21 = math.exp %20 : vector<8x8xf32>
    %cst_15 = arith.constant dense<0.000000e+00> : vector<8xf32>
    %22 = vector.multi_reduction <add>, %21, %cst_15 [1] : vector<8x8xf32> to vector<8xf32>
    %23 = vector.shape_cast %22 : vector<8xf32> to vector<8x1xf32>
    %24 = tpu.reciprocal %23 {approx = true} : vector<8x1xf32> -> vector<8x1xf32>
    %25 = vector.broadcast %24 : vector<8x1xf32> to vector<8x8xf32>
    %26 = arith.mulf %21, %25 : vector<8x8xf32>
    %27 = arith.truncf %26 : vector<8x8xf32> to vector<8x8xbf16>
    %c0_16 = arith.constant 0 : index
    %c0_17 = arith.constant 0 : index
    %c0_18 = arith.constant 0 : index
    %c0_19 = arith.constant 0 : index
    %28 = vector.load %arg12[%c0_16, %c0_17, %c0_18, %c0_19] : memref<1x4x8x8xbf16, #tpu.memory_space<vmem>>, vector<1x1x8x8xbf16>
    %29 = vector.shape_cast %28 : vector<1x1x8x8xbf16> to vector<8x8xbf16>
    %30 = vector.shape_cast %27 : vector<8x8xbf16> to vector<1x1x8x8xbf16>
    tpu.vector_store %arg12[%c0_16, %c0_17, %c0_18, %c0_19], %30 {strides = array<i32>} : memref<1x4x8x8xbf16, #tpu.memory_space<vmem>>, vector<1x1x8x8xbf16>,
    %cst_20 = arith.constant dense<0.000000e+00> : vector<8x8xf32>
    %31 = tpu.matmul %27, %15, %cst_20 {dimension_numbers = #tpu.dot_dimension_numbers<[1], [0], [0], [1], [0, 0, 1, 1], [], []>} : vector<8x8xbf16>, vector<8x8xbf16>, vector<8x8xf32> -> vector<8x8xf32>
    %32 = arith.truncf %31 : vector<8x8xf32> to vector<8x8xbf16>
    %c0_21 = arith.constant 0 : index
    %c0_22 = arith.constant 0 : index
    %c0_23 = arith.constant 0 : index
    %33 = vector.load %arg8[%c0_21, %c0_22, %c0_23] : memref<4x8x32xbf16, #tpu.memory_space<vmem>>, vector<1x8x32xbf16>
    %34 = vector.shape_cast %33 : vector<1x8x32xbf16> to vector<8x32xbf16>
    %cst_24 = arith.constant dense<0.000000e+00> : vector<8x32xf32>
    %35 = tpu.matmul %32, %34, %cst_24 {dimension_numbers = #tpu.dot_dimension_numbers<[1], [0], [0], [1], [0, 0, 1, 1], [], []>} : vector<8x8xbf16>, vector<8x32xbf16>, vector<8x32xf32> -> vector<8x32xf32>
    %36 = arith.addf %4, %35 : vector<8x32xf32>
    %c1 = arith.constant 1 : index
    %c0_25 = arith.constant 0 : index
    %c0_26 = arith.constant 0 : index
    %37 = vector.load %arg5[%c1, %c0_25, %c0_26] : memref<4x32x8xbf16, #tpu.memory_space<vmem>>, vector<1x32x8xbf16>
    %38 = vector.shape_cast %37 : vector<1x32x8xbf16> to vector<32x8xbf16>
    %cst_27 = arith.constant dense<0.000000e+00> : vector<8x8xf32>
    %39 = tpu.matmul %7, %38, %cst_27 {dimension_numbers = #tpu.dot_dimension_numbers<[1], [0], [0], [1], [0, 0, 1, 1], [], []>} : vector<8x32xbf16>, vector<32x8xbf16>, vector<8x8xf32> -> vector<8x8xf32>
    %40 = arith.truncf %39 : vector<8x8xf32> to vector<8x8xbf16>
    %c1_28 = arith.constant 1 : index
    %c0_29 = arith.constant 0 : index
    %c0_30 = arith.constant 0 : index
    %41 = vector.load %arg13[%c1_28, %c0_29, %c0_30] : memref<4x8x8xbf16, #tpu.memory_space<vmem>>, vector<1x8x8xbf16>
    %42 = vector.shape_cast %41 : vector<1x8x8xbf16> to vector<8x8xbf16>
    %c1_31 = arith.constant 1 : index
    %c0_32 = arith.constant 0 : index
    %c0_33 = arith.constant 0 : index
    %43 = vector.load %arg14[%c1_31, %c0_32, %c0_33] : memref<4x8x8xbf16, #tpu.memory_space<vmem>>, vector<1x8x8xbf16>
    %44 = vector.shape_cast %43 : vector<1x8x8xbf16> to vector<8x8xbf16>
    %cst_34 = arith.constant dense<0.000000e+00> : vector<8x8xf32>
    %45 = tpu.matmul %40, %42, %cst_34 {dimension_numbers = #tpu.dot_dimension_numbers<[1], [1], [0], [0], [0, 0, 1, 0], [], []>} : vector<8x8xbf16>, vector<8x8xbf16>, vector<8x8xf32> -> vector<8x8xf32>
    %cst_35 = arith.constant dense<0xFF800000> : vector<8xf32>
    %46 = vector.multi_reduction <maximumf>, %45, %cst_35 [1] : vector<8x8xf32> to vector<8xf32>
    %47 = vector.shape_cast %46 : vector<8xf32> to vector<8x1xf32>
    %48 = vector.broadcast %47 : vector<8x1xf32> to vector<8x8xf32>
    %49 = arith.subf %45, %48 : vector<8x8xf32>
    %50 = math.exp %49 : vector<8x8xf32>
    %cst_36 = arith.constant dense<0.000000e+00> : vector<8xf32>
    %51 = vector.multi_reduction <add>, %50, %cst_36 [1] : vector<8x8xf32> to vector<8xf32>
    %52 = vector.shape_cast %51 : vector<8xf32> to vector<8x1xf32>
    %53 = tpu.reciprocal %52 {approx = true} : vector<8x1xf32> -> vector<8x1xf32>
    %54 = vector.broadcast %53 : vector<8x1xf32> to vector<8x8xf32>
    %55 = arith.mulf %50, %54 : vector<8x8xf32>
    %56 = arith.truncf %55 : vector<8x8xf32> to vector<8x8xbf16>
    %c0_37 = arith.constant 0 : index
    %c1_38 = arith.constant 1 : index
    %c0_39 = arith.constant 0 : index
    %c0_40 = arith.constant 0 : index
    %57 = vector.load %arg12[%c0_37, %c1_38, %c0_39, %c0_40] : memref<1x4x8x8xbf16, #tpu.memory_space<vmem>>, vector<1x1x8x8xbf16>
    %58 = vector.shape_cast %57 : vector<1x1x8x8xbf16> to vector<8x8xbf16>
    %59 = vector.shape_cast %56 : vector<8x8xbf16> to vector<1x1x8x8xbf16>
    tpu.vector_store %arg12[%c0_37, %c1_38, %c0_39, %c0_40], %59 {strides = array<i32>} : memref<1x4x8x8xbf16, #tpu.memory_space<vmem>>, vector<1x1x8x8xbf16>,
    %cst_41 = arith.constant dense<0.000000e+00> : vector<8x8xf32>
    %60 = tpu.matmul %56, %44, %cst_41 {dimension_numbers = #tpu.dot_dimension_numbers<[1], [0], [0], [1], [0, 0, 1, 1], [], []>} : vector<8x8xbf16>, vector<8x8xbf16>, vector<8x8xf32> -> vector<8x8xf32>
    %61 = arith.truncf %60 : vector<8x8xf32> to vector<8x8xbf16>
    %c1_42 = arith.constant 1 : index
    %c0_43 = arith.constant 0 : index
    %c0_44 = arith.constant 0 : index
    %62 = vector.load %arg8[%c1_42, %c0_43, %c0_44] : memref<4x8x32xbf16, #tpu.memory_space<vmem>>, vector<1x8x32xbf16>
    %63 = vector.shape_cast %62 : vector<1x8x32xbf16> to vector<8x32xbf16>
    %cst_45 = arith.constant dense<0.000000e+00> : vector<8x32xf32>
    %64 = tpu.matmul %61, %63, %cst_45 {dimension_numbers = #tpu.dot_dimension_numbers<[1], [0], [0], [1], [0, 0, 1, 1], [], []>} : vector<8x8xbf16>, vector<8x32xbf16>, vector<8x32xf32> -> vector<8x32xf32>
    %65 = arith.addf %36, %64 : vector<8x32xf32>
    %c2 = arith.constant 2 : index
    %c0_46 = arith.constant 0 : index
    %c0_47 = arith.constant 0 : index
    %66 = vector.load %arg5[%c2, %c0_46, %c0_47] : memref<4x32x8xbf16, #tpu.memory_space<vmem>>, vector<1x32x8xbf16>
    %67 = vector.shape_cast %66 : vector<1x32x8xbf16> to vector<32x8xbf16>
    %cst_48 = arith.constant dense<0.000000e+00> : vector<8x8xf32>
    %68 = tpu.matmul %7, %67, %cst_48 {dimension_numbers = #tpu.dot_dimension_numbers<[1], [0], [0], [1], [0, 0, 1, 1], [], []>} : vector<8x32xbf16>, vector<32x8xbf16>, vector<8x8xf32> -> vector<8x8xf32>
    %69 = arith.truncf %68 : vector<8x8xf32> to vector<8x8xbf16>
    %c2_49 = arith.constant 2 : index
    %c0_50 = arith.constant 0 : index
    %c0_51 = arith.constant 0 : index
    %70 = vector.load %arg13[%c2_49, %c0_50, %c0_51] : memref<4x8x8xbf16, #tpu.memory_space<vmem>>, vector<1x8x8xbf16>
    %71 = vector.shape_cast %70 : vector<1x8x8xbf16> to vector<8x8xbf16>
    %c2_52 = arith.constant 2 : index
    %c0_53 = arith.constant 0 : index
    %c0_54 = arith.constant 0 : index
    %72 = vector.load %arg14[%c2_52, %c0_53, %c0_54] : memref<4x8x8xbf16, #tpu.memory_space<vmem>>, vector<1x8x8xbf16>
    %73 = vector.shape_cast %72 : vector<1x8x8xbf16> to vector<8x8xbf16>
    %cst_55 = arith.constant dense<0.000000e+00> : vector<8x8xf32>
    %74 = tpu.matmul %69, %71, %cst_55 {dimension_numbers = #tpu.dot_dimension_numbers<[1], [1], [0], [0], [0, 0, 1, 0], [], []>} : vector<8x8xbf16>, vector<8x8xbf16>, vector<8x8xf32> -> vector<8x8xf32>
    %cst_56 = arith.constant dense<0xFF800000> : vector<8xf32>
    %75 = vector.multi_reduction <maximumf>, %74, %cst_56 [1] : vector<8x8xf32> to vector<8xf32>
    %76 = vector.shape_cast %75 : vector<8xf32> to vector<8x1xf32>
    %77 = vector.broadcast %76 : vector<8x1xf32> to vector<8x8xf32>
    %78 = arith.subf %74, %77 : vector<8x8xf32>
    %79 = math.exp %78 : vector<8x8xf32>
    %cst_57 = arith.constant dense<0.000000e+00> : vector<8xf32>
    %80 = vector.multi_reduction <add>, %79, %cst_57 [1] : vector<8x8xf32> to vector<8xf32>
    %81 = vector.shape_cast %80 : vector<8xf32> to vector<8x1xf32>
    %82 = tpu.reciprocal %81 {approx = true} : vector<8x1xf32> -> vector<8x1xf32>
    %83 = vector.broadcast %82 : vector<8x1xf32> to vector<8x8xf32>
    %84 = arith.mulf %79, %83 : vector<8x8xf32>
    %85 = arith.truncf %84 : vector<8x8xf32> to vector<8x8xbf16>
    %c0_58 = arith.constant 0 : index
    %c2_59 = arith.constant 2 : index
    %c0_60 = arith.constant 0 : index
    %c0_61 = arith.constant 0 : index
    %86 = vector.load %arg12[%c0_58, %c2_59, %c0_60, %c0_61] : memref<1x4x8x8xbf16, #tpu.memory_space<vmem>>, vector<1x1x8x8xbf16>
    %87 = vector.shape_cast %86 : vector<1x1x8x8xbf16> to vector<8x8xbf16>
    %88 = vector.shape_cast %85 : vector<8x8xbf16> to vector<1x1x8x8xbf16>
    tpu.vector_store %arg12[%c0_58, %c2_59, %c0_60, %c0_61], %88 {strides = array<i32>} : memref<1x4x8x8xbf16, #tpu.memory_space<vmem>>, vector<1x1x8x8xbf16>,
    %cst_62 = arith.constant dense<0.000000e+00> : vector<8x8xf32>
    %89 = tpu.matmul %85, %73, %cst_62 {dimension_numbers = #tpu.dot_dimension_numbers<[1], [0], [0], [1], [0, 0, 1, 1], [], []>} : vector<8x8xbf16>, vector<8x8xbf16>, vector<8x8xf32> -> vector<8x8xf32>
    %90 = arith.truncf %89 : vector<8x8xf32> to vector<8x8xbf16>
    %c2_63 = arith.constant 2 : index
    %c0_64 = arith.constant 0 : index
    %c0_65 = arith.constant 0 : index
    %91 = vector.load %arg8[%c2_63, %c0_64, %c0_65] : memref<4x8x32xbf16, #tpu.memory_space<vmem>>, vector<1x8x32xbf16>
    %92 = vector.shape_cast %91 : vector<1x8x32xbf16> to vector<8x32xbf16>
    %cst_66 = arith.constant dense<0.000000e+00> : vector<8x32xf32>
    %93 = tpu.matmul %90, %92, %cst_66 {dimension_numbers = #tpu.dot_dimension_numbers<[1], [0], [0], [1], [0, 0, 1, 1], [], []>} : vector<8x8xbf16>, vector<8x32xbf16>, vector<8x32xf32> -> vector<8x32xf32>
    %94 = arith.addf %65, %93 : vector<8x32xf32>
    %c3 = arith.constant 3 : index
    %c0_67 = arith.constant 0 : index
    %c0_68 = arith.constant 0 : index
    %95 = vector.load %arg5[%c3, %c0_67, %c0_68] : memref<4x32x8xbf16, #tpu.memory_space<vmem>>, vector<1x32x8xbf16>
    %96 = vector.shape_cast %95 : vector<1x32x8xbf16> to vector<32x8xbf16>
    %cst_69 = arith.constant dense<0.000000e+00> : vector<8x8xf32>
    %97 = tpu.matmul %7, %96, %cst_69 {dimension_numbers = #tpu.dot_dimension_numbers<[1], [0], [0], [1], [0, 0, 1, 1], [], []>} : vector<8x32xbf16>, vector<32x8xbf16>, vector<8x8xf32> -> vector<8x8xf32>
    %98 = arith.truncf %97 : vector<8x8xf32> to vector<8x8xbf16>
    %c3_70 = arith.constant 3 : index
    %c0_71 = arith.constant 0 : index
    %c0_72 = arith.constant 0 : index
    %99 = vector.load %arg13[%c3_70, %c0_71, %c0_72] : memref<4x8x8xbf16, #tpu.memory_space<vmem>>, vector<1x8x8xbf16>
    %100 = vector.shape_cast %99 : vector<1x8x8xbf16> to vector<8x8xbf16>
    %c3_73 = arith.constant 3 : index
    %c0_74 = arith.constant 0 : index
    %c0_75 = arith.constant 0 : index
    %101 = vector.load %arg14[%c3_73, %c0_74, %c0_75] : memref<4x8x8xbf16, #tpu.memory_space<vmem>>, vector<1x8x8xbf16>
    %102 = vector.shape_cast %101 : vector<1x8x8xbf16> to vector<8x8xbf16>
    %cst_76 = arith.constant dense<0.000000e+00> : vector<8x8xf32>
    %103 = tpu.matmul %98, %100, %cst_76 {dimension_numbers = #tpu.dot_dimension_numbers<[1], [1], [0], [0], [0, 0, 1, 0], [], []>} : vector<8x8xbf16>, vector<8x8xbf16>, vector<8x8xf32> -> vector<8x8xf32>
    %cst_77 = arith.constant dense<0xFF800000> : vector<8xf32>
    %104 = vector.multi_reduction <maximumf>, %103, %cst_77 [1] : vector<8x8xf32> to vector<8xf32>
    %105 = vector.shape_cast %104 : vector<8xf32> to vector<8x1xf32>
    %106 = vector.broadcast %105 : vector<8x1xf32> to vector<8x8xf32>
    %107 = arith.subf %103, %106 : vector<8x8xf32>
    %108 = math.exp %107 : vector<8x8xf32>
    %cst_78 = arith.constant dense<0.000000e+00> : vector<8xf32>
    %109 = vector.multi_reduction <add>, %108, %cst_78 [1] : vector<8x8xf32> to vector<8xf32>
    %110 = vector.shape_cast %109 : vector<8xf32> to vector<8x1xf32>
    %111 = tpu.reciprocal %110 {approx = true} : vector<8x1xf32> -> vector<8x1xf32>
    %112 = vector.broadcast %111 : vector<8x1xf32> to vector<8x8xf32>
    %113 = arith.mulf %108, %112 : vector<8x8xf32>
    %114 = arith.truncf %113 : vector<8x8xf32> to vector<8x8xbf16>
    %c0_79 = arith.constant 0 : index
    %c3_80 = arith.constant 3 : index
    %c0_81 = arith.constant 0 : index
    %c0_82 = arith.constant 0 : index
    %115 = vector.load %arg12[%c0_79, %c3_80, %c0_81, %c0_82] : memref<1x4x8x8xbf16, #tpu.memory_space<vmem>>, vector<1x1x8x8xbf16>
    %116 = vector.shape_cast %115 : vector<1x1x8x8xbf16> to vector<8x8xbf16>
    %117 = vector.shape_cast %114 : vector<8x8xbf16> to vector<1x1x8x8xbf16>
    tpu.vector_store %arg12[%c0_79, %c3_80, %c0_81, %c0_82], %117 {strides = array<i32>} : memref<1x4x8x8xbf16, #tpu.memory_space<vmem>>, vector<1x1x8x8xbf16>,
    %cst_83 = arith.constant dense<0.000000e+00> : vector<8x8xf32>
    %118 = tpu.matmul %114, %102, %cst_83 {dimension_numbers = #tpu.dot_dimension_numbers<[1], [0], [0], [1], [0, 0, 1, 1], [], []>} : vector<8x8xbf16>, vector<8x8xbf16>, vector<8x8xf32> -> vector<8x8xf32>
    %119 = arith.truncf %118 : vector<8x8xf32> to vector<8x8xbf16>
    %c3_84 = arith.constant 3 : index
    %c0_85 = arith.constant 0 : index
    %c0_86 = arith.constant 0 : index
    %120 = vector.load %arg8[%c3_84, %c0_85, %c0_86] : memref<4x8x32xbf16, #tpu.memory_space<vmem>>, vector<1x8x32xbf16>
    %121 = vector.shape_cast %120 : vector<1x8x32xbf16> to vector<8x32xbf16>
    %cst_87 = arith.constant dense<0.000000e+00> : vector<8x32xf32>
    %122 = tpu.matmul %119, %121, %cst_87 {dimension_numbers = #tpu.dot_dimension_numbers<[1], [0], [0], [1], [0, 0, 1, 1], [], []>} : vector<8x8xbf16>, vector<8x32xbf16>, vector<8x32xf32> -> vector<8x32xf32>
    %123 = arith.addf %94, %122 : vector<8x32xf32>
    %cst_88 = arith.constant dense<0.000000e+00> : vector<8xf32>
    %124 = vector.multi_reduction <add>, %123, %cst_88 [1] : vector<8x32xf32> to vector<8xf32>
    %125 = vector.shape_cast %124 : vector<8xf32> to vector<8x1xf32>
    %cst_89 = arith.constant 3.200000e+01 : f32
    %126 = vector.broadcast %cst_89 : f32 to vector<8x1xf32>
    %127 = arith.divf %125, %126 : vector<8x1xf32>
    %128 = vector.broadcast %127 : vector<8x1xf32> to vector<8x32xf32>
    %129 = arith.subf %123, %128 : vector<8x32xf32>
    %130 = arith.mulf %129, %129 : vector<8x32xf32>
    %cst_90 = arith.constant dense<0.000000e+00> : vector<8xf32>
    %131 = vector.multi_reduction <add>, %130, %cst_90 [1] : vector<8x32xf32> to vector<8xf32>
    %132 = vector.shape_cast %131 : vector<8xf32> to vector<8x1xf32>
    %cst_91 = arith.constant 3.200000e+01 : f32
    %133 = vector.broadcast %cst_91 : f32 to vector<8x1xf32>
    %134 = arith.divf %132, %133 : vector<8x1xf32>
    %135 = vector.broadcast %127 : vector<8x1xf32> to vector<8x32xf32>
    %136 = arith.subf %123, %135 : vector<8x32xf32>
    %cst_92 = arith.constant 9.99999974E-6 : f32
    %137 = vector.broadcast %cst_92 : f32 to vector<8x1xf32>
    %138 = arith.addf %134, %137 : vector<8x1xf32>
    %139 = math.rsqrt %138 : vector<8x1xf32>
    %140 = vector.broadcast %139 : vector<8x1xf32> to vector<8x32xf32>
    %141 = arith.mulf %136, %140 : vector<8x32xf32>
    %c0_93 = arith.constant 0 : index
    %c0_94 = arith.constant 0 : index
    %142 = vector.load %arg9[%c0_93, %c0_94] : memref<1x32xf32, #tpu.memory_space<vmem>>, vector<1x32xf32>
    %143 = vector.broadcast %142 : vector<1x32xf32> to vector<8x32xf32>
    %144 = arith.mulf %141, %143 : vector<8x32xf32>
    %c0_95 = arith.constant 0 : index
    %c0_96 = arith.constant 0 : index
    %145 = vector.load %arg10[%c0_95, %c0_96] : memref<1x32xf32, #tpu.memory_space<vmem>>, vector<1x32xf32>
    %146 = vector.broadcast %145 : vector<1x32xf32> to vector<8x32xf32>
    %147 = arith.addf %144, %146 : vector<8x32xf32>
    %c0_97 = arith.constant 0 : index
    %c0_98 = arith.constant 0 : index
    %c0_99 = arith.constant 0 : index
    %148 = vector.load %arg11[%c0_97, %c0_98, %c0_99] : memref<1x8x32xf32, #tpu.memory_space<vmem>>, vector<1x8x32xf32>
    %149 = vector.shape_cast %148 : vector<1x8x32xf32> to vector<8x32xf32>
    %150 = vector.shape_cast %147 : vector<8x32xf32> to vector<1x8x32xf32>
    tpu.vector_store %arg11[%c0_97, %c0_98, %c0_99], %150 {strides = array<i32>} : memref<1x8x32xf32, #tpu.memory_space<vmem>>, vector<1x8x32xf32>,
    return
  }
  func.func @transform_0(%arg0: i32, %arg1: i32) -> (i32, i32, i32) {
    %c0_i32 = arith.constant 0 : i32
    %c0_i32_0 = arith.constant 0 : i32
    return %arg0, %arg1, %c0_i32 : i32, i32, i32
  }
  func.func @transform_1(%arg0: i32, %arg1: i32) -> (i32, i32, i32) {
    %c0_i32 = arith.constant 0 : i32
    %c0_i32_0 = arith.constant 0 : i32
    %c0_i32_1 = arith.constant 0 : i32
    return %arg0, %c0_i32, %c0_i32_0 : i32, i32, i32
  }
  func.func @transform_2(%arg0: i32, %arg1: i32) -> (i32, i32, i32) {
    %c0_i32 = arith.constant 0 : i32
    %c0_i32_0 = arith.constant 0 : i32
    %c0_i32_1 = arith.constant 0 : i32
    return %arg0, %c0_i32, %c0_i32_0 : i32, i32, i32
  }
  func.func @transform_3(%arg0: i32, %arg1: i32) -> (i32, i32, i32) {
    %c0_i32 = arith.constant 0 : i32
    %c0_i32_0 = arith.constant 0 : i32
    %c0_i32_1 = arith.constant 0 : i32
    %c0_i32_2 = arith.constant 0 : i32
    return %c0_i32, %c0_i32_0, %c0_i32_1 : i32, i32, i32
  }
  func.func @transform_4(%arg0: i32, %arg1: i32) -> (i32, i32, i32) {
    %c0_i32 = arith.constant 0 : i32
    %c0_i32_0 = arith.constant 0 : i32
    %c0_i32_1 = arith.constant 0 : i32
    %c0_i32_2 = arith.constant 0 : i32
    return %c0_i32, %c0_i32_0, %c0_i32_1 : i32, i32, i32
  }
  func.func @transform_5(%arg0: i32, %arg1: i32) -> (i32, i32, i32) {
    %c0_i32 = arith.constant 0 : i32
    %c0_i32_0 = arith.constant 0 : i32
    %c0_i32_1 = arith.constant 0 : i32
    %c0_i32_2 = arith.constant 0 : i32
    return %c0_i32, %c0_i32_0, %c0_i32_1 : i32, i32, i32
  }
  func.func @transform_6(%arg0: i32, %arg1: i32) -> (i32, i32, i32) {
    %c0_i32 = arith.constant 0 : i32
    %c0_i32_0 = arith.constant 0 : i32
    %c0_i32_1 = arith.constant 0 : i32
    %c0_i32_2 = arith.constant 0 : i32
    return %c0_i32, %c0_i32_0, %c0_i32_1 : i32, i32, i32
  }
  func.func @transform_7(%arg0: i32, %arg1: i32) -> (i32, i32) {
    %c0_i32 = arith.constant 0 : i32
    %c0_i32_0 = arith.constant 0 : i32
    %c0_i32_1 = arith.constant 0 : i32
    return %c0_i32, %c0_i32_0 : i32, i32
  }
  func.func @transform_8(%arg0: i32, %arg1: i32) -> (i32, i32) {
    %c0_i32 = arith.constant 0 : i32
    %c0_i32_0 = arith.constant 0 : i32
    %c0_i32_1 = arith.constant 0 : i32
    return %c0_i32, %c0_i32_0 : i32, i32
  }
  func.func @transform_9(%arg0: i32, %arg1: i32) -> (i32, i32, i32) {
    %c0_i32 = arith.constant 0 : i32
    %c0_i32_0 = arith.constant 0 : i32
    return %arg0, %arg1, %c0_i32 : i32, i32, i32
  }
  func.func @transform_10(%arg0: i32, %arg1: i32) -> (i32, i32, i32, i32) {
    %c0_i32 = arith.constant 0 : i32
    %c0_i32_0 = arith.constant 0 : i32
    %c0_i32_1 = arith.constant 0 : i32
    return %arg0, %c0_i32, %arg1, %c0_i32_0 : i32, i32, i32, i32
  }
}

</mosaic_0001>

<bundles_post_ra>
// kernel: tpu_custom_call.1
= control target key start
LH: loop header
LB: loop body
LE: loop exit
PB: predicated region body
PF: predicated region fallthrough
CT: control target
= control target key end

     0   :  { %s3037_s0 = inlined_call_operand.vmem [shape: f32[2,8,32], index: 0, kind: input, shape index: {}]   ;;  %s3038_s1 = inlined_call_operand.vmem [shape: bf16[2,8,32], index: 1, kind: input, shape index: {}]   ;;  %s3039_s2 = inlined_call_operand.vmem [shape: bf16[2,8,32], index: 2, kind: input, shape index: {}]   ;;  %s3040_s3 = inlined_call_operand.vmem [shape: bf16[4,32,8], index: 3, kind: input, shape index: {}]   ;;  %s3041_s4 = inlined_call_operand.vmem [shape: bf16[4,32,8], index: 4, kind: input, shape index: {}]   ;;  %s3042_s5 = inlined_call_operand.vmem [shape: bf16[4,32,8], index: 5, kind: input, shape index: {}]   ;;  %s3043_s6 = inlined_call_operand.vmem [shape: bf16[4,8,32], index: 6, kind: input, shape index: {}]   ;;  %s3044_s7 = inlined_call_operand.vmem [shape: f32[1,32], index: 7, kind: input, shape index: {}]   ;;  %s3045_s8 = inlined_call_operand.vmem [shape: f32[1,32], index: 8, kind: input, shape index: {}]   ;;  %s3046_s9 = inlined_call_operand.hbm [shape: f32[2,8,32], index: 9, kind: output, shape index: {0}]   ;;  %s3047_s10 = inlined_call_operand.hbm [shape: bf16[2,4,8,8], index: 10, kind: output, shape index: {1}]  }
   0x1   :  { %3048 = sst [smem:[#allocation10_spill]] %s3037_s0 }
   0x2   :  { %3049 = sst [smem:[#allocation11_spill]] %s3038_s1 }
   0x3   :  { %3050 = sst [smem:[#allocation12_spill]] %s3039_s2 }
   0x4   :  { %16 = vsyncpa [#allocation5], 0 }
   0x5   :  { %18 = vsyncpa [#allocation5 + $0x1], 0 }
   0x6   :  { %19 = vsyncpa [#allocation7], 0 }
   0x7   :  { %21 = vsyncpa [#allocation7 + $0x1], 0  ;;  %s2628_s13 = smov 0   ;;  %s2630_s14 = smov 0  }
   0x8   :  { %s2632_s15 = smov 0   ;;  %s2634_s16 = smov 0  }
   0x9   :  { %s2636_s17 = smov 0   ;;  %s2638_s18 = smov 0  }
   0xa LB: > { %s1998_s19 = sadd.s32 4294967295, %s2565_s18   ;;  %s1999_s20 = sadd.s32 4294967294, %s2565_s18   ;;  %s2565_s18 = sphi %s2638_s18, %s27_s18   ;;  %s2561_s17 = sphi %s2636_s17, %s3061_s17   ;;  %s2557_s16 = sphi %s2634_s16, %s3060_s16   ;;  %s2553_s15 = sphi %s2632_s15, %s3059_s15   ;;  %s2549_s14 = sphi %s2630_s14, %s3058_s14   ;;  %s2545_s13 = sphi %s2628_s13, %s3057_s13  }
   0xb   : > { %s39_s21 = sadd.s32 1, %s2561_s17  ;;  %s254_s22 = sadd.s32 1, %s2553_s15 }
   0xc   : > { %p41_p0 = scmp.ge.s32.totalorder %s39_s21, 2  ;;  %p264_p1 = scmp.ne.s32.totalorder %s2553_s15, %s2549_s14 }
   0xd   : > { %p265_p2 = scmp.eq.s32.totalorder %s1998_s19, 1  ;;  %p270_p3 = scmp.ne.s32.totalorder %s2549_s14, %s2545_s13 }
   0xe   : > { %s3063_s21 = smov (%p41_p0, %s39_s21), 0  ;;  %p271_p5 = scmp.eq.s32.totalorder %s1999_s20, 1 }
   0xf   : > { %p2668_p4 = por %p265_p2, %p264_p1  ;;  %s249_s24 = ssub.s32 %s2561_s17, %s3063_s21 }
  0x10   : > { %p2002_p6 = scmp.ge.s32.totalorder %s2565_s18, 1  ;;  %p252_p7 = scmp.eq.s32.totalorder %s249_s24, 0 }
  0x11   : > { %p2675_p8 = por %p271_p5, %p270_p3  ;;  %p359_p9 = scmp.lt.s32.totalorder %s2565_s18, 3 }
  0x12   : > { %s2681_s26 = scalar_select %p252_p7, %s2553_s15, %s254_s22  }
  0x13   : > { %p360_p10 = pnand %p2002_p6, %p359_p9 }
  0x14   : > { %v2413_v0 = vld [vmem:[%s3041_s4] sm:$0xff] (!%p360_p10)   ;;  %v2567_v1 = vmov (!%p360_p10), 0.0   ;;  %v2414_v2 = vld [vmem:[%s3041_s4 + $0x8] sm:$0xff] (!%p360_p10)   ;;  %vm2568_vm0 = vmmov (!%p360_p10), 0   ;;  %p412_p11 = scmp.lt.s32.totalorder (!%p360_p10), %s2557_s16, 1  ;;  %vm450_vm1 = vcmask (!%p360_p10), 261120  }
  0x15   : > { %363 = sbr.rel (%p360_p10) target bundleno = 3812 (0xee4), region = 56  ;;  %2168 = vmatprep.subr.bf16.mxu0 (!%p360_p10), %v2567_v1  ;;  %2176 = vmatprep.subr.bf16.mxu1 (!%p360_p10), %v2567_v1  ;;  %v2415_v3 = vld [vmem:[%s3041_s4 + $0x10] sm:$0xff] (!%p360_p10)   ;;  %s3053_s1 = sld [smem:[#allocation11_spill]] (!%p360_p10)  ;;  %v2416_v5 = vld [vmem:[%s3041_s4 + $0x18] sm:$0xff] (!%p360_p10)   ;;  %v2423_v6 = vld [vmem:[%s3042_s5] sm:$0xff] (!%p360_p10)   ;;  %vm495_vm2 = vcmask (!%p360_p10), 60416  }
  0x16   : > { %2169 = vmatpush3.bf16.msra.mxu0 (!%p360_p10), %v2413_v0  ;;  %2172 = vmatprep.mubr.msk.bf16.mxu0 (!%p360_p10), %vm2568_vm0, %v2567_v1  ;;  %v2417_v7 = vld [vmem:[%s3041_s4 + $0x20] sm:$0xff] (!%p360_p10)   ;;  %s3054_s2 = sld [smem:[#allocation12_spill]] (!%p360_p10)  ;;  %v2424_v8 = vld [vmem:[%s3042_s5 + $0x8] sm:$0xff] (!%p360_p10)   ;;  %v2425_v11 = vld [vmem:[%s3042_s5 + $0x10] sm:$0xff] (!%p360_p10)   ;;  %s3055_s0 = sld [smem:[#allocation10_spill]] (!%p360_p10)  ;;  %vm984_vm3 = vcmask (!%p360_p10), 64512  }
  0x17   : > { %2170 = vmatprep.subr.bf16.mxu0 (!%p360_p10), %v2567_v1  ;;  %2180 = vmatprep.mubr.msk.bf16.mxu1 (!%p360_p10), %vm2568_vm0, %v2567_v1  ;;  %v2418_v9 = vld [vmem:[%s3041_s4 + $0x28] sm:$0xff] (!%p360_p10)   ;;  %v2419_v12 = vld [vmem:[%s3041_s4 + $0x30] sm:$0xff] (!%p360_p10)   ;;  %v2426_v13 = vld [vmem:[%s3042_s5 + $0x18] sm:$0xff] (!%p360_p10)   ;;  %vm1048_vm4 = vcmask (!%p360_p10), 1043456   ;;  %s2832_s24 = sand.u32 (!%p360_p10), 1, %s2549_s14   ;;  %s2107_s29 = sshll.u32 (!%p360_p10), %s2557_s16, 8 }
  0x18   : > { %2177 = vmatpush3.bf16.msra.mxu1 (!%p360_p10), %v2423_v6  ;;  %v2420_v14 = vld [vmem:[%s3041_s4 + $0x38] sm:$0xff] (!%p360_p10)   ;;  %v2427_v15 = vld [vmem:[%s3042_s5 + $0x20] sm:$0xff] (!%p360_p10)   ;;  %v2428_v18 = vld [vmem:[%s3042_s5 + $0x28] sm:$0xff] (!%p360_p10)  }
  0x19   : > { %2178 = vmatprep.subr.bf16.mxu1 (!%p360_p10), %v2567_v1  ;;  %v2421_v17 = vld [vmem:[%s3040_s3] sm:$0xff] (!%p360_p10)   ;;  %v2422_v20 = vld [vmem:[%s3040_s3 + $0x8] sm:$0xff] (!%p360_p10)   ;;  %v2429_v22 = vld [vmem:[%s3042_s5 + $0x30] sm:$0xff] (!%p360_p10)  }
  0x1a   : > { %2171 = vmatpush3.bf16.msra.mxu0 (!%p360_p10), %v2414_v2  ;;  %v2430_v23 = vld [vmem:[%s3042_s5 + $0x38] sm:$0xff] (!%p360_p10)  }
  0x1b   : > { %2184 = vmatprep.subr.bf16.mxu0 (!%p360_p10), %v2567_v1 }
  0x1c   : > { %s2698_s11 = scalar_select %p412_p11, %s2557_s16, 1  ;;  %2179 = vmatpush3.bf16.msra.mxu1 %v2424_v8 }
  0x1d   : > { %2192 = vmatprep.subr.bf16.mxu1 %v2567_v1 }
  0x1e   : > { %s2006_s12 = sshll.u32 %s2698_s11, 2 }
  0x1f   : > { %s422_s27 = scalar_lea.vmem %s3053_s1, %s2006_s12  ;;  %s426_s28 = scalar_lea.vmem %s3054_s2, %s2006_s12 }
  0x20   : > { %v432_v4 = vld [vmem:[%s422_s27] sm:$0xf]  ;;  %s2004_s27 = sshll.u32 %s2832_s24, 4  ;;  %s2569_s12 = smov [#allocation6]  }
  0x21   : > { %2173 = vmatmul.mubr.msk.bf16.vlgmr.msra.gmra.mrb[0].mxu0 %vm450_vm1, %v432_v4  ;;  %v433_v10 = vld [vmem:[%s426_s28] sm:$0xf]  ;;  %s2005_s28 = sshll.u32 %s2698_s11, 3  ;;  %s2839_s30 = scalar_lea.vmem [#allocation6], %s2004_s27 }
  0x22   : > { %2185 = vmatpush3.bf16.msra.mxu0 %v2415_v3  ;;  %2188 = vmatprep.mubr.msk.bf16.mxu0 %vm2568_vm0, %v2567_v1  ;;  %s418_s22 = scalar_lea.vmem %s3055_s0, %s2005_s28  ;;  %s1860_s28 = sshll.u32 %s2839_s30, 4  ;;  %s2946_s28 = int_to_ptr.vmem [resolvable:$true] %s1860_s28 }
  0x23   : > { %2186 = vmatprep.subr.bf16.mxu0 %v2567_v1  ;;  %2181 = vmatmul.mubr.msk.bf16.vlgmr.msra.gmra.mrb[0].mxu1 %vm450_vm1, %v433_v10  ;;  %v2766_v16 = vld [vmem:[%s418_s22] sm:$0xff]  ;;  %s2951_s22 = scalar_lea.hbm %s3047_s10, %s2107_s29  ;;  %s2455_s1 = scalar_lea.vmem %s2946_s28, 256 }
  0x24   : > { %2193 = vmatpush3.bf16.msra.mxu1 %v2425_v11  ;;  %2196 = vmatprep.mubr.msk.bf16.mxu1 %vm2568_vm0, %v2567_v1  ;;  %v919_v19 = vmul.f32 0.35355338, %v2766_v16  ;;  %p2456_p12 = scmp.ne.s32.totalorder %s2946_s28, %s2455_s1  ;;  %s2459_s27 = sshll.u32 %s2569_s12, 4  ;;  %s2460_s27 = int_to_ptr.vmem [resolvable:$false] %s2459_s27 }
  0x25   : > { %2194 = vmatprep.subr.bf16.mxu1 %v2567_v1  ;;  %p2462_p1 = scmp.lt.s32.totalorder %s2946_s28, %s2460_s27 }
  0x26   : > { %2187 = vmatpush3.bf16.msra.mxu0 %v2416_v5  ;;  %v2788_v21 = vpack.c.bf16 %v919_v19, %v919_v19  ;;  %p2457_p13 = pnand %p2456_p12, %p2668_p4 }
  0x27   : > { %2200 = vmatprep.subr.bf16.mxu0 %v2567_v1 }
  0x28   : > { %2195 = vmatpush3.bf16.msra.mxu1 %v2426_v13  ;;  %p2458_p0 = pneg %p2457_p13 }
  0x29   : > { %2189 = vmatmul.mubr.msk.bf16.vlgmr.msra.gmra.mrb[4].mxu0 %vm450_vm1, %v432_v4  ;;  %2208 = vmatprep.subr.bf16.mxu1 %v2567_v1 }
  0x2a   : > { %2201 = vmatpush3.bf16.msra.mxu0 %v2417_v7  ;;  %2204 = vmatprep.mubr.msk.bf16.mxu0 %vm2568_vm0, %v2567_v1 }
  0x2b   : > { %2202 = vmatprep.subr.bf16.mxu0 %v2567_v1  ;;  %2197 = vmatmul.mubr.msk.bf16.vlgmr.msra.gmra.mrb[4].mxu1 %vm450_vm1, %v433_v10 }
  0x2c   : > { %2209 = vmatpush3.bf16.msra.mxu1 %v2427_v15  ;;  %2212 = vmatprep.mubr.msk.bf16.mxu1 %vm2568_vm0, %v2567_v1 }
  0x2d   : > { %2210 = vmatprep.subr.bf16.mxu1 %v2567_v1 }
  0x2e   : > { %2203 = vmatpush3.bf16.msra.mxu0 %v2418_v9 }
  0x2f   : > { %2216 = vmatprep.subr.bf16.mxu0 %v2567_v1 }
  0x30   : > { %2211 = vmatpush3.bf16.msra.mxu1 %v2428_v18 }
  0x31   : > { %2205 = vmatmul.mubr.msk.bf16.vlgmr.msra.gmra.mrb[8].mxu0 %vm450_vm1, %v432_v4  ;;  %2224 = vmatprep.subr.bf16.mxu1 %v2567_v1 }
  0x32   : > { %2217 = vmatpush3.bf16.msra.mxu0 %v2419_v12  ;;  %2220 = vmatprep.mubr.msk.bf16.mxu0 %vm2568_vm0, %v2567_v1 }
  0x33   : > { %2218 = vmatprep.subr.bf16.mxu0 %v2567_v1  ;;  %2213 = vmatmul.mubr.msk.bf16.vlgmr.msra.gmra.mrb[8].mxu1 %vm450_vm1, %v433_v10 }
  0x34   : > { %2228 = vmatprep.mubr.msk.bf16.mxu1 %vm2568_vm0, %v2567_v1  ;;  %2225 = vmatpush3.bf16.msra.mxu1 %v2429_v22  ;;  %v1093_v22 = vld [vmem:[%s3043_s6] sm:$0xf] }
  0x35   : > { %2226 = vmatprep.subr.bf16.mxu1 %v2567_v1 }
  0x36   : > { %2219 = vmatpush3.bf16.msra.mxu0 %v2420_v14 }
  0x37   : > { %2232 = vmatprep.subr.bf16.mxu0 %v2567_v1 }
  0x38   : > { %2227 = vmatpush3.bf16.msra.mxu1 %v2430_v23  ;;  %v1098_v23 = vsel %vm1048_vm4, %v1093_v22, 0 }
  0x39   : > { %2221 = vmatmul.mubr.msk.bf16.vlgmr.msra.gmra.mrb[12].mxu0 %vm450_vm1, %v432_v4  ;;  %2240 = vmatprep.subr.bf16.mxu1 %v2567_v1 }
  0x3a   : > { %2233 = vmatpush3.bf16.msra.mxu0 %v2421_v17  ;;  %2236 = vmatprep.mubr.msk.bf16.mxu0 %vm2568_vm0, %v2567_v1 }
  0x3b   : > { %2234 = vmatprep.subr.bf16.mxu0 %v2567_v1  ;;  %2229 = vmatmul.mubr.msk.bf16.vlgmr.msra.gmra.mrb[12].mxu1 %vm450_vm1, %v433_v10 }
  0x3c   : > { %2242 = vmatprep.mubr.msk.bf16.mxu1 %vm2568_vm0, %v2567_v1 }
  0x3e   : > { %2235 = vmatpush3.bf16.msra.mxu0 %v2422_v20 }
  0x3f   : > { %2246 = vmatprep.subr.bf16.mxu0 %v2567_v1 }
  0x41   : > { %2237 = vmatmul.mubr.msk.bf16.vlgmr.msra.gmra.mrb[16].mxu0 %vm450_vm1, %v2788_v21 }
  0x42   : > { %2248 = vmatprep.mubr.msk.bf16.mxu0 %vm2568_vm0, %v2567_v1 }
  0xf4   : > { %v488_v24 = vpop.f32.mrb[0].mxu0 }
  0xf5   : > { %v494_v25 = vpack.c.bf16 %v488_v24, %v488_v24  ;;  %v2174_v26 = vpop.f32.mrb[1].mxu0 }
  0xf6   : > { %v491_v27 = vpop.f32.mrb[2].mxu0  ;;  %v550_v36 = vpop.f32.mrb[0].mxu1 }
  0xf7   : > { %496 = vst.msk [vmem:[#allocation2] sm:$0xf] %vm495_vm2, %v494_v25  ;;  %v2175_v28 = vpop.f32.mrb[3].mxu0  ;;  %v556_v37 = vpack.c.bf16 %v550_v36, %v550_v36  ;;  %v2182_v38 = vpop.f32.mrb[1].mxu1  ;;  %v2431_v27 = vld [vmem:[%s3040_s3 + $0x10] sm:$0xff]  }
  0xf8   : > { %v553_v39 = vpop.f32.mrb[2].mxu1 }
  0xf9   : > { %557 = vst.msk [vmem:[#allocation3] sm:$0xf] %vm495_vm2, %v556_v37  ;;  %v2183_v41 = vpop.f32.mrb[3].mxu1 }
  0xfc   : > { %v609_v29 = vpop.f32.mrb[4].mxu0 }
  0xfd   : > { %v615_v30 = vpack.c.bf16 %v609_v29, %v609_v29  ;;  %v2190_v31 = vpop.f32.mrb[5].mxu0  ;;  %v2432_v29 = vld [vmem:[%s3040_s3 + $0x18] sm:$0xff]  }
  0xfe   : > { %v612_v32 = vpop.f32.mrb[6].mxu0  ;;  %v982_v33 = vld [vmem:[#allocation2] sm:$0xf]  ;;  %v669_v46 = vpop.f32.mrb[4].mxu1 }
  0xff   : > { %617 = vst.msk [vmem:[#allocation2 + $0x4] sm:$0xf] %vm495_vm2, %v615_v30  ;;  %v2191_v34 = vpop.f32.mrb[7].mxu0  ;;  %v989_v35 = vsel %vm984_vm3, %v982_v33, 0  ;;  %v675_v47 = vpack.c.bf16 %v669_v46, %v669_v46  ;;  %v2198_v48 = vpop.f32.mrb[5].mxu1 }
 0x100   : > { %2241 = vmatpush3.bf16.xpose.msra.mxu1 %v989_v35  ;;  %v672_v49 = vpop.f32.mrb[6].mxu1  ;;  %v983_v50 = vld [vmem:[#allocation3] sm:$0xf] }
 0x101   : > { %2252 = vmatprep.subr.bf16.mxu1 %v2567_v1  ;;  %677 = vst.msk [vmem:[#allocation3 + $0x4] sm:$0xf] %vm495_vm2, %v675_v47  ;;  %v2199_v52 = vpop.f32.mrb[7].mxu1  ;;  %v1050_v53 = vsel %vm1048_vm4, %v983_v50, 0 }
 0x102   : > { %2247 = vmatpush3.bf16.msra.mxu0 %v1050_v53 }
 0x103   : > { %2258 = vmatprep.subr.bf16.mxu0 %v2567_v1 }
 0x104   : > { %v729_v40 = vpop.f32.mrb[8].mxu0 }
 0x105   : > { %v735_v42 = vpack.c.bf16 %v729_v40, %v729_v40  ;;  %v2206_v43 = vpop.f32.mrb[9].mxu0 }
 0x106   : > { %v732_v44 = vpop.f32.mrb[10].mxu0  ;;  %v789_v58 = vpop.f32.mrb[8].mxu1  ;;  %v1200_v33 = vld [vmem:[#allocation2 + $0x4] sm:$0xf] }
 0x107   : > { %737 = vst.msk [vmem:[#allocation2 + $0x8] sm:$0xf] %vm495_vm2, %v735_v42  ;;  %v2207_v45 = vpop.f32.mrb[11].mxu0  ;;  %v795_v59 = vpack.c.bf16 %v789_v58, %v789_v58  ;;  %v2214_v60 = vpop.f32.mrb[9].mxu1  ;;  %v1207_v38 = vsel %vm984_vm3, %v1200_v33, 0 }
 0x108   : > { %v792_v61 = vpop.f32.mrb[10].mxu1  ;;  %v1202_v30 = vld [vmem:[#allocation3 + $0x4] sm:$0xf] }
 0x109   : > { %797 = vst.msk [vmem:[#allocation3 + $0x8] sm:$0xf] %vm495_vm2, %v795_v59  ;;  %v2215_v63 = vpop.f32.mrb[11].mxu1  ;;  %v1267_v31 = vsel %vm1048_vm4, %v1202_v30, 0  ;;  %v2433_v59 = vld [vmem:[%s3040_s3 + $0x20] sm:$0xff]   ;;  %v2434_v61 = vld [vmem:[%s3040_s3 + $0x28] sm:$0xff]  }
 0x10a   : > { %v2435_v30 = vld [vmem:[%s3040_s3 + $0x30] sm:$0xff]  }
 0x10c   : > { %v849_v51 = vpop.f32.mrb[12].mxu0 }
 0x10d   : > { %v855_v54 = vpack.c.bf16 %v849_v51, %v849_v51  ;;  %v2222_v55 = vpop.f32.mrb[13].mxu0 }
 0x10e   : > { %v852_v56 = vpop.f32.mrb[14].mxu0  ;;  %v909_v5 = vpop.f32.mrb[12].mxu1 }
 0x10f   : > { %857 = vst.msk [vmem:[#allocation2 + $0xc] sm:$0xf] %vm495_vm2, %v855_v54  ;;  %v2223_v57 = vpop.f32.mrb[15].mxu0  ;;  %v915_v6 = vpack.c.bf16 %v909_v5, %v909_v5  ;;  %v2230_v7 = vpop.f32.mrb[13].mxu1  ;;  %v2072_v54 = vld [vmem:[%s3043_s6 + $0x4] sm:$0xf] }
 0x110   : > { %v912_v8 = vpop.f32.mrb[14].mxu1  ;;  %v1316_v55 = vsel %vm1048_vm4, %v2072_v54, 0 }
 0x111   : > { %917 = vst.msk [vmem:[#allocation3 + $0xc] sm:$0xf] %vm495_vm2, %v915_v6  ;;  %v2231_v9 = vpop.f32.mrb[15].mxu1 }
 0x114   : > { %v975_v62 = vpop.f32.mrb[16].mxu0 }
 0x115   : > { %v981_v0 = vpack.c.bf16 %v975_v62, %v975_v62  ;;  %v2238_v2 = vpop.f32.mrb[17].mxu0  ;;  %v1420_v62 = vld [vmem:[#allocation3 + $0x8] sm:$0xf] }
 0x116   : > { %v978_v3 = vpop.f32.mrb[18].mxu0  ;;  %v1485_v63 = vsel %vm1048_vm4, %v1420_v62, 0  ;;  %v1418_v2 = vld [vmem:[#allocation2 + $0x8] sm:$0xf] }
 0x117   : > { %v2239_v4 = vpop.f32.mrb[19].mxu0  ;;  %2243 = vmatmul.mubr.msk.bf16.vlgmr.msra.gmra.mrb[16].mxu1 %vm984_vm3, %v981_v0  ;;  %v1425_v7 = vsel %vm984_vm3, %v1418_v2, 0 }
 0x118   : > { %2254 = vmatprep.mubr.msk.bf16.mxu1 %vm2568_vm0, %v2567_v1  ;;  %2253 = vmatpush3.bf16.msra.mxu1 %v1098_v23  ;;  %v1638_v33 = vld [vmem:[#allocation3 + $0xc] sm:$0xf] }
 0x119   : > { %2266 = vmatprep.subr.bf16.mxu1 %v2567_v1 }
 0x1ea   : > { %v1025_v10 = vpop.f32.mrb[16].mxu1 }
 0x1eb   : > { %v2244_v11 = vpop.f32.mrb[17].mxu1  ;;  %v1031_v12 = vsel %vm984_vm3, %v1025_v10, -inf }
 0x1ec   : > { %1032 = vmax.xlane.f32.xlu0 %v1031_v12  ;;  %v1028_v13 = vpop.f32.mrb[18].mxu1 }
 0x1ed   : > { %v2245_v14 = vpop.f32.mrb[19].mxu1 }
 0x279   : > { %v1033_v15 = vpop.xlane.xlu0 %1032 }
 0x27a   : > { %v1034_v17 = vsub.f32 %v1025_v10, %v1033_v15 }
 0x27c   : > { %v1035_v18 = vmul.f32 1.442695, %v1034_v17 }
 0x27e   : > { %2437 = vpow2.f32 %v1035_v18 }
 0x288   : > { %v2438_v19 = vpop.eup %2437 }
 0x289   : > { %v1037_v20 = vsel %vm984_vm3, %v2438_v19, 0.0 }
 0x28a   : > { %1038 = vadd.xlane.f32.xlu0 %v1037_v20 }
 0x317   : > { %v1039_v24 = vpop.xlane.xlu0 %1038 }
 0x318   : > { %2439 = vrcp.f32 %v1039_v24 }
 0x322   : > { %v2440_v25 = vpop.eup %2439 }
 0x323   : > { %v1041_v26 = vmul.f32 %v2440_v25, %v2438_v19  ;;  %v2084_v25 = vld [vmem:[%s3043_s6 + $0x8] sm:$0xf] }
 0x325   : > { %v1042_v28 = vpack.c.bf16 %v1041_v26, %v1041_v26  ;;  %v1534_v26 = vsel %vm1048_vm4, %v2084_v25, 0 }
 0x327   : > { %2249 = vmatmul.mubr.msk.bf16.vlgmr.msra.gmra.mrb[20].mxu0 %vm984_vm3, %v1042_v28  ;;  %1044 = vst.msk [vmem:[%s2839_s30] sm:$0xf] %vm495_vm2, %v1042_v28 }
 0x328   : > { %2259 = vmatpush3.bf16.msra.mxu0 %v2431_v27  ;;  %2262 = vmatprep.mubr.msk.bf16.mxu0 %vm2568_vm0, %v2567_v1 }
 0x329   : > { %2260 = vmatprep.subr.bf16.mxu0 %v2567_v1 }
 0x32c   : > { %2261 = vmatpush3.bf16.msra.mxu0 %v2432_v29 }
 0x32d   : > { %2272 = vmatprep.subr.bf16.mxu0 %v2567_v1 }
 0x32f   : > { %2263 = vmatmul.mubr.msk.bf16.vlgmr.msra.gmra.mrb[24].mxu0 %vm450_vm1, %v2788_v21 }
 0x330   : > { %2273 = vmatpush3.bf16.msra.mxu0 %v1267_v31  ;;  %2274 = vmatprep.mubr.msk.bf16.mxu0 %vm2568_vm0, %v2567_v1 }
 0x331   : > { %2284 = vmatprep.subr.bf16.mxu0 %v2567_v1 }
 0x3fa   : > { %v1086_v32 = vpop.f32.mrb[20].mxu0 }
 0x3fb   : > { %v1092_v34 = vpack.c.bf16 %v1086_v32, %v1086_v32  ;;  %v2250_v35 = vpop.f32.mrb[21].mxu0  ;;  %v2436_v32 = vld [vmem:[%s3040_s3 + $0x38] sm:$0xff]  }
 0x3fc   : > { %v1089_v36 = vpop.f32.mrb[22].mxu0 }
 0x3fd   : > { %v2251_v37 = vpop.f32.mrb[23].mxu0  ;;  %2255 = vmatmul.mubr.msk.bf16.vlgmr.msra.gmra.mrb[20].mxu1 %vm984_vm3, %v1092_v34  ;;  %v1703_v34 = vsel %vm1048_vm4, %v1638_v33, 0  ;;  %v1636_v36 = vld [vmem:[#allocation2 + $0xc] sm:$0xf] }
 0x3fe   : > { %2267 = vmatpush3.bf16.xpose.msra.mxu1 %v1207_v38  ;;  %2268 = vmatprep.mubr.msk.bf16.mxu1 %vm2568_vm0, %v2567_v1 }
 0x3ff   : > { %2278 = vmatprep.subr.bf16.mxu1 %v2567_v1 }
 0x402   : > { %v1192_v39 = vpop.f32.mrb[24].mxu0 }
 0x403   : > { %v1198_v40 = vpack.c.bf16 %v1192_v39, %v1192_v39  ;;  %v2264_v41 = vpop.f32.mrb[25].mxu0 }
 0x404   : > { %v1195_v42 = vpop.f32.mrb[26].mxu0  ;;  %v1643_v41 = vsel %vm984_vm3, %v1636_v36, 0 }
 0x405   : > { %v2265_v43 = vpop.f32.mrb[27].mxu0  ;;  %2269 = vmatmul.mubr.msk.bf16.vlgmr.msra.gmra.mrb[24].mxu1 %vm984_vm3, %v1198_v40 }
 0x406   : > { %2280 = vmatprep.mubr.msk.bf16.mxu1 %vm2568_vm0, %v2567_v1  ;;  %2279 = vmatpush3.bf16.msra.mxu1 %v1316_v55 }
 0x407   : > { %2292 = vmatprep.subr.bf16.mxu1 %v2567_v1 }
 0x4d8   : > { %v1243_v44 = vpop.f32.mrb[24].mxu1 }
 0x4d9   : > { %v2270_v45 = vpop.f32.mrb[25].mxu1  ;;  %v1249_v46 = vsel %vm984_vm3, %v1243_v44, -inf }
 0x4da   : > { %1250 = vmax.xlane.f32.xlu1 %v1249_v46  ;;  %v1246_v47 = vpop.f32.mrb[26].mxu1 }
 0x4db   : > { %v2271_v48 = vpop.f32.mrb[27].mxu1 }
 0x567   : > { %v1251_v49 = vpop.xlane.xlu1 %1250 }
 0x568   : > { %v1252_v50 = vsub.f32 %v1243_v44, %v1251_v49 }
 0x56a   : > { %v1253_v51 = vmul.f32 1.442695, %v1252_v50 }
 0x56c   : > { %2441 = vpow2.f32 %v1253_v51 }
 0x576   : > { %v2442_v52 = vpop.eup %2441 }
 0x577   : > { %v1255_v53 = vsel %vm984_vm3, %v2442_v52, 0.0 }
 0x578   : > { %1256 = vadd.xlane.f32.xlu1 %v1255_v53 }
 0x605   : > { %v1257_v56 = vpop.xlane.xlu1 %1256 }
 0x606   : > { %2443 = vrcp.f32 %v1257_v56 }
 0x610   : > { %v2444_v57 = vpop.eup %2443 }
 0x611   : > { %v1259_v58 = vmul.f32 %v2444_v57, %v2442_v52 }
 0x613   : > { %v1260_v60 = vpack.c.bf16 %v1259_v58, %v1259_v58 }
 0x615   : > { %2275 = vmatmul.mubr.msk.bf16.vlgmr.msra.gmra.mrb[28].mxu0 %vm984_vm3, %v1260_v60  ;;  %2070 = vst.msk [vmem:[%s2839_s30 + $0x4] sm:$0xf] %vm495_vm2, %v1260_v60 }
 0x616   : > { %2285 = vmatpush3.bf16.msra.mxu0 %v2433_v59  ;;  %2288 = vmatprep.mubr.msk.bf16.mxu0 %vm2568_vm0, %v2567_v1 }
 0x617   : > { %2286 = vmatprep.subr.bf16.mxu0 %v2567_v1 }
 0x61a   : > { %2287 = vmatpush3.bf16.msra.mxu0 %v2434_v61 }
 0x61b   : > { %2298 = vmatprep.subr.bf16.mxu0 %v2567_v1 }
 0x61d   : > { %2289 = vmatmul.mubr.msk.bf16.vlgmr.msra.gmra.mrb[32].mxu0 %vm450_vm1, %v2788_v21 }
 0x61e   : > { %2299 = vmatpush3.bf16.msra.mxu0 %v1485_v63  ;;  %2300 = vmatprep.mubr.msk.bf16.mxu0 %vm2568_vm0, %v2567_v1 }
 0x61f   : > { %2310 = vmatprep.subr.bf16.mxu0 %v2567_v1 }
 0x6e8   : > { %v1303_v0 = vpop.f32.mrb[28].mxu0 }
 0x6e9   : > { %v1309_v3 = vpack.c.bf16 %v1303_v0, %v1303_v0  ;;  %v2276_v4 = vpop.f32.mrb[29].mxu0 }
 0x6ea   : > { %v1306_v5 = vpop.f32.mrb[30].mxu0 }
 0x6eb   : > { %v2277_v6 = vpop.f32.mrb[31].mxu0  ;;  %2281 = vmatmul.mubr.msk.bf16.vlgmr.msra.gmra.mrb[20].mxu1 %vm984_vm3, %v1309_v3 }
 0x6ec   : > { %2293 = vmatpush3.bf16.xpose.msra.mxu1 %v1425_v7  ;;  %2294 = vmatprep.mubr.msk.bf16.mxu1 %vm2568_vm0, %v2567_v1 }
 0x6ed   : > { %2304 = vmatprep.subr.bf16.mxu1 %v2567_v1 }
 0x6f0   : > { %v1410_v8 = vpop.f32.mrb[32].mxu0 }
 0x6f1   : > { %v1416_v9 = vpack.c.bf16 %v1410_v8, %v1410_v8  ;;  %v2290_v10 = vpop.f32.mrb[33].mxu0 }
 0x6f2   : > { %v1413_v11 = vpop.f32.mrb[34].mxu0 }
 0x6f3   : > { %v2291_v12 = vpop.f32.mrb[35].mxu0  ;;  %2295 = vmatmul.mubr.msk.bf16.vlgmr.msra.gmra.mrb[28].mxu1 %vm984_vm3, %v1416_v9 }
 0x6f4   : > { %2306 = vmatprep.mubr.msk.bf16.mxu1 %vm2568_vm0, %v2567_v1  ;;  %2305 = vmatpush3.bf16.msra.mxu1 %v1534_v26 }
 0x6f5   : > { %2318 = vmatprep.subr.bf16.mxu1 %v2567_v1 }
 0x7c6   : > { %v1461_v13 = vpop.f32.mrb[28].mxu1 }
 0x7c7   : > { %v2296_v14 = vpop.f32.mrb[29].mxu1  ;;  %v1467_v15 = vsel %vm984_vm3, %v1461_v13, -inf }
 0x7c8   : > { %1468 = vmax.xlane.f32.xlu0 %v1467_v15  ;;  %v1464_v17 = vpop.f32.mrb[30].mxu1 }
 0x7c9   : > { %v2297_v18 = vpop.f32.mrb[31].mxu1 }
 0x855   : > { %v1469_v19 = vpop.xlane.xlu0 %1468 }
 0x856   : > { %v1470_v20 = vsub.f32 %v1461_v13, %v1469_v19 }
 0x858   : > { %v1471_v22 = vmul.f32 1.442695, %v1470_v20 }
 0x85a   : > { %2445 = vpow2.f32 %v1471_v22 }
 0x864   : > { %v2446_v23 = vpop.eup %2445 }
 0x865   : > { %v1473_v24 = vsel %vm984_vm3, %v2446_v23, 0.0 }
 0x866   : > { %1474 = vadd.xlane.f32.xlu1 %v1473_v24 }
 0x8f3   : > { %v1475_v27 = vpop.xlane.xlu1 %1474 }
 0x8f4   : > { %2447 = vrcp.f32 %v1475_v27 }
 0x8fe   : > { %v2448_v28 = vpop.eup %2447 }
 0x8ff   : > { %v1477_v29 = vmul.f32 %v2448_v28, %v2446_v23 }
 0x901   : > { %v1478_v31 = vpack.c.bf16 %v1477_v29, %v1477_v29 }
 0x903   : > { %2301 = vmatmul.mubr.msk.bf16.vlgmr.msra.gmra.mrb[36].mxu0 %vm984_vm3, %v1478_v31  ;;  %2082 = vst.msk [vmem:[%s2839_s30 + $0x8] sm:$0xf] %vm495_vm2, %v1478_v31 }
 0x904   : > { %2311 = vmatpush3.bf16.msra.mxu0 %v2435_v30  ;;  %2314 = vmatprep.mubr.msk.bf16.mxu0 %vm2568_vm0, %v2567_v1 }
 0x905   : > { %2312 = vmatprep.subr.bf16.mxu0 %v2567_v1 }
 0x908   : > { %2313 = vmatpush3.bf16.msra.mxu0 %v2436_v32 }
 0x909   : > { %2324 = vmatprep.subr.bf16.mxu0 %v2567_v1 }
 0x90b   : > { %2315 = vmatmul.mubr.msk.bf16.vlgmr.msra.gmra.mrb[40].mxu0 %vm450_vm1, %v2788_v21 }
 0x90c   : > { %2325 = vmatpush3.bf16.msra.mxu0 %v1703_v34  ;;  %2326 = vmatprep.mubr.msk.bf16.mxu0 %vm2568_vm0, %v2567_v1 }
 0x9d6   : > { %v1521_v35 = vpop.f32.mrb[36].mxu0 }
 0x9d7   : > { %v1527_v37 = vpack.c.bf16 %v1521_v35, %v1521_v35  ;;  %v2302_v38 = vpop.f32.mrb[37].mxu0 }
 0x9d8   : > { %v1524_v39 = vpop.f32.mrb[38].mxu0 }
 0x9d9   : > { %v2303_v40 = vpop.f32.mrb[39].mxu0  ;;  %2307 = vmatmul.mubr.msk.bf16.vlgmr.msra.gmra.mrb[20].mxu1 %vm984_vm3, %v1527_v37 }
 0x9da   : > { %2319 = vmatpush3.bf16.xpose.msra.mxu1 %v1643_v41  ;;  %2320 = vmatprep.mubr.msk.bf16.mxu1 %vm2568_vm0, %v2567_v1 }
 0x9db   : > { %2330 = vmatprep.subr.bf16.mxu1 %v2567_v1 }
 0x9de   : > { %v1628_v21 = vpop.f32.mrb[40].mxu0 }
 0x9df   : > { %v1634_v42 = vpack.c.bf16 %v1628_v21, %v1628_v21  ;;  %v2316_v43 = vpop.f32.mrb[41].mxu0 }
 0x9e0   : > { %v1631_v44 = vpop.f32.mrb[42].mxu0 }
 0x9e1   : > { %v2317_v45 = vpop.f32.mrb[43].mxu0  ;;  %2321 = vmatmul.mubr.msk.bf16.vlgmr.msra.gmra.mrb[32].mxu1 %vm984_vm3, %v1634_v42 }
 0x9e2   : > { %2332 = vmatprep.mubr.msk.bf16.mxu1 %vm2568_vm0, %v2567_v1  ;;  %v2096_v1 = vld [vmem:[%s3043_s6 + $0xc] sm:$0xf] }
 0x9e3   : > { %v1752_v56 = vsel %vm1048_vm4, %v2096_v1, 0 }
 0x9e4   : > { %2331 = vmatpush3.bf16.msra.mxu1 %v1752_v56 }
 0xab4   : > { %v1679_v46 = vpop.f32.mrb[32].mxu1 }
 0xab5   : > { %v2322_v47 = vpop.f32.mrb[33].mxu1  ;;  %v1685_v48 = vsel %vm984_vm3, %v1679_v46, -inf }
 0xab6   : > { %1686 = vmax.xlane.f32.xlu0 %v1685_v48  ;;  %v1682_v49 = vpop.f32.mrb[34].mxu1 }
 0xab7   : > { %v2323_v50 = vpop.f32.mrb[35].mxu1 }
 0xb43   : > { %v1687_v51 = vpop.xlane.xlu0 %1686 }
 0xb44   : > { %v1688_v52 = vsub.f32 %v1679_v46, %v1687_v51 }
 0xb46   : > { %v1689_v53 = vmul.f32 1.442695, %v1688_v52 }
 0xb48   : > { %2449 = vpow2.f32 %v1689_v53 }
 0xb52   : > { %v2450_v54 = vpop.eup %2449 }
 0xb53   : > { %v1691_v55 = vsel %vm984_vm3, %v2450_v54, 0.0 }
 0xb54   : > { %1692 = vadd.xlane.f32.xlu1 %v1691_v55 }
 0xbe1   : > { %v1693_v57 = vpop.xlane.xlu1 %1692 }
 0xbe2   : > { %2451 = vrcp.f32 %v1693_v57 }
 0xbec   : > { %v2452_v58 = vpop.eup %2451 }
 0xbed   : > { %v1695_v59 = vmul.f32 %v2452_v58, %v2450_v54 }
 0xbef   : > { %v1696_v60 = vpack.c.bf16 %v1695_v59, %v1695_v59 }
 0xbf1   : > { %2327 = vmatmul.mubr.msk.bf16.vlgmr.msra.gmra.mrb[44].mxu0 %vm984_vm3, %v1696_v60  ;;  %2094 = vst.msk [vmem:[%s2839_s30 + $0xc] sm:$0xf] %vm495_vm2, %v1696_v60  ;;  %s2461_s30 = scalar_lea.vmem %s2460_s27, 512 }
 0xbf2   : > { %p2463_p2 = scmp.lt.s32.totalorder %s2461_s30, %s2455_s1 }
 0xbf4   : > { %p2464_p3 = por %p2463_p2, %p2462_p1 }
 0xbf6   : > { %p2465_p5 = pnand %p2464_p3, %p2458_p0 }
 0xcc4   : > { %v1739_v61 = vpop.f32.mrb[44].mxu0 }
 0xcc5   : > { %v1745_v62 = vpack.c.bf16 %v1739_v61, %v1739_v61  ;;  %v2328_v63 = vpop.f32.mrb[45].mxu0 }
 0xcc6   : > { %v1742_v0 = vpop.f32.mrb[46].mxu0 }
 0xcc7   : > { %v2329_v2 = vpop.f32.mrb[47].mxu0  ;;  %2333 = vmatmul.mubr.msk.bf16.vlgmr.msra.gmra.mrb[20].mxu1 %vm984_vm3, %v1745_v62 }
 0xd9a   : > { %v1788_v3 = vpop.f32.mrb[20].mxu1 }
 0xd9b   : > { %v2336_v4 = vadd.f32 %v1788_v3, %v2766_v16  ;;  %v2334_v5 = vpop.f32.mrb[21].mxu1 }
 0xd9c   : > { %v1791_v6 = vpop.f32.mrb[22].mxu1 }
 0xd9d   : > { %v2335_v7 = vpop.f32.mrb[23].mxu1  ;;  %v1795_v8 = vsel %vm450_vm1, %v2336_v4, 0.0 }
 0xd9e   : > { %1796 = vadd.xlane.f32.xlu0 %v1795_v8 }
 0xe2b   : > { %v1797_v9 = vpop.xlane.xlu0 %1796 }
 0xe2c   : > { %v1799_v10 = vmul.f32 0.03125, %v1797_v9 }
 0xe2e   : > { %v1800_v11 = vsub.f32 %v2336_v4, %v1799_v10 }
 0xe30   : > { %v1801_v12 = vmul.f32 %v1800_v11, %v1800_v11 }
 0xe32   : > { %v1802_v13 = vsel %vm450_vm1, %v1801_v12, 0.0 }
 0xe33   : > { %1803 = vadd.xlane.f32.xlu1 %v1802_v13 }
 0xe34   : > { %2468 = shalt.err (!%p2465_p5)
}
 0xe35   : > { %s2469_s29 = scalar_lea.hbm %s2951_s22, 256  ;;  %s2473_s12 = scalar_lea.hbm %s3047_s10, 512 }
 0xe36   : > { %p2470_p6 = scmp.ne.s32.totalorder %s2951_s22, %s2469_s29  ;;  %p2474_p10 = scmp.lt.u32.totalorder %s2951_s22, %s3047_s10 }
 0xe37   : > { %p2475_p11 = scmp.lt.u32.totalorder %s2473_s12, %s2469_s29  ;;  %p2477_p13 = scmp.lt.u32.totalorder %s2469_s29, %s2951_s22 }
 0xe38   : > { %p2471_p7 = pnand %p2470_p6, %p2668_p4 }
 0xe39   : > { %p2476_p12 = por %p2475_p11, %p2474_p10 }
 0xe3a   : > { %p2472_p9 = pneg %p2471_p7 }
 0xe3b   : > { %p2478_p0 = por %p2477_p13, %p2476_p12 }
 0xe3d   : > { %p2479_p1 = pnand %p2478_p0, %p2472_p9 }
 0xe3f   : > { %2482 = shalt.err (!%p2479_p1)
}
 0xe40   : > { %s2570_s1 = smov 64   ;;  %s2571_s30 = smov 4   ;;  %v2098_v18 = vld [vmem:[%s3044_s7] ss:$0 sm:$0xff] }
 0xe41   : > { %s3056_s19 = scalar_lea.sflag [#allocation7], %s2832_s24  ;;  %s2003_s11 = sshll.u32 %s2832_s24, 3  ;;  %v2099_v20 = vld [vmem:[%s3045_s8] ss:$0 sm:$0xff] }
 0xe42   : > { %2350 = dma.vmem_to_hbm [thread:$0]  (%p2668_p4), %s2946_s28, 256, %s2951_s22, %s3056_s19, %s2570_s1, %s2570_s1, %s2571_s30  }
 0xe43   : > { %s2102_s0 = sshll.u32 %s2557_s16, 7  ;;  %s404_s2 = scalar_lea.vmem [#allocation4], %s2003_s11 }
 0xe44   : > { %s1846_s28 = sshll.u32 %s404_s2, 4  ;;  %s2988_s30 = scalar_lea.hbm %s3046_s9, %s2102_s0  ;;  %s2990_s28 = int_to_ptr.vmem [resolvable:$true] %s1846_s28 }
 0xe45   : > { %s1827_s19 = scalar_lea.sflag [#allocation5], %s2832_s24  ;;  %s2483_s29 = scalar_lea.vmem %s2990_s28, 128 }
 0xe46   : > { %p2484_p2 = scmp.ne.s32.totalorder %s2990_s28, %s2483_s29  ;;  %s2572_s16 = smov [#allocation4]  }
 0xe47   : > { %s2487_s11 = sshll.u32 %s2572_s16, 4  ;;  %s2488_s11 = int_to_ptr.vmem [resolvable:$false] %s2487_s11 }
 0xe48   : > { %p2485_p3 = pnand %p2484_p2, %p2668_p4  ;;  %s2489_s20 = scalar_lea.vmem %s2488_s11, 256 }
 0xe49   : > { %p2490_p6 = scmp.lt.s32.totalorder %s2990_s28, %s2488_s11  ;;  %p2491_p7 = scmp.lt.s32.totalorder %s2489_s20, %s2483_s29 }
 0xe4a   : > { %p2486_p5 = pneg %p2485_p3 }
 0xe4b   : > { %p2492_p9 = por %p2491_p7, %p2490_p6 }
 0xe4d   : > { %p2493_p10 = pnand %p2492_p9, %p2486_p5 }
 0xec0   : > { %v1804_v16 = vpop.xlane.xlu1 %1803 }
 0xec1   : > { %v1805_v14 = vmul.f32 0.03125, %v1804_v16 }
 0xec3   : > { %v1806_v15 = vadd.f32 1e-05, %v1805_v14 }
 0xec5   : > { %2453 = vrsqrt.f32 %v1806_v15 }
 0xecf   : > { %v2454_v17 = vpop.eup %2453 }
 0xed0   : > { %v1808_v19 = vmul.f32 %v2454_v17, %v1800_v11 }
 0xed2   : > { %v1816_v22 = vmul.f32 %v2098_v18, %v1808_v19 }
 0xed4   : > { %v1824_v23 = vadd.f32 %v2099_v20, %v1816_v22 }
 0xed6   : > { %1825 = vst.msk [vmem:[%s404_s2] sm:$0xff] %vm450_vm1, %v1824_v23 }
 0xed7   : > { %2496 = shalt.err (!%p2493_p10)
}
 0xed8   : > { %s2497_s0 = scalar_lea.hbm %s2988_s30, 128  ;;  %s2501_s12 = scalar_lea.hbm %s3046_s9, 256 }
 0xed9   : > { %p2498_p11 = scmp.ne.s32.totalorder %s2988_s30, %s2497_s0  ;;  %p2502_p0 = scmp.lt.u32.totalorder %s2988_s30, %s3046_s9 }
 0xeda   : > { %p2503_p1 = scmp.lt.u32.totalorder %s2501_s12, %s2497_s0  ;;  %p2505_p3 = scmp.lt.u32.totalorder %s2497_s0, %s2988_s30 }
 0xedb   : > { %p2499_p12 = pnand %p2498_p11, %p2668_p4 }
 0xedc   : > { %p2504_p2 = por %p2503_p1, %p2502_p0 }
 0xedd   : > { %p2500_p13 = pneg %p2499_p12 }
 0xede   : > { %p2506_p5 = por %p2505_p3, %p2504_p2 }
 0xee0   : > { %p2507_p6 = pnand %p2506_p5, %p2500_p13 }
 0xee2   : > { %2510 = shalt.err (!%p2507_p6)
}
 0xee3   : > { %2349 = dma.vmem_to_hbm [thread:$0]  (%p2668_p4), %s2990_s28, 128, %s2988_s30, %s1827_s19  }
 0xee4 PF: > { %p2360_p7 = scmp.ge.s32.totalorder %s2565_s18, 2  ;;  %s1875_s1 = sand.u32 1, %s2545_s13  }
 0xee5   : > { %s1876_s29 = scalar_lea.sflag [#allocation5], %s1875_s1 }
 0xee6   : > { %p2354_p9 = pnand %p2360_p7, %p2675_p8 }
 0xee8   : > { %2536 = dma.done.wait (!%p2354_p9), %s1876_s29, 128  }
 0xee9   : > { %2538 = vsyncadd (!%p2354_p9), %s1876_s29, 4294967168  ;;  %s1885_s16 = scalar_lea.sflag [#allocation7], %s1875_s1 }
 0xeea   : > { %2540 = dma.done.wait (!%p2354_p9), %s1885_s16, 256  }
 0xeeb   : > { %2542 = vsyncadd (!%p2354_p9), %s1885_s16, 4294967040  ;;  %s27_s18 = sadd.s32 1, %s2565_s18   ;;  %s3057_s13 = smov %s2549_s14 }
 0xeec   : > { %p24_p10 = scmp.ge.s32.totalorder %s27_s18, 4   ;;  %s3058_s14 = smov %s2553_s15 }
 0xeed   : > { %s3059_s15 = smov %s2681_s26  ;;  %s3060_s16 = smov %s2561_s17 }
 0xeee   : > { %s3061_s17 = smov %s3063_s21  ;;  %26 = sbr.rel (!%p24_p10) target bundleno = 10 (0xa), region = 145 }
 0xef5   :  { %1890 = vsyncpa [#allocation5], 1 }
 0xef6   :  { %1892 = vsyncpa [#allocation5 + $0x1], 1 }
 0xef7   :  { %1893 = vsyncpa [#allocation7], 1 }
 0xef8   :  { %1895 = vsyncpa [#allocation7 + $0x1], 1 }

// kernel: tpu_custom_call.1
= control target key start
LH: loop header
LB: loop body
LE: loop exit
PB: predicated region body
PF: predicated region fallthrough
CT: control target
= control target key end

     0   :  { %s3031_s0 = inlined_call_operand.vmem [shape: f32[2,8,32], index: 0, kind: input, shape index: {}]   ;;  %s3032_s1 = inlined_call_operand.vmem [shape: bf16[2,8,32], index: 1, kind: input, shape index: {}]   ;;  %s3033_s2 = inlined_call_operand.vmem [shape: bf16[2,8,32], index: 2, kind: input, shape index: {}]   ;;  %s3034_s3 = inlined_call_operand.vmem [shape: bf16[4,32,8], index: 3, kind: input, shape index: {}]   ;;  %s3035_s4 = inlined_call_operand.vmem [shape: bf16[4,32,8], index: 4, kind: input, shape index: {}]   ;;  %s3036_s5 = inlined_call_operand.vmem [shape: bf16[4,32,8], index: 5, kind: input, shape index: {}]   ;;  %s3037_s6 = inlined_call_operand.vmem [shape: bf16[4,8,32], index: 6, kind: input, shape index: {}]   ;;  %s3038_s7 = inlined_call_operand.vmem [shape: f32[1,32], index: 7, kind: input, shape index: {}]   ;;  %s3039_s8 = inlined_call_operand.vmem [shape: f32[1,32], index: 8, kind: input, shape index: {}]   ;;  %s3040_s9 = inlined_call_operand.hbm [shape: f32[2,8,32], index: 9, kind: output, shape index: {0}]   ;;  %s3041_s10 = inlined_call_operand.hbm [shape: bf16[2,4,8,8], index: 10, kind: output, shape index: {1}]  }
   0x1   :  { %3042 = sst [smem:[#allocation10_spill]] %s3031_s0 }
   0x2   :  { %3043 = sst [smem:[#allocation11_spill]] %s3032_s1 }
   0x3   :  { %3044 = sst [smem:[#allocation12_spill]] %s3033_s2 }
   0x4   :  { %16 = vsyncpa [#allocation5], 0 }
   0x5   :  { %18 = vsyncpa [#allocation5 + $0x1], 0 }
   0x6   :  { %19 = vsyncpa [#allocation7], 0 }
   0x7   :  { %21 = vsyncpa [#allocation7 + $0x1], 0  ;;  %s2622_s13 = smov 0   ;;  %s2624_s14 = smov 0  }
   0x8   :  { %s2626_s15 = smov 0   ;;  %s2628_s16 = smov 0  }
   0x9   :  { %s2630_s17 = smov 0   ;;  %s2632_s18 = smov 0  }
   0xa LB: > { %s1992_s19 = sadd.s32 4294967295, %s2559_s18   ;;  %s1993_s20 = sadd.s32 4294967294, %s2559_s18   ;;  %s2559_s18 = sphi %s2632_s18, %s27_s18   ;;  %s2555_s17 = sphi %s2630_s17, %s3055_s17   ;;  %s2551_s16 = sphi %s2628_s16, %s3054_s16   ;;  %s2547_s15 = sphi %s2626_s15, %s3053_s15   ;;  %s2543_s14 = sphi %s2624_s14, %s3052_s14   ;;  %s2539_s13 = sphi %s2622_s13, %s3051_s13  }
   0xb   : > { %s39_s21 = sadd.s32 1, %s2555_s17  ;;  %s254_s22 = sadd.s32 1, %s2547_s15 }
   0xc   : > { %p41_p0 = scmp.ge.s32.totalorder %s39_s21, 2  ;;  %p264_p1 = scmp.ne.s32.totalorder %s2547_s15, %s2543_s14 }
   0xd   : > { %p265_p2 = scmp.eq.s32.totalorder %s1992_s19, 1  ;;  %p270_p3 = scmp.ne.s32.totalorder %s2543_s14, %s2539_s13 }
   0xe   : > { %s3057_s21 = smov (%p41_p0, %s39_s21), 0  ;;  %p271_p5 = scmp.eq.s32.totalorder %s1993_s20, 1 }
   0xf   : > { %p2662_p4 = por %p265_p2, %p264_p1  ;;  %s249_s24 = ssub.s32 %s2555_s17, %s3057_s21 }
  0x10   : > { %p1996_p6 = scmp.ge.s32.totalorder %s2559_s18, 1  ;;  %p252_p7 = scmp.eq.s32.totalorder %s249_s24, 0 }
  0x11   : > { %p2669_p8 = por %p271_p5, %p270_p3  ;;  %p359_p9 = scmp.lt.s32.totalorder %s2559_s18, 3 }
  0x12   : > { %s2675_s26 = scalar_select %p252_p7, %s2547_s15, %s254_s22  }
  0x13   : > { %p360_p10 = pnand %p1996_p6, %p359_p9 }
  0x14   : > { %v2407_v0 = vld [vmem:[%s3035_s4] sm:$0xff] (!%p360_p10)   ;;  %v2561_v1 = vmov (!%p360_p10), 0.0   ;;  %v2408_v2 = vld [vmem:[%s3035_s4 + $0x8] sm:$0xff] (!%p360_p10)   ;;  %vm2562_vm0 = vmmov (!%p360_p10), 0   ;;  %p412_p11 = scmp.lt.s32.totalorder (!%p360_p10), %s2551_s16, 1  ;;  %vm450_vm1 = vcmask (!%p360_p10), 261120  }
  0x15   : > { %363 = sbr.rel (%p360_p10) target bundleno = 3812 (0xee4), region = 56  ;;  %2162 = vmatprep.subr.bf16.mxu0 (!%p360_p10), %v2561_v1  ;;  %2170 = vmatprep.subr.bf16.mxu1 (!%p360_p10), %v2561_v1  ;;  %v2409_v3 = vld [vmem:[%s3035_s4 + $0x10] sm:$0xff] (!%p360_p10)   ;;  %s3047_s1 = sld [smem:[#allocation11_spill]] (!%p360_p10)  ;;  %v2410_v5 = vld [vmem:[%s3035_s4 + $0x18] sm:$0xff] (!%p360_p10)   ;;  %v2417_v6 = vld [vmem:[%s3036_s5] sm:$0xff] (!%p360_p10)   ;;  %vm495_vm2 = vcmask (!%p360_p10), 60416  }
  0x16   : > { %2163 = vmatpush3.bf16.msra.mxu0 (!%p360_p10), %v2407_v0  ;;  %2166 = vmatprep.mubr.msk.bf16.mxu0 (!%p360_p10), %vm2562_vm0, %v2561_v1  ;;  %v2411_v7 = vld [vmem:[%s3035_s4 + $0x20] sm:$0xff] (!%p360_p10)   ;;  %s3048_s2 = sld [smem:[#allocation12_spill]] (!%p360_p10)  ;;  %v2418_v8 = vld [vmem:[%s3036_s5 + $0x8] sm:$0xff] (!%p360_p10)   ;;  %v2419_v11 = vld [vmem:[%s3036_s5 + $0x10] sm:$0xff] (!%p360_p10)   ;;  %s3049_s0 = sld [smem:[#allocation10_spill]] (!%p360_p10)  ;;  %vm984_vm3 = vcmask (!%p360_p10), 64512  }
  0x17   : > { %2164 = vmatprep.subr.bf16.mxu0 (!%p360_p10), %v2561_v1  ;;  %2174 = vmatprep.mubr.msk.bf16.mxu1 (!%p360_p10), %vm2562_vm0, %v2561_v1  ;;  %v2412_v9 = vld [vmem:[%s3035_s4 + $0x28] sm:$0xff] (!%p360_p10)   ;;  %v2413_v12 = vld [vmem:[%s3035_s4 + $0x30] sm:$0xff] (!%p360_p10)   ;;  %v2420_v13 = vld [vmem:[%s3036_s5 + $0x18] sm:$0xff] (!%p360_p10)   ;;  %vm1048_vm4 = vcmask (!%p360_p10), 1043456   ;;  %s2826_s24 = sand.u32 (!%p360_p10), 1, %s2543_s14   ;;  %s2101_s29 = sshll.u32 (!%p360_p10), %s2551_s16, 8 }
  0x18   : > { %2171 = vmatpush3.bf16.msra.mxu1 (!%p360_p10), %v2417_v6  ;;  %v2414_v14 = vld [vmem:[%s3035_s4 + $0x38] sm:$0xff] (!%p360_p10)   ;;  %v2421_v15 = vld [vmem:[%s3036_s5 + $0x20] sm:$0xff] (!%p360_p10)   ;;  %v2422_v18 = vld [vmem:[%s3036_s5 + $0x28] sm:$0xff] (!%p360_p10)  }
  0x19   : > { %2172 = vmatprep.subr.bf16.mxu1 (!%p360_p10), %v2561_v1  ;;  %v2415_v17 = vld [vmem:[%s3034_s3] sm:$0xff] (!%p360_p10)   ;;  %v2416_v20 = vld [vmem:[%s3034_s3 + $0x8] sm:$0xff] (!%p360_p10)   ;;  %v2423_v22 = vld [vmem:[%s3036_s5 + $0x30] sm:$0xff] (!%p360_p10)  }
  0x1a   : > { %2165 = vmatpush3.bf16.msra.mxu0 (!%p360_p10), %v2408_v2  ;;  %v2424_v23 = vld [vmem:[%s3036_s5 + $0x38] sm:$0xff] (!%p360_p10)  }
  0x1b   : > { %2178 = vmatprep.subr.bf16.mxu0 (!%p360_p10), %v2561_v1 }
  0x1c   : > { %s2692_s11 = scalar_select %p412_p11, %s2551_s16, 1  ;;  %2173 = vmatpush3.bf16.msra.mxu1 %v2418_v8 }
  0x1d   : > { %2186 = vmatprep.subr.bf16.mxu1 %v2561_v1 }
  0x1e   : > { %s2000_s12 = sshll.u32 %s2692_s11, 2 }
  0x1f   : > { %s422_s27 = scalar_lea.vmem %s3047_s1, %s2000_s12  ;;  %s426_s28 = scalar_lea.vmem %s3048_s2, %s2000_s12 }
  0x20   : > { %v432_v4 = vld [vmem:[%s422_s27] sm:$0xf]  ;;  %s1998_s27 = sshll.u32 %s2826_s24, 4  ;;  %s2563_s12 = smov [#allocation6]  }
  0x21   : > { %2167 = vmatmul.mubr.msk.bf16.vlgmr.msra.gmra.mrb[0].mxu0 %vm450_vm1, %v432_v4  ;;  %v433_v10 = vld [vmem:[%s426_s28] sm:$0xf]  ;;  %s1999_s28 = sshll.u32 %s2692_s11, 3  ;;  %s2833_s30 = scalar_lea.vmem [#allocation6], %s1998_s27 }
  0x22   : > { %2179 = vmatpush3.bf16.msra.mxu0 %v2409_v3  ;;  %2182 = vmatprep.mubr.msk.bf16.mxu0 %vm2562_vm0, %v2561_v1  ;;  %s418_s22 = scalar_lea.vmem %s3049_s0, %s1999_s28  ;;  %s1860_s28 = sshll.u32 %s2833_s30, 4  ;;  %s2940_s28 = int_to_ptr.vmem [resolvable:$true] %s1860_s28 }
  0x23   : > { %2180 = vmatprep.subr.bf16.mxu0 %v2561_v1  ;;  %2175 = vmatmul.mubr.msk.bf16.vlgmr.msra.gmra.mrb[0].mxu1 %vm450_vm1, %v433_v10  ;;  %v2760_v16 = vld [vmem:[%s418_s22] sm:$0xff]  ;;  %s2945_s22 = scalar_lea.hbm %s3041_s10, %s2101_s29  ;;  %s2449_s1 = scalar_lea.vmem %s2940_s28, 256 }
  0x24   : > { %2187 = vmatpush3.bf16.msra.mxu1 %v2419_v11  ;;  %2190 = vmatprep.mubr.msk.bf16.mxu1 %vm2562_vm0, %v2561_v1  ;;  %v919_v19 = vmul.f32 0.35355338, %v2760_v16  ;;  %p2450_p12 = scmp.ne.s32.totalorder %s2940_s28, %s2449_s1  ;;  %s2453_s27 = sshll.u32 %s2563_s12, 4  ;;  %s2454_s27 = int_to_ptr.vmem [resolvable:$false] %s2453_s27 }
  0x25   : > { %2188 = vmatprep.subr.bf16.mxu1 %v2561_v1  ;;  %p2456_p1 = scmp.lt.s32.totalorder %s2940_s28, %s2454_s27 }
  0x26   : > { %2181 = vmatpush3.bf16.msra.mxu0 %v2410_v5  ;;  %v2782_v21 = vpack.c.bf16 %v919_v19, %v919_v19  ;;  %p2451_p13 = pnand %p2450_p12, %p2662_p4 }
  0x27   : > { %2194 = vmatprep.subr.bf16.mxu0 %v2561_v1 }
  0x28   : > { %2189 = vmatpush3.bf16.msra.mxu1 %v2420_v13  ;;  %p2452_p0 = pneg %p2451_p13 }
  0x29   : > { %2183 = vmatmul.mubr.msk.bf16.vlgmr.msra.gmra.mrb[4].mxu0 %vm450_vm1, %v432_v4  ;;  %2202 = vmatprep.subr.bf16.mxu1 %v2561_v1 }
  0x2a   : > { %2195 = vmatpush3.bf16.msra.mxu0 %v2411_v7  ;;  %2198 = vmatprep.mubr.msk.bf16.mxu0 %vm2562_vm0, %v2561_v1 }
  0x2b   : > { %2196 = vmatprep.subr.bf16.mxu0 %v2561_v1  ;;  %2191 = vmatmul.mubr.msk.bf16.vlgmr.msra.gmra.mrb[4].mxu1 %vm450_vm1, %v433_v10 }
  0x2c   : > { %2203 = vmatpush3.bf16.msra.mxu1 %v2421_v15  ;;  %2206 = vmatprep.mubr.msk.bf16.mxu1 %vm2562_vm0, %v2561_v1 }
  0x2d   : > { %2204 = vmatprep.subr.bf16.mxu1 %v2561_v1 }
  0x2e   : > { %2197 = vmatpush3.bf16.msra.mxu0 %v2412_v9 }
  0x2f   : > { %2210 = vmatprep.subr.bf16.mxu0 %v2561_v1 }
  0x30   : > { %2205 = vmatpush3.bf16.msra.mxu1 %v2422_v18 }
  0x31   : > { %2199 = vmatmul.mubr.msk.bf16.vlgmr.msra.gmra.mrb[8].mxu0 %vm450_vm1, %v432_v4  ;;  %2218 = vmatprep.subr.bf16.mxu1 %v2561_v1 }
  0x32   : > { %2211 = vmatpush3.bf16.msra.mxu0 %v2413_v12  ;;  %2214 = vmatprep.mubr.msk.bf16.mxu0 %vm2562_vm0, %v2561_v1 }
  0x33   : > { %2212 = vmatprep.subr.bf16.mxu0 %v2561_v1  ;;  %2207 = vmatmul.mubr.msk.bf16.vlgmr.msra.gmra.mrb[8].mxu1 %vm450_vm1, %v433_v10 }
  0x34   : > { %2222 = vmatprep.mubr.msk.bf16.mxu1 %vm2562_vm0, %v2561_v1  ;;  %2219 = vmatpush3.bf16.msra.mxu1 %v2423_v22  ;;  %v1093_v22 = vld [vmem:[%s3037_s6] sm:$0xf] }
  0x35   : > { %2220 = vmatprep.subr.bf16.mxu1 %v2561_v1 }
  0x36   : > { %2213 = vmatpush3.bf16.msra.mxu0 %v2414_v14 }
  0x37   : > { %2226 = vmatprep.subr.bf16.mxu0 %v2561_v1 }
  0x38   : > { %2221 = vmatpush3.bf16.msra.mxu1 %v2424_v23  ;;  %v1098_v23 = vsel %vm1048_vm4, %v1093_v22, 0 }
  0x39   : > { %2215 = vmatmul.mubr.msk.bf16.vlgmr.msra.gmra.mrb[12].mxu0 %vm450_vm1, %v432_v4  ;;  %2234 = vmatprep.subr.bf16.mxu1 %v2561_v1 }
  0x3a   : > { %2227 = vmatpush3.bf16.msra.mxu0 %v2415_v17  ;;  %2230 = vmatprep.mubr.msk.bf16.mxu0 %vm2562_vm0, %v2561_v1 }
  0x3b   : > { %2228 = vmatprep.subr.bf16.mxu0 %v2561_v1  ;;  %2223 = vmatmul.mubr.msk.bf16.vlgmr.msra.gmra.mrb[12].mxu1 %vm450_vm1, %v433_v10 }
  0x3c   : > { %2236 = vmatprep.mubr.msk.bf16.mxu1 %vm2562_vm0, %v2561_v1 }
  0x3e   : > { %2229 = vmatpush3.bf16.msra.mxu0 %v2416_v20 }
  0x3f   : > { %2240 = vmatprep.subr.bf16.mxu0 %v2561_v1 }
  0x41   : > { %2231 = vmatmul.mubr.msk.bf16.vlgmr.msra.gmra.mrb[16].mxu0 %vm450_vm1, %v2782_v21 }
  0x42   : > { %2242 = vmatprep.mubr.msk.bf16.mxu0 %vm2562_vm0, %v2561_v1 }
  0xf4   : > { %v488_v24 = vpop.f32.mrb[0].mxu0 }
  0xf5   : > { %v494_v25 = vpack.c.bf16 %v488_v24, %v488_v24  ;;  %v2168_v26 = vpop.f32.mrb[1].mxu0 }
  0xf6   : > { %v491_v27 = vpop.f32.mrb[2].mxu0  ;;  %v550_v36 = vpop.f32.mrb[0].mxu1 }
  0xf7   : > { %496 = vst.msk [vmem:[#allocation2] sm:$0xf] %vm495_vm2, %v494_v25  ;;  %v2169_v28 = vpop.f32.mrb[3].mxu0  ;;  %v556_v37 = vpack.c.bf16 %v550_v36, %v550_v36  ;;  %v2176_v38 = vpop.f32.mrb[1].mxu1  ;;  %v2425_v27 = vld [vmem:[%s3034_s3 + $0x10] sm:$0xff]  }
  0xf8   : > { %v553_v39 = vpop.f32.mrb[2].mxu1 }
  0xf9   : > { %557 = vst.msk [vmem:[#allocation3] sm:$0xf] %vm495_vm2, %v556_v37  ;;  %v2177_v41 = vpop.f32.mrb[3].mxu1 }
  0xfc   : > { %v609_v29 = vpop.f32.mrb[4].mxu0 }
  0xfd   : > { %v615_v30 = vpack.c.bf16 %v609_v29, %v609_v29  ;;  %v2184_v31 = vpop.f32.mrb[5].mxu0  ;;  %v2426_v29 = vld [vmem:[%s3034_s3 + $0x18] sm:$0xff]  }
  0xfe   : > { %v612_v32 = vpop.f32.mrb[6].mxu0  ;;  %v982_v33 = vld [vmem:[#allocation2] sm:$0xf]  ;;  %v669_v46 = vpop.f32.mrb[4].mxu1 }
  0xff   : > { %617 = vst.msk [vmem:[#allocation2 + $0x4] sm:$0xf] %vm495_vm2, %v615_v30  ;;  %v2185_v34 = vpop.f32.mrb[7].mxu0  ;;  %v989_v35 = vsel %vm984_vm3, %v982_v33, 0  ;;  %v675_v47 = vpack.c.bf16 %v669_v46, %v669_v46  ;;  %v2192_v48 = vpop.f32.mrb[5].mxu1 }
 0x100   : > { %2235 = vmatpush3.bf16.xpose.msra.mxu1 %v989_v35  ;;  %v672_v49 = vpop.f32.mrb[6].mxu1  ;;  %v983_v50 = vld [vmem:[#allocation3] sm:$0xf] }
 0x101   : > { %2246 = vmatprep.subr.bf16.mxu1 %v2561_v1  ;;  %677 = vst.msk [vmem:[#allocation3 + $0x4] sm:$0xf] %vm495_vm2, %v675_v47  ;;  %v2193_v52 = vpop.f32.mrb[7].mxu1  ;;  %v1050_v53 = vsel %vm1048_vm4, %v983_v50, 0 }
 0x102   : > { %2241 = vmatpush3.bf16.msra.mxu0 %v1050_v53 }
 0x103   : > { %2252 = vmatprep.subr.bf16.mxu0 %v2561_v1 }
 0x104   : > { %v729_v40 = vpop.f32.mrb[8].mxu0 }
 0x105   : > { %v735_v42 = vpack.c.bf16 %v729_v40, %v729_v40  ;;  %v2200_v43 = vpop.f32.mrb[9].mxu0 }
 0x106   : > { %v732_v44 = vpop.f32.mrb[10].mxu0  ;;  %v789_v58 = vpop.f32.mrb[8].mxu1  ;;  %v1200_v33 = vld [vmem:[#allocation2 + $0x4] sm:$0xf] }
 0x107   : > { %737 = vst.msk [vmem:[#allocation2 + $0x8] sm:$0xf] %vm495_vm2, %v735_v42  ;;  %v2201_v45 = vpop.f32.mrb[11].mxu0  ;;  %v795_v59 = vpack.c.bf16 %v789_v58, %v789_v58  ;;  %v2208_v60 = vpop.f32.mrb[9].mxu1  ;;  %v1207_v38 = vsel %vm984_vm3, %v1200_v33, 0 }
 0x108   : > { %v792_v61 = vpop.f32.mrb[10].mxu1  ;;  %v1202_v30 = vld [vmem:[#allocation3 + $0x4] sm:$0xf] }
 0x109   : > { %797 = vst.msk [vmem:[#allocation3 + $0x8] sm:$0xf] %vm495_vm2, %v795_v59  ;;  %v2209_v63 = vpop.f32.mrb[11].mxu1  ;;  %v1267_v31 = vsel %vm1048_vm4, %v1202_v30, 0  ;;  %v2427_v59 = vld [vmem:[%s3034_s3 + $0x20] sm:$0xff]   ;;  %v2428_v61 = vld [vmem:[%s3034_s3 + $0x28] sm:$0xff]  }
 0x10a   : > { %v2429_v30 = vld [vmem:[%s3034_s3 + $0x30] sm:$0xff]  }
 0x10c   : > { %v849_v51 = vpop.f32.mrb[12].mxu0 }
 0x10d   : > { %v855_v54 = vpack.c.bf16 %v849_v51, %v849_v51  ;;  %v2216_v55 = vpop.f32.mrb[13].mxu0 }
 0x10e   : > { %v852_v56 = vpop.f32.mrb[14].mxu0  ;;  %v909_v5 = vpop.f32.mrb[12].mxu1 }
 0x10f   : > { %857 = vst.msk [vmem:[#allocation2 + $0xc] sm:$0xf] %vm495_vm2, %v855_v54  ;;  %v2217_v57 = vpop.f32.mrb[15].mxu0  ;;  %v915_v6 = vpack.c.bf16 %v909_v5, %v909_v5  ;;  %v2224_v7 = vpop.f32.mrb[13].mxu1  ;;  %v2066_v54 = vld [vmem:[%s3037_s6 + $0x4] sm:$0xf] }
 0x110   : > { %v912_v8 = vpop.f32.mrb[14].mxu1  ;;  %v1316_v55 = vsel %vm1048_vm4, %v2066_v54, 0 }
 0x111   : > { %917 = vst.msk [vmem:[#allocation3 + $0xc] sm:$0xf] %vm495_vm2, %v915_v6  ;;  %v2225_v9 = vpop.f32.mrb[15].mxu1 }
 0x114   : > { %v975_v62 = vpop.f32.mrb[16].mxu0 }
 0x115   : > { %v981_v0 = vpack.c.bf16 %v975_v62, %v975_v62  ;;  %v2232_v2 = vpop.f32.mrb[17].mxu0  ;;  %v1420_v62 = vld [vmem:[#allocation3 + $0x8] sm:$0xf] }
 0x116   : > { %v978_v3 = vpop.f32.mrb[18].mxu0  ;;  %v1485_v63 = vsel %vm1048_vm4, %v1420_v62, 0  ;;  %v1418_v2 = vld [vmem:[#allocation2 + $0x8] sm:$0xf] }
 0x117   : > { %v2233_v4 = vpop.f32.mrb[19].mxu0  ;;  %2237 = vmatmul.mubr.msk.bf16.vlgmr.msra.gmra.mrb[16].mxu1 %vm984_vm3, %v981_v0  ;;  %v1425_v7 = vsel %vm984_vm3, %v1418_v2, 0 }
 0x118   : > { %2248 = vmatprep.mubr.msk.bf16.mxu1 %vm2562_vm0, %v2561_v1  ;;  %2247 = vmatpush3.bf16.msra.mxu1 %v1098_v23  ;;  %v1638_v33 = vld [vmem:[#allocation3 + $0xc] sm:$0xf] }
 0x119   : > { %2260 = vmatprep.subr.bf16.mxu1 %v2561_v1 }
 0x1ea   : > { %v1025_v10 = vpop.f32.mrb[16].mxu1 }
 0x1eb   : > { %v2238_v11 = vpop.f32.mrb[17].mxu1  ;;  %v1031_v12 = vsel %vm984_vm3, %v1025_v10, -inf }
 0x1ec   : > { %1032 = vmax.xlane.f32.xlu0 %v1031_v12  ;;  %v1028_v13 = vpop.f32.mrb[18].mxu1 }
 0x1ed   : > { %v2239_v14 = vpop.f32.mrb[19].mxu1 }
 0x279   : > { %v1033_v15 = vpop.xlane.xlu0 %1032 }
 0x27a   : > { %v1034_v17 = vsub.f32 %v1025_v10, %v1033_v15 }
 0x27c   : > { %v1035_v18 = vmul.f32 1.442695, %v1034_v17 }
 0x27e   : > { %2431 = vpow2.f32 %v1035_v18 }
 0x288   : > { %v2432_v19 = vpop.eup %2431 }
 0x289   : > { %v1037_v20 = vsel %vm984_vm3, %v2432_v19, 0.0 }
 0x28a   : > { %1038 = vadd.xlane.f32.xlu0 %v1037_v20 }
 0x317   : > { %v1039_v24 = vpop.xlane.xlu0 %1038 }
 0x318   : > { %2433 = vrcp.f32 %v1039_v24 }
 0x322   : > { %v2434_v25 = vpop.eup %2433 }
 0x323   : > { %v1041_v26 = vmul.f32 %v2434_v25, %v2432_v19  ;;  %v2078_v25 = vld [vmem:[%s3037_s6 + $0x8] sm:$0xf] }
 0x325   : > { %v1042_v28 = vpack.c.bf16 %v1041_v26, %v1041_v26  ;;  %v1534_v26 = vsel %vm1048_vm4, %v2078_v25, 0 }
 0x327   : > { %2243 = vmatmul.mubr.msk.bf16.vlgmr.msra.gmra.mrb[20].mxu0 %vm984_vm3, %v1042_v28  ;;  %1044 = vst.msk [vmem:[%s2833_s30] sm:$0xf] %vm495_vm2, %v1042_v28 }
 0x328   : > { %2253 = vmatpush3.bf16.msra.mxu0 %v2425_v27  ;;  %2256 = vmatprep.mubr.msk.bf16.mxu0 %vm2562_vm0, %v2561_v1 }
 0x329   : > { %2254 = vmatprep.subr.bf16.mxu0 %v2561_v1 }
 0x32c   : > { %2255 = vmatpush3.bf16.msra.mxu0 %v2426_v29 }
 0x32d   : > { %2266 = vmatprep.subr.bf16.mxu0 %v2561_v1 }
 0x32f   : > { %2257 = vmatmul.mubr.msk.bf16.vlgmr.msra.gmra.mrb[24].mxu0 %vm450_vm1, %v2782_v21 }
 0x330   : > { %2267 = vmatpush3.bf16.msra.mxu0 %v1267_v31  ;;  %2268 = vmatprep.mubr.msk.bf16.mxu0 %vm2562_vm0, %v2561_v1 }
 0x331   : > { %2278 = vmatprep.subr.bf16.mxu0 %v2561_v1 }
 0x3fa   : > { %v1086_v32 = vpop.f32.mrb[20].mxu0 }
 0x3fb   : > { %v1092_v34 = vpack.c.bf16 %v1086_v32, %v1086_v32  ;;  %v2244_v35 = vpop.f32.mrb[21].mxu0  ;;  %v2430_v32 = vld [vmem:[%s3034_s3 + $0x38] sm:$0xff]  }
 0x3fc   : > { %v1089_v36 = vpop.f32.mrb[22].mxu0 }
 0x3fd   : > { %v2245_v37 = vpop.f32.mrb[23].mxu0  ;;  %2249 = vmatmul.mubr.msk.bf16.vlgmr.msra.gmra.mrb[20].mxu1 %vm984_vm3, %v1092_v34  ;;  %v1703_v34 = vsel %vm1048_vm4, %v1638_v33, 0  ;;  %v1636_v36 = vld [vmem:[#allocation2 + $0xc] sm:$0xf] }
 0x3fe   : > { %2261 = vmatpush3.bf16.xpose.msra.mxu1 %v1207_v38  ;;  %2262 = vmatprep.mubr.msk.bf16.mxu1 %vm2562_vm0, %v2561_v1 }
 0x3ff   : > { %2272 = vmatprep.subr.bf16.mxu1 %v2561_v1 }
 0x402   : > { %v1192_v39 = vpop.f32.mrb[24].mxu0 }
 0x403   : > { %v1198_v40 = vpack.c.bf16 %v1192_v39, %v1192_v39  ;;  %v2258_v41 = vpop.f32.mrb[25].mxu0 }
 0x404   : > { %v1195_v42 = vpop.f32.mrb[26].mxu0  ;;  %v1643_v41 = vsel %vm984_vm3, %v1636_v36, 0 }
 0x405   : > { %v2259_v43 = vpop.f32.mrb[27].mxu0  ;;  %2263 = vmatmul.mubr.msk.bf16.vlgmr.msra.gmra.mrb[24].mxu1 %vm984_vm3, %v1198_v40 }
 0x406   : > { %2274 = vmatprep.mubr.msk.bf16.mxu1 %vm2562_vm0, %v2561_v1  ;;  %2273 = vmatpush3.bf16.msra.mxu1 %v1316_v55 }
 0x407   : > { %2286 = vmatprep.subr.bf16.mxu1 %v2561_v1 }
 0x4d8   : > { %v1243_v44 = vpop.f32.mrb[24].mxu1 }
 0x4d9   : > { %v2264_v45 = vpop.f32.mrb[25].mxu1  ;;  %v1249_v46 = vsel %vm984_vm3, %v1243_v44, -inf }
 0x4da   : > { %1250 = vmax.xlane.f32.xlu1 %v1249_v46  ;;  %v1246_v47 = vpop.f32.mrb[26].mxu1 }
 0x4db   : > { %v2265_v48 = vpop.f32.mrb[27].mxu1 }
 0x567   : > { %v1251_v49 = vpop.xlane.xlu1 %1250 }
 0x568   : > { %v1252_v50 = vsub.f32 %v1243_v44, %v1251_v49 }
 0x56a   : > { %v1253_v51 = vmul.f32 1.442695, %v1252_v50 }
 0x56c   : > { %2435 = vpow2.f32 %v1253_v51 }
 0x576   : > { %v2436_v52 = vpop.eup %2435 }
 0x577   : > { %v1255_v53 = vsel %vm984_vm3, %v2436_v52, 0.0 }
 0x578   : > { %1256 = vadd.xlane.f32.xlu1 %v1255_v53 }
 0x605   : > { %v1257_v56 = vpop.xlane.xlu1 %1256 }
 0x606   : > { %2437 = vrcp.f32 %v1257_v56 }
 0x610   : > { %v2438_v57 = vpop.eup %2437 }
 0x611   : > { %v1259_v58 = vmul.f32 %v2438_v57, %v2436_v52 }
 0x613   : > { %v1260_v60 = vpack.c.bf16 %v1259_v58, %v1259_v58 }
 0x615   : > { %2269 = vmatmul.mubr.msk.bf16.vlgmr.msra.gmra.mrb[28].mxu0 %vm984_vm3, %v1260_v60  ;;  %2064 = vst.msk [vmem:[%s2833_s30 + $0x4] sm:$0xf] %vm495_vm2, %v1260_v60 }
 0x616   : > { %2279 = vmatpush3.bf16.msra.mxu0 %v2427_v59  ;;  %2282 = vmatprep.mubr.msk.bf16.mxu0 %vm2562_vm0, %v2561_v1 }
 0x617   : > { %2280 = vmatprep.subr.bf16.mxu0 %v2561_v1 }
 0x61a   : > { %2281 = vmatpush3.bf16.msra.mxu0 %v2428_v61 }
 0x61b   : > { %2292 = vmatprep.subr.bf16.mxu0 %v2561_v1 }
 0x61d   : > { %2283 = vmatmul.mubr.msk.bf16.vlgmr.msra.gmra.mrb[32].mxu0 %vm450_vm1, %v2782_v21 }
 0x61e   : > { %2293 = vmatpush3.bf16.msra.mxu0 %v1485_v63  ;;  %2294 = vmatprep.mubr.msk.bf16.mxu0 %vm2562_vm0, %v2561_v1 }
 0x61f   : > { %2304 = vmatprep.subr.bf16.mxu0 %v2561_v1 }
 0x6e8   : > { %v1303_v0 = vpop.f32.mrb[28].mxu0 }
 0x6e9   : > { %v1309_v3 = vpack.c.bf16 %v1303_v0, %v1303_v0  ;;  %v2270_v4 = vpop.f32.mrb[29].mxu0 }
 0x6ea   : > { %v1306_v5 = vpop.f32.mrb[30].mxu0 }
 0x6eb   : > { %v2271_v6 = vpop.f32.mrb[31].mxu0  ;;  %2275 = vmatmul.mubr.msk.bf16.vlgmr.msra.gmra.mrb[20].mxu1 %vm984_vm3, %v1309_v3 }
 0x6ec   : > { %2287 = vmatpush3.bf16.xpose.msra.mxu1 %v1425_v7  ;;  %2288 = vmatprep.mubr.msk.bf16.mxu1 %vm2562_vm0, %v2561_v1 }
 0x6ed   : > { %2298 = vmatprep.subr.bf16.mxu1 %v2561_v1 }
 0x6f0   : > { %v1410_v8 = vpop.f32.mrb[32].mxu0 }
 0x6f1   : > { %v1416_v9 = vpack.c.bf16 %v1410_v8, %v1410_v8  ;;  %v2284_v10 = vpop.f32.mrb[33].mxu0 }
 0x6f2   : > { %v1413_v11 = vpop.f32.mrb[34].mxu0 }
 0x6f3   : > { %v2285_v12 = vpop.f32.mrb[35].mxu0  ;;  %2289 = vmatmul.mubr.msk.bf16.vlgmr.msra.gmra.mrb[28].mxu1 %vm984_vm3, %v1416_v9 }
 0x6f4   : > { %2300 = vmatprep.mubr.msk.bf16.mxu1 %vm2562_vm0, %v2561_v1  ;;  %2299 = vmatpush3.bf16.msra.mxu1 %v1534_v26 }
 0x6f5   : > { %2312 = vmatprep.subr.bf16.mxu1 %v2561_v1 }
 0x7c6   : > { %v1461_v13 = vpop.f32.mrb[28].mxu1 }
 0x7c7   : > { %v2290_v14 = vpop.f32.mrb[29].mxu1  ;;  %v1467_v15 = vsel %vm984_vm3, %v1461_v13, -inf }
 0x7c8   : > { %1468 = vmax.xlane.f32.xlu0 %v1467_v15  ;;  %v1464_v17 = vpop.f32.mrb[30].mxu1 }
 0x7c9   : > { %v2291_v18 = vpop.f32.mrb[31].mxu1 }
 0x855   : > { %v1469_v19 = vpop.xlane.xlu0 %1468 }
 0x856   : > { %v1470_v20 = vsub.f32 %v1461_v13, %v1469_v19 }
 0x858   : > { %v1471_v22 = vmul.f32 1.442695, %v1470_v20 }
 0x85a   : > { %2439 = vpow2.f32 %v1471_v22 }
 0x864   : > { %v2440_v23 = vpop.eup %2439 }
 0x865   : > { %v1473_v24 = vsel %vm984_vm3, %v2440_v23, 0.0 }
 0x866   : > { %1474 = vadd.xlane.f32.xlu1 %v1473_v24 }
 0x8f3   : > { %v1475_v27 = vpop.xlane.xlu1 %1474 }
 0x8f4   : > { %2441 = vrcp.f32 %v1475_v27 }
 0x8fe   : > { %v2442_v28 = vpop.eup %2441 }
 0x8ff   : > { %v1477_v29 = vmul.f32 %v2442_v28, %v2440_v23 }
 0x901   : > { %v1478_v31 = vpack.c.bf16 %v1477_v29, %v1477_v29 }
 0x903   : > { %2295 = vmatmul.mubr.msk.bf16.vlgmr.msra.gmra.mrb[36].mxu0 %vm984_vm3, %v1478_v31  ;;  %2076 = vst.msk [vmem:[%s2833_s30 + $0x8] sm:$0xf] %vm495_vm2, %v1478_v31 }
 0x904   : > { %2305 = vmatpush3.bf16.msra.mxu0 %v2429_v30  ;;  %2308 = vmatprep.mubr.msk.bf16.mxu0 %vm2562_vm0, %v2561_v1 }
 0x905   : > { %2306 = vmatprep.subr.bf16.mxu0 %v2561_v1 }
 0x908   : > { %2307 = vmatpush3.bf16.msra.mxu0 %v2430_v32 }
 0x909   : > { %2318 = vmatprep.subr.bf16.mxu0 %v2561_v1 }
 0x90b   : > { %2309 = vmatmul.mubr.msk.bf16.vlgmr.msra.gmra.mrb[40].mxu0 %vm450_vm1, %v2782_v21 }
 0x90c   : > { %2319 = vmatpush3.bf16.msra.mxu0 %v1703_v34  ;;  %2320 = vmatprep.mubr.msk.bf16.mxu0 %vm2562_vm0, %v2561_v1 }
 0x9d6   : > { %v1521_v35 = vpop.f32.mrb[36].mxu0 }
 0x9d7   : > { %v1527_v37 = vpack.c.bf16 %v1521_v35, %v1521_v35  ;;  %v2296_v38 = vpop.f32.mrb[37].mxu0 }
 0x9d8   : > { %v1524_v39 = vpop.f32.mrb[38].mxu0 }
 0x9d9   : > { %v2297_v40 = vpop.f32.mrb[39].mxu0  ;;  %2301 = vmatmul.mubr.msk.bf16.vlgmr.msra.gmra.mrb[20].mxu1 %vm984_vm3, %v1527_v37 }
 0x9da   : > { %2313 = vmatpush3.bf16.xpose.msra.mxu1 %v1643_v41  ;;  %2314 = vmatprep.mubr.msk.bf16.mxu1 %vm2562_vm0, %v2561_v1 }
 0x9db   : > { %2324 = vmatprep.subr.bf16.mxu1 %v2561_v1 }
 0x9de   : > { %v1628_v21 = vpop.f32.mrb[40].mxu0 }
 0x9df   : > { %v1634_v42 = vpack.c.bf16 %v1628_v21, %v1628_v21  ;;  %v2310_v43 = vpop.f32.mrb[41].mxu0 }
 0x9e0   : > { %v1631_v44 = vpop.f32.mrb[42].mxu0 }
 0x9e1   : > { %v2311_v45 = vpop.f32.mrb[43].mxu0  ;;  %2315 = vmatmul.mubr.msk.bf16.vlgmr.msra.gmra.mrb[32].mxu1 %vm984_vm3, %v1634_v42 }
 0x9e2   : > { %2326 = vmatprep.mubr.msk.bf16.mxu1 %vm2562_vm0, %v2561_v1  ;;  %v2090_v1 = vld [vmem:[%s3037_s6 + $0xc] sm:$0xf] }
 0x9e3   : > { %v1752_v56 = vsel %vm1048_vm4, %v2090_v1, 0 }
 0x9e4   : > { %2325 = vmatpush3.bf16.msra.mxu1 %v1752_v56 }
 0xab4   : > { %v1679_v46 = vpop.f32.mrb[32].mxu1 }
 0xab5   : > { %v2316_v47 = vpop.f32.mrb[33].mxu1  ;;  %v1685_v48 = vsel %vm984_vm3, %v1679_v46, -inf }
 0xab6   : > { %1686 = vmax.xlane.f32.xlu0 %v1685_v48  ;;  %v1682_v49 = vpop.f32.mrb[34].mxu1 }
 0xab7   : > { %v2317_v50 = vpop.f32.mrb[35].mxu1 }
 0xb43   : > { %v1687_v51 = vpop.xlane.xlu0 %1686 }
 0xb44   : > { %v1688_v52 = vsub.f32 %v1679_v46, %v1687_v51 }
 0xb46   : > { %v1689_v53 = vmul.f32 1.442695, %v1688_v52 }
 0xb48   : > { %2443 = vpow2.f32 %v1689_v53 }
 0xb52   : > { %v2444_v54 = vpop.eup %2443 }
 0xb53   : > { %v1691_v55 = vsel %vm984_vm3, %v2444_v54, 0.0 }
 0xb54   : > { %1692 = vadd.xlane.f32.xlu1 %v1691_v55 }
 0xbe1   : > { %v1693_v57 = vpop.xlane.xlu1 %1692 }
 0xbe2   : > { %2445 = vrcp.f32 %v1693_v57 }
 0xbec   : > { %v2446_v58 = vpop.eup %2445 }
 0xbed   : > { %v1695_v59 = vmul.f32 %v2446_v58, %v2444_v54 }
 0xbef   : > { %v1696_v60 = vpack.c.bf16 %v1695_v59, %v1695_v59 }
 0xbf1   : > { %2321 = vmatmul.mubr.msk.bf16.vlgmr.msra.gmra.mrb[44].mxu0 %vm984_vm3, %v1696_v60  ;;  %2088 = vst.msk [vmem:[%s2833_s30 + $0xc] sm:$0xf] %vm495_vm2, %v1696_v60  ;;  %s2455_s30 = scalar_lea.vmem %s2454_s27, 512 }
 0xbf2   : > { %p2457_p2 = scmp.lt.s32.totalorder %s2455_s30, %s2449_s1 }
 0xbf4   : > { %p2458_p3 = por %p2457_p2, %p2456_p1 }
 0xbf6   : > { %p2459_p5 = pnand %p2458_p3, %p2452_p0 }
 0xcc4   : > { %v1739_v61 = vpop.f32.mrb[44].mxu0 }
 0xcc5   : > { %v1745_v62 = vpack.c.bf16 %v1739_v61, %v1739_v61  ;;  %v2322_v63 = vpop.f32.mrb[45].mxu0 }
 0xcc6   : > { %v1742_v0 = vpop.f32.mrb[46].mxu0 }
 0xcc7   : > { %v2323_v2 = vpop.f32.mrb[47].mxu0  ;;  %2327 = vmatmul.mubr.msk.bf16.vlgmr.msra.gmra.mrb[20].mxu1 %vm984_vm3, %v1745_v62 }
 0xd9a   : > { %v1788_v3 = vpop.f32.mrb[20].mxu1 }
 0xd9b   : > { %v2330_v4 = vadd.f32 %v1788_v3, %v2760_v16  ;;  %v2328_v5 = vpop.f32.mrb[21].mxu1 }
 0xd9c   : > { %v1791_v6 = vpop.f32.mrb[22].mxu1 }
 0xd9d   : > { %v2329_v7 = vpop.f32.mrb[23].mxu1  ;;  %v1795_v8 = vsel %vm450_vm1, %v2330_v4, 0.0 }
 0xd9e   : > { %1796 = vadd.xlane.f32.xlu0 %v1795_v8 }
 0xe2b   : > { %v1797_v9 = vpop.xlane.xlu0 %1796 }
 0xe2c   : > { %v1799_v10 = vmul.f32 0.03125, %v1797_v9 }
 0xe2e   : > { %v1800_v11 = vsub.f32 %v2330_v4, %v1799_v10 }
 0xe30   : > { %v1801_v12 = vmul.f32 %v1800_v11, %v1800_v11 }
 0xe32   : > { %v1802_v13 = vsel %vm450_vm1, %v1801_v12, 0.0 }
 0xe33   : > { %1803 = vadd.xlane.f32.xlu1 %v1802_v13 }
 0xe34   : > { %2462 = shalt.err (!%p2459_p5)
}
 0xe35   : > { %s2463_s29 = scalar_lea.hbm %s2945_s22, 256  ;;  %s2467_s12 = scalar_lea.hbm %s3041_s10, 512 }
 0xe36   : > { %p2464_p6 = scmp.ne.s32.totalorder %s2945_s22, %s2463_s29  ;;  %p2468_p10 = scmp.lt.u32.totalorder %s2945_s22, %s3041_s10 }
 0xe37   : > { %p2469_p11 = scmp.lt.u32.totalorder %s2467_s12, %s2463_s29  ;;  %p2471_p13 = scmp.lt.u32.totalorder %s2463_s29, %s2945_s22 }
 0xe38   : > { %p2465_p7 = pnand %p2464_p6, %p2662_p4 }
 0xe39   : > { %p2470_p12 = por %p2469_p11, %p2468_p10 }
 0xe3a   : > { %p2466_p9 = pneg %p2465_p7 }
 0xe3b   : > { %p2472_p0 = por %p2471_p13, %p2470_p12 }
 0xe3d   : > { %p2473_p1 = pnand %p2472_p0, %p2466_p9 }
 0xe3f   : > { %2476 = shalt.err (!%p2473_p1)
}
 0xe40   : > { %s2564_s1 = smov 64   ;;  %s2565_s30 = smov 4   ;;  %v2092_v18 = vld [vmem:[%s3038_s7] ss:$0 sm:$0xff] }
 0xe41   : > { %s3050_s19 = scalar_lea.sflag [#allocation7], %s2826_s24  ;;  %s1997_s11 = sshll.u32 %s2826_s24, 3  ;;  %v2093_v20 = vld [vmem:[%s3039_s8] ss:$0 sm:$0xff] }
 0xe42   : > { %2344 = dma.vmem_to_hbm [thread:$0]  (%p2662_p4), %s2940_s28, 256, %s2945_s22, %s3050_s19, %s2564_s1, %s2564_s1, %s2565_s30  }
 0xe43   : > { %s2096_s0 = sshll.u32 %s2551_s16, 7  ;;  %s404_s2 = scalar_lea.vmem [#allocation4], %s1997_s11 }
 0xe44   : > { %s1846_s28 = sshll.u32 %s404_s2, 4  ;;  %s2982_s30 = scalar_lea.hbm %s3040_s9, %s2096_s0  ;;  %s2984_s28 = int_to_ptr.vmem [resolvable:$true] %s1846_s28 }
 0xe45   : > { %s1827_s19 = scalar_lea.sflag [#allocation5], %s2826_s24  ;;  %s2477_s29 = scalar_lea.vmem %s2984_s28, 128 }
 0xe46   : > { %p2478_p2 = scmp.ne.s32.totalorder %s2984_s28, %s2477_s29  ;;  %s2566_s16 = smov [#allocation4]  }
 0xe47   : > { %s2481_s11 = sshll.u32 %s2566_s16, 4  ;;  %s2482_s11 = int_to_ptr.vmem [resolvable:$false] %s2481_s11 }
 0xe48   : > { %p2479_p3 = pnand %p2478_p2, %p2662_p4  ;;  %s2483_s20 = scalar_lea.vmem %s2482_s11, 256 }
 0xe49   : > { %p2484_p6 = scmp.lt.s32.totalorder %s2984_s28, %s2482_s11  ;;  %p2485_p7 = scmp.lt.s32.totalorder %s2483_s20, %s2477_s29 }
 0xe4a   : > { %p2480_p5 = pneg %p2479_p3 }
 0xe4b   : > { %p2486_p9 = por %p2485_p7, %p2484_p6 }
 0xe4d   : > { %p2487_p10 = pnand %p2486_p9, %p2480_p5 }
 0xec0   : > { %v1804_v16 = vpop.xlane.xlu1 %1803 }
 0xec1   : > { %v1805_v14 = vmul.f32 0.03125, %v1804_v16 }
 0xec3   : > { %v1806_v15 = vadd.f32 1e-05, %v1805_v14 }
 0xec5   : > { %2447 = vrsqrt.f32 %v1806_v15 }
 0xecf   : > { %v2448_v17 = vpop.eup %2447 }
 0xed0   : > { %v1808_v19 = vmul.f32 %v2448_v17, %v1800_v11 }
 0xed2   : > { %v1816_v22 = vmul.f32 %v2092_v18, %v1808_v19 }
 0xed4   : > { %v1824_v23 = vadd.f32 %v2093_v20, %v1816_v22 }
 0xed6   : > { %1825 = vst.msk [vmem:[%s404_s2] sm:$0xff] %vm450_vm1, %v1824_v23 }
 0xed7   : > { %2490 = shalt.err (!%p2487_p10)
}
 0xed8   : > { %s2491_s0 = scalar_lea.hbm %s2982_s30, 128  ;;  %s2495_s12 = scalar_lea.hbm %s3040_s9, 256 }
 0xed9   : > { %p2492_p11 = scmp.ne.s32.totalorder %s2982_s30, %s2491_s0  ;;  %p2496_p0 = scmp.lt.u32.totalorder %s2982_s30, %s3040_s9 }
 0xeda   : > { %p2497_p1 = scmp.lt.u32.totalorder %s2495_s12, %s2491_s0  ;;  %p2499_p3 = scmp.lt.u32.totalorder %s2491_s0, %s2982_s30 }
 0xedb   : > { %p2493_p12 = pnand %p2492_p11, %p2662_p4 }
 0xedc   : > { %p2498_p2 = por %p2497_p1, %p2496_p0 }
 0xedd   : > { %p2494_p13 = pneg %p2493_p12 }
 0xede   : > { %p2500_p5 = por %p2499_p3, %p2498_p2 }
 0xee0   : > { %p2501_p6 = pnand %p2500_p5, %p2494_p13 }
 0xee2   : > { %2504 = shalt.err (!%p2501_p6)
}
 0xee3   : > { %2343 = dma.vmem_to_hbm [thread:$0]  (%p2662_p4), %s2984_s28, 128, %s2982_s30, %s1827_s19  }
 0xee4 PF: > { %p2354_p7 = scmp.ge.s32.totalorder %s2559_s18, 2  ;;  %s1875_s1 = sand.u32 1, %s2539_s13  }
 0xee5   : > { %s1876_s29 = scalar_lea.sflag [#allocation5], %s1875_s1 }
 0xee6   : > { %p2348_p9 = pnand %p2354_p7, %p2669_p8 }
 0xee8   : > { %2530 = dma.done.wait (!%p2348_p9), %s1876_s29, 128  }
 0xee9   : > { %2532 = vsyncadd (!%p2348_p9), %s1876_s29, 4294967168  ;;  %s1885_s16 = scalar_lea.sflag [#allocation7], %s1875_s1 }
 0xeea   : > { %2534 = dma.done.wait (!%p2348_p9), %s1885_s16, 256  }
 0xeeb   : > { %2536 = vsyncadd (!%p2348_p9), %s1885_s16, 4294967040  ;;  %s27_s18 = sadd.s32 1, %s2559_s18   ;;  %s3051_s13 = smov %s2543_s14 }
 0xeec   : > { %p24_p10 = scmp.ge.s32.totalorder %s27_s18, 4   ;;  %s3052_s14 = smov %s2547_s15 }
 0xeed   : > { %s3053_s15 = smov %s2675_s26  ;;  %s3054_s16 = smov %s2555_s17 }
 0xeee   : > { %s3055_s17 = smov %s3057_s21  ;;  %26 = sbr.rel (!%p24_p10) target bundleno = 10 (0xa), region = 145 }
 0xef5   :  { %1890 = vsyncpa [#allocation5], 1 }
 0xef6   :  { %1892 = vsyncpa [#allocation5 + $0x1], 1 }
 0xef7   :  { %1893 = vsyncpa [#allocation7], 1 }
 0xef8   :  { %1895 = vsyncpa [#allocation7 + $0x1], 1 }

</bundles_post_ra>
